<compile_context>
chip_gen: v7x
topology: tpu7x:2x2x1
jax: 0.10.0
libtpu: 0.0.40
codegen_flags: <defaults>
</compile_context>

<pallas_src>
import jax
import jax.numpy as jnp
from jax.experimental import pallas as pl
from jax.experimental.pallas import tpu as pltpu

# ------------------------- config consistent with the module ctor (small demo) -------
IMG = 32          # img_size
PATCH = 8         # patch_size
IN_CHANS = 3
EMBED_DIM = 128   # embed_dim  (ctor default 768; small for the demo)
DEPTH = 2         # depth      (ctor default 12; small for the demo)
NUM_HEADS = 4
MLP_RATIO = 4
NUM_CLASSES = 10
EPS = 1e-6
NP_ = (IMG // PATCH) ** 2          # 16 patches
SEQ = NP_ + 1                      # +cls token = 17
SEQ_PAD = ((SEQ + 7) // 8) * 8     # 24 (sublane aligned; pad keys masked)
HEAD_PAD = 128                     # lane-dense logits slab
HIDDEN = EMBED_DIM * MLP_RATIO


# ------------------------------ in-kernel math helpers ------------------------------
def _erf(x):
    # Abramowitz & Stegun 7.1.26 (|err| < 1.5e-7): exact-GELU without lax.erf
    a1, a2, a3, a4, a5 = 0.254829592, -0.284496736, 1.421413741, -1.453152027, 1.061405429
    p = 0.3275911
    s = jnp.where(x >= 0.0, 1.0, -1.0)
    ax = jnp.abs(x)
    t = 1.0 / (1.0 + p * ax)
    poly = ((((a5 * t + a4) * t + a3) * t + a2) * t + a1) * t
    return s * (1.0 - poly * jnp.exp(-ax * ax))


def _gelu(x):
    # nn.GELU() default = exact (erf-based) GELU
    return 0.5 * x * (1.0 + _erf(x * 0.7071067811865476))


def _layernorm(x, w, b, eps=EPS):
    mu = jnp.mean(x, axis=-1, keepdims=True)
    var = jnp.mean((x - mu) ** 2, axis=-1, keepdims=True)
    return (x - mu) * jax.lax.rsqrt(var + eps) * w + b


def _bf(x):
    return x.astype(jnp.bfloat16)


# ------------------------- kernel 1: patch-embed + ref-encoding gate -----------------
def embed_ref_kernel(p_ref, pw, pb, ref, w1, b1, w2, b2, o_ref):
    # emb = patches @ Wp + bp   (== Conv2d(k=stride=patch) on flattened patches)
    emb = (jnp.dot(_bf(p_ref[...]), pw[...], preferred_element_type=jnp.float32)
           + pb[...])
    # gate = Sigmoid(Linear(ReLU(Linear(emb - reference))));  out = emb + gate
    d = emb - ref[...]
    h = jnp.maximum(
        jnp.dot(_bf(d), w1[...], preferred_element_type=jnp.float32) + b1[...], 0.0)
    h = jnp.dot(_bf(h), w2[...], preferred_element_type=jnp.float32) + b2[...]
    gate = pl.reciprocal(1.0 + jnp.exp(-h), approx=True)       # sigmoid via EUP
    o_ref[...] = (emb + gate).astype(o_ref.dtype)


def _row_tile(r, pref=512):
    if r <= pref:
        return r
    for t in (512, 256, 128, 64, 32, 16, 8):
        if r % t == 0:
            return t
    return r


def embed_ref_tokens(patches, kp):
    r, pdim = patches.shape
    d = EMBED_DIM
    tr = _row_tile(r)
    bc = lambda shape: pl.BlockSpec(shape, lambda i: (0,) * len(shape))
    return pl.pallas_call(
        embed_ref_kernel,
        out_shape=jax.ShapeDtypeStruct((r, d), jnp.float32),
        grid=(r // tr,),
        in_specs=[
            pl.BlockSpec((tr, pdim), lambda i: (i, 0)),
            bc((pdim, d)), bc((1, d)),            # patch proj
            bc((1, d)),                           # reference
            bc((d, d)), bc((1, d)),               # ref fc1
            bc((d, d)), bc((1, d)),               # ref fc2
        ],
        out_specs=pl.BlockSpec((tr, d), lambda i: (i, 0)),
        compiler_params=pltpu.CompilerParams(
            dimension_semantics=("parallel",),
            vmem_limit_bytes=32 * 1024 * 1024),
    )(patches, kp['patch_w'], kp['patch_b'], kp['reference'],
      kp['ref_w1'], kp['ref_b1'], kp['ref_w2'], kp['ref_b2'])


# ------------- kernel 2: all transformer blocks + final LN + head (fused) ------------
def make_fused_kernel(tb):
    sp = SEQ_PAD
    d = EMBED_DIM
    m = tb * sp
    hd = d // NUM_HEADS
    scale = float(hd) ** -0.5

    def kernel(x_ref, ln1w, ln1b, wqkv, bqkv, wproj, bproj,
               ln2w, ln2b, wfc1, bfc1, wfc2, bfc2,
               lnw, lnb, wh, bh, logits_ref, act_ref):
        l = pl.program_id(1)

        # activation stays resident in VMEM scratch across the depth axis
        @pl.when(l == 0)
        def _():
            act_ref[...] = x_ref[...]

        x = act_ref[...]                                              # (m, d) f32

        # ---- x = x + Attention(norm1(x)) ----
        h = _layernorm(x, ln1w[...], ln1b[...])
        qkv = (jnp.dot(_bf(h), wqkv[...], preferred_element_type=jnp.float32)
               + bqkv[...])                                           # (m, 3d)
        qkv3 = qkv.reshape(tb, sp, 3 * d)                             # sp % 8 == 0 -> clean
        kidx = jax.lax.broadcasted_iota(jnp.int32, (1, 1, sp), 2)
        kmask = kidx < SEQ                                            # mask padded keys
        heads = []
        for i in range(NUM_HEADS):                                    # 4 static iters, TB-batched
            qh = qkv3[:, :, i * hd:(i + 1) * hd]
            kh = qkv3[:, :, d + i * hd:d + (i + 1) * hd]
            vh = qkv3[:, :, 2 * d + i * hd:2 * d + (i + 1) * hd]
            s = jnp.einsum('bqc,bkc->bqk', _bf(qh), _bf(kh),
                           preferred_element_type=jnp.float32) * scale
            s = jnp.where(kmask, s, -1e30)
            s = s - jnp.max(s, axis=-1, keepdims=True)
            p = jnp.exp(s)
            p = p * pl.reciprocal(jnp.sum(p, axis=-1, keepdims=True), approx=True)
            heads.append(jnp.einsum('bqk,bkc->bqc', _bf(p), _bf(vh),
                                    preferred_element_type=jnp.float32))
        attn = jnp.concatenate(heads, axis=-1).reshape(m, d)
        attn = (jnp.dot(_bf(attn), wproj[...], preferred_element_type=jnp.float32)
                + bproj[...])
        x = x + attn

        # ---- x = x + Mlp(norm2(x)) ----
        h2 = _layernorm(x, ln2w[...], ln2b[...])
        h2 = (jnp.dot(_bf(h2), wfc1[...], preferred_element_type=jnp.float32)
              + bfc1[...])
        h2 = _gelu(h2)
        h2 = (jnp.dot(_bf(h2), wfc2[...], preferred_element_type=jnp.float32)
              + bfc2[...])
        x = x + h2
        act_ref[...] = x

        # ---- final LayerNorm + head on the cls row only (exact: LN is per-token) ----
        @pl.when(l == DEPTH - 1)
        def _():
            cls = x.reshape(tb, sp, d)[:, 0, :]                       # (tb, d)
            hc = _layernorm(cls, lnw[...], lnb[...])
            logits_ref[...] = (jnp.dot(_bf(hc), wh[...],
                                       preferred_element_type=jnp.float32)
                               + bh[...]).astype(logits_ref.dtype)

    return kernel


def _batch_tile(b):
    for t in (16, 8):
        if b >= t and b % t == 0:
            return t
    return b    # whole batch per step (block == full dim -> always legal)


def fused_blocks_head(seq2d, kp, batch):
    tb = _batch_tile(batch)
    m = tb * SEQ_PAD
    d = EMBED_DIM

    def stacked(shape):   # per-depth stacked weights, indexed by the depth grid axis
        n = len(shape)
        return pl.BlockSpec((None,) + shape, lambda b, l, n=n: (l,) + (0,) * n)

    def bcast(shape):
        n = len(shape)
        return pl.BlockSpec(shape, lambda b, l, n=n: (0,) * n)

    in_specs = [
        pl.BlockSpec((m, d), lambda b, l: (b, 0)),                  # tokens (only read at l==0)
        stacked((1, d)), stacked((1, d)),                           # ln1
        stacked((d, 3 * d)), stacked((1, 3 * d)),                   # qkv
        stacked((d, d)), stacked((1, d)),                           # proj
        stacked((1, d)), stacked((1, d)),                           # ln2
        stacked((d, HIDDEN)), stacked((1, HIDDEN)),                 # fc1
        stacked((HIDDEN, d)), stacked((1, d)),                      # fc2
        bcast((1, d)), bcast((1, d)),                               # final ln
        bcast((d, HEAD_PAD)), bcast((1, HEAD_PAD)),                 # head (lane-padded)
    ]
    return pl.pallas_call(
        make_fused_kernel(tb),
        out_shape=jax.ShapeDtypeStruct((batch, HEAD_PAD), jnp.float32),
        grid=(batch // tb, DEPTH),
        in_specs=in_specs,
        out_specs=pl.BlockSpec((tb, HEAD_PAD), lambda b, l: (b, 0)),
        scratch_shapes=[pltpu.VMEM((m, d), jnp.float32)],
        compiler_params=pltpu.CompilerParams(
            dimension_semantics=("parallel", "arbitrary"),
            vmem_limit_bytes=32 * 1024 * 1024),
    )(seq2d, kp['ln1_w'], kp['ln1_b'], kp['wqkv'], kp['bqkv'],
      kp['wproj'], kp['bproj'], kp['ln2_w'], kp['ln2_b'],
      kp['wfc1'], kp['bfc1'], kp['wfc2'], kp['bfc2'],
      kp['ln_w'], kp['ln_b'], kp['head_w'], kp['head_b'])


# ---------------------------------- parameters --------------------------------------
def _dense(key, d_in, d_out, std=0.02):
    w = jax.random.normal(key, (d_in, d_out), jnp.float32) * std
    b = jnp.zeros((1, d_out), jnp.float32)
    return w, b


def init_params(key):
    keys = jax.random.split(key, 8 + DEPTH)
    p = {}
    # PatchEmbed Conv2d(in, D, k=patch, stride=patch) == per-patch matmul, (C, ph, pw) flatten.
    p['patch_w'], p['patch_b'] = _dense(keys[0], IN_CHANS * PATCH * PATCH, EMBED_DIM)
    p['cls_token'] = jax.random.normal(keys[1], (1, EMBED_DIM), jnp.float32) * 0.02
    p['reference'] = jax.random.normal(keys[2], (1, EMBED_DIM), jnp.float32) * 0.02
    p['ref_w1'], p['ref_b1'] = _dense(keys[3], EMBED_DIM, EMBED_DIM)
    p['ref_w2'], p['ref_b2'] = _dense(keys[4], EMBED_DIM, EMBED_DIM)
    p['ln_w'] = jnp.ones((1, EMBED_DIM), jnp.float32)
    p['ln_b'] = jnp.zeros((1, EMBED_DIM), jnp.float32)
    p['head_w'], p['head_b'] = _dense(keys[5], EMBED_DIM, NUM_CLASSES)
    blocks = []
    for i in range(DEPTH):
        bk = jax.random.split(keys[8 + i], 4)
        blk = {
            'ln1_w': jnp.ones((1, EMBED_DIM), jnp.float32),
            'ln1_b': jnp.zeros((1, EMBED_DIM), jnp.float32),
            'ln2_w': jnp.ones((1, EMBED_DIM), jnp.float32),
            'ln2_b': jnp.zeros((1, EMBED_DIM), jnp.float32),
        }
        blk['wqkv'], blk['bqkv'] = _dense(bk[0], EMBED_DIM, 3 * EMBED_DIM)  # bias zero == qkv_bias=False
        blk['wproj'], blk['bproj'] = _dense(bk[1], EMBED_DIM, EMBED_DIM)
        blk['wfc1'], blk['bfc1'] = _dense(bk[2], EMBED_DIM, HIDDEN)
        blk['wfc2'], blk['bfc2'] = _dense(bk[3], HIDDEN, EMBED_DIM)
        blocks.append(blk)
    p['blocks'] = blocks
    return p


def prepare_params(p):
    """Kernel-ready params: matmul weights in bf16, per-block weights stacked over DEPTH,
    head padded to a lane-dense 128-wide slab. Built once, outside jit."""
    bf = jnp.bfloat16
    kp = {
        'patch_w': p['patch_w'].astype(bf), 'patch_b': p['patch_b'],
        'reference': p['reference'],
        'ref_w1': p['ref_w1'].astype(bf), 'ref_b1': p['ref_b1'],
        'ref_w2': p['ref_w2'].astype(bf), 'ref_b2': p['ref_b2'],
        'cls_token': p['cls_token'],
        'ln_w': p['ln_w'], 'ln_b': p['ln_b'],
    }
    blocks = p['blocks']

    def stack(name, dtype=jnp.float32):
        return jnp.stack([b[name] for b in blocks]).astype(dtype)

    kp['ln1_w'] = stack('ln1_w'); kp['ln1_b'] = stack('ln1_b')
    kp['ln2_w'] = stack('ln2_w'); kp['ln2_b'] = stack('ln2_b')
    kp['wqkv'] = stack('wqkv', bf);   kp['bqkv'] = stack('bqkv')
    kp['wproj'] = stack('wproj', bf); kp['bproj'] = stack('bproj')
    kp['wfc1'] = stack('wfc1', bf);   kp['bfc1'] = stack('bfc1')
    kp['wfc2'] = stack('wfc2', bf);   kp['bfc2'] = stack('bfc2')
    hw = jnp.zeros((EMBED_DIM, HEAD_PAD), jnp.float32).at[:, :NUM_CLASSES].set(p['head_w'])
    hb = jnp.zeros((1, HEAD_PAD), jnp.float32).at[:, :NUM_CLASSES].set(p['head_b'])
    kp['head_w'] = hw.astype(bf)
    kp['head_b'] = hb
    return kp


# ------------------------------------ forward ---------------------------------------
def extract_patches(x, p):
    # (B, C, H, W) -> (B, nh*nw, C*p*p), matching Conv2d(k=stride=p) flattening order.
    B, C, H, W = x.shape
    nh, nw = H // p, W // p
    xp = x.reshape(B, C, nh, p, nw, p)
    xp = xp.transpose(0, 2, 4, 1, 3, 5)          # (B, nh, nw, C, p, p)
    return xp.reshape(B, nh * nw, C * p * p)


@jax.jit
def forward(kp, x, perm):
    B = x.shape[0]
    # Patch-embed + ref-encoding gate fused (the ref MLP is per-token, so computing it
    # before the shuffle is mathematically identical to the module's shuffle-then-ref order).
    patches = extract_patches(x, PATCH).reshape(B * NP_, -1)            # (B*16, C*p*p)
    tok = embed_ref_tokens(patches, kp)                                 # (B*16, D)
    tok = tok.reshape(B, NP_, EMBED_DIM)
    # per-sample random patch shuffle (torch.randperm equivalent) -- plain gather glue
    tok = jnp.take_along_axis(tok, perm[:, :, None], axis=1)
    # prepend cls token; dropouts / drop_path are identities (rates = 0)
    cls = jnp.broadcast_to(kp['cls_token'][None], (B, 1, EMBED_DIM))
    seq = jnp.concatenate([cls, tok], axis=1)                           # (B, 17, D)
    seq = jnp.pad(seq, ((0, 0), (0, SEQ_PAD - SEQ), (0, 0)))            # (B, 24, D)
    seq2d = seq.reshape(B * SEQ_PAD, EMBED_DIM)
    logits_pad = fused_blocks_head(seq2d, kp, B)                        # (B, 128) lane-dense
    return logits_pad[:, :NUM_CLASSES]


if __name__ == "__main__":
    B = 2
    key = jax.random.PRNGKey(0)
    kx, kparams, kperm = jax.random.split(key, 3)
    x = jax.random.normal(kx, (B, IN_CHANS, IMG, IMG), jnp.float32)
    params = init_params(kparams)
    kp = prepare_params(params)
    # deterministic stand-in for torch.randperm per sample inside PatchEmbed
    # TODO(synk): torch.randperm is host RNG at forward time; here the permutation is an input.
    pkeys = jax.random.split(kperm, B)
    perm = jnp.stack([jax.random.permutation(k, NP_) for k in pkeys]).astype(jnp.int32)

    logits = forward(kp, x, perm)
    jax.block_until_ready(logits)
    assert logits.shape == (B, NUM_CLASSES) and logits.dtype == jnp.float32
    print("KERNEL_OK")
</pallas_src>

<mosaic_0001>
module attributes {stable_mosaic.version = 11 : i64} {
  func.func @embed_ref_kernel(%arg0: i32, %arg1: memref<32x192xf32, #tpu.memory_space<vmem>>, %arg2: memref<192x128xbf16, #tpu.memory_space<vmem>>, %arg3: memref<1x128xf32, #tpu.memory_space<vmem>>, %arg4: memref<1x128xf32, #tpu.memory_space<vmem>>, %arg5: memref<128x128xbf16, #tpu.memory_space<vmem>>, %arg6: memref<1x128xf32, #tpu.memory_space<vmem>>, %arg7: memref<128x128xbf16, #tpu.memory_space<vmem>>, %arg8: memref<1x128xf32, #tpu.memory_space<vmem>>, %arg9: memref<32x128xf32, #tpu.memory_space<vmem>>) attributes {dimension_semantics = [#tpu.dimension_semantics<parallel>], iteration_bounds = array<i64: 1>, scalar_prefetch = 0 : i64, scratch_operands = 0 : i64, tpu.core_type = #tpu.core_type<tc>, window_params = [{transform_indices = @transform_0, window_bounds = array<i64: 32, 192>}, {pipeline_mode = #tpu.pipeline_mode<synchronous>, transform_indices = @transform_1, window_bounds = array<i64: 192, 128>}, {pipeline_mode = #tpu.pipeline_mode<synchronous>, transform_indices = @transform_2, window_bounds = array<i64: 1, 128>}, {pipeline_mode = #tpu.pipeline_mode<synchronous>, transform_indices = @transform_3, window_bounds = array<i64: 1, 128>}, {pipeline_mode = #tpu.pipeline_mode<synchronous>, transform_indices = @transform_4, window_bounds = array<i64: 128, 128>}, {pipeline_mode = #tpu.pipeline_mode<synchronous>, transform_indices = @transform_5, window_bounds = array<i64: 1, 128>}, {pipeline_mode = #tpu.pipeline_mode<synchronous>, transform_indices = @transform_6, window_bounds = array<i64: 128, 128>}, {pipeline_mode = #tpu.pipeline_mode<synchronous>, transform_indices = @transform_7, window_bounds = array<i64: 1, 128>}, {transform_indices = @transform_8, window_bounds = array<i64: 32, 128>}]} {
    %c0 = arith.constant 0 : index
    %c0_0 = arith.constant 0 : index
    %0 = vector.load %arg1[%c0, %c0_0] : memref<32x192xf32, #tpu.memory_space<vmem>>, vector<32x192xf32>
    %1 = arith.truncf %0 : vector<32x192xf32> to vector<32x192xbf16>
    %c0_1 = arith.constant 0 : index
    %c0_2 = arith.constant 0 : index
    %2 = vector.load %arg2[%c0_1, %c0_2] : memref<192x128xbf16, #tpu.memory_space<vmem>>, vector<192x128xbf16>
    %cst = arith.constant dense<0.000000e+00> : vector<32x128xf32>
    %3 = tpu.matmul %1, %2, %cst {dimension_numbers = #tpu.dot_dimension_numbers<[1], [0], [0], [1], [0, 0, 1, 1], [], []>} : vector<32x192xbf16>, vector<192x128xbf16>, vector<32x128xf32> -> vector<32x128xf32>
    %c0_3 = arith.constant 0 : index
    %c0_4 = arith.constant 0 : index
    %4 = vector.load %arg3[%c0_3, %c0_4] : memref<1x128xf32, #tpu.memory_space<vmem>>, vector<1x128xf32>
    %5 = vector.broadcast %4 : vector<1x128xf32> to vector<32x128xf32>
    %6 = arith.addf %3, %5 : vector<32x128xf32>
    %c0_5 = arith.constant 0 : index
    %c0_6 = arith.constant 0 : index
    %7 = vector.load %arg4[%c0_5, %c0_6] : memref<1x128xf32, #tpu.memory_space<vmem>>, vector<1x128xf32>
    %8 = vector.broadcast %7 : vector<1x128xf32> to vector<32x128xf32>
    %9 = arith.subf %6, %8 : vector<32x128xf32>
    %10 = arith.truncf %9 : vector<32x128xf32> to vector<32x128xbf16>
    %c0_7 = arith.constant 0 : index
    %c0_8 = arith.constant 0 : index
    %11 = vector.load %arg5[%c0_7, %c0_8] : memref<128x128xbf16, #tpu.memory_space<vmem>>, vector<128x128xbf16>
    %cst_9 = arith.constant dense<0.000000e+00> : vector<32x128xf32>
    %12 = tpu.matmul %10, %11, %cst_9 {dimension_numbers = #tpu.dot_dimension_numbers<[1], [0], [0], [1], [0, 0, 1, 1], [], []>} : vector<32x128xbf16>, vector<128x128xbf16>, vector<32x128xf32> -> vector<32x128xf32>
    %c0_10 = arith.constant 0 : index
    %c0_11 = arith.constant 0 : index
    %13 = vector.load %arg6[%c0_10, %c0_11] : memref<1x128xf32, #tpu.memory_space<vmem>>, vector<1x128xf32>
    %14 = vector.broadcast %13 : vector<1x128xf32> to vector<32x128xf32>
    %15 = arith.addf %12, %14 : vector<32x128xf32>
    %cst_12 = arith.constant 0.000000e+00 : f32
    %16 = vector.broadcast %cst_12 : f32 to vector<32x128xf32>
    %17 = arith.maximumf %15, %16 : vector<32x128xf32>
    %18 = arith.truncf %17 : vector<32x128xf32> to vector<32x128xbf16>
    %c0_13 = arith.constant 0 : index
    %c0_14 = arith.constant 0 : index
    %19 = vector.load %arg7[%c0_13, %c0_14] : memref<128x128xbf16, #tpu.memory_space<vmem>>, vector<128x128xbf16>
    %cst_15 = arith.constant dense<0.000000e+00> : vector<32x128xf32>
    %20 = tpu.matmul %18, %19, %cst_15 {dimension_numbers = #tpu.dot_dimension_numbers<[1], [0], [0], [1], [0, 0, 1, 1], [], []>} : vector<32x128xbf16>, vector<128x128xbf16>, vector<32x128xf32> -> vector<32x128xf32>
    %c0_16 = arith.constant 0 : index
    %c0_17 = arith.constant 0 : index
    %21 = vector.load %arg8[%c0_16, %c0_17] : memref<1x128xf32, #tpu.memory_space<vmem>>, vector<1x128xf32>
    %22 = vector.broadcast %21 : vector<1x128xf32> to vector<32x128xf32>
    %23 = arith.addf %20, %22 : vector<32x128xf32>
    %cst_18 = arith.constant 0.000000e+00 : f32
    %24 = vector.broadcast %cst_18 : f32 to vector<32x128xf32>
    %25 = arith.subf %24, %23 : vector<32x128xf32>
    %26 = math.exp %25 : vector<32x128xf32>
    %cst_19 = arith.constant 1.000000e+00 : f32
    %27 = vector.broadcast %cst_19 : f32 to vector<32x128xf32>
    %28 = arith.addf %27, %26 : vector<32x128xf32>
    %29 = tpu.reciprocal %28 {approx = true} : vector<32x128xf32> -> vector<32x128xf32>
    %30 = arith.addf %6, %29 : vector<32x128xf32>
    %c0_20 = arith.constant 0 : index
    %c0_21 = arith.constant 0 : index
    %31 = vector.load %arg9[%c0_20, %c0_21] : memref<32x128xf32, #tpu.memory_space<vmem>>, vector<32x128xf32>
    tpu.vector_store %arg9[%c0_20, %c0_21], %30 {strides = array<i32>} : memref<32x128xf32, #tpu.memory_space<vmem>>, vector<32x128xf32>,
    return
  }
  func.func @transform_0(%arg0: i32) -> (i32, i32) {
    %c0_i32 = arith.constant 0 : i32
    %c0_i32_0 = arith.constant 0 : i32
    return %arg0, %c0_i32 : i32, i32
  }
  func.func @transform_1(%arg0: i32) -> (i32, i32) {
    %c0_i32 = arith.constant 0 : i32
    %c0_i32_0 = arith.constant 0 : i32
    %c0_i32_1 = arith.constant 0 : i32
    return %c0_i32, %c0_i32_0 : i32, i32
  }
  func.func @transform_2(%arg0: i32) -> (i32, i32) {
    %c0_i32 = arith.constant 0 : i32
    %c0_i32_0 = arith.constant 0 : i32
    %c0_i32_1 = arith.constant 0 : i32
    return %c0_i32, %c0_i32_0 : i32, i32
  }
  func.func @transform_3(%arg0: i32) -> (i32, i32) {
    %c0_i32 = arith.constant 0 : i32
    %c0_i32_0 = arith.constant 0 : i32
    %c0_i32_1 = arith.constant 0 : i32
    return %c0_i32, %c0_i32_0 : i32, i32
  }
  func.func @transform_4(%arg0: i32) -> (i32, i32) {
    %c0_i32 = arith.constant 0 : i32
    %c0_i32_0 = arith.constant 0 : i32
    %c0_i32_1 = arith.constant 0 : i32
    return %c0_i32, %c0_i32_0 : i32, i32
  }
  func.func @transform_5(%arg0: i32) -> (i32, i32) {
    %c0_i32 = arith.constant 0 : i32
    %c0_i32_0 = arith.constant 0 : i32
    %c0_i32_1 = arith.constant 0 : i32
    return %c0_i32, %c0_i32_0 : i32, i32
  }
  func.func @transform_6(%arg0: i32) -> (i32, i32) {
    %c0_i32 = arith.constant 0 : i32
    %c0_i32_0 = arith.constant 0 : i32
    %c0_i32_1 = arith.constant 0 : i32
    return %c0_i32, %c0_i32_0 : i32, i32
  }
  func.func @transform_7(%arg0: i32) -> (i32, i32) {
    %c0_i32 = arith.constant 0 : i32
    %c0_i32_0 = arith.constant 0 : i32
    %c0_i32_1 = arith.constant 0 : i32
    return %c0_i32, %c0_i32_0 : i32, i32
  }
  func.func @transform_8(%arg0: i32) -> (i32, i32) {
    %c0_i32 = arith.constant 0 : i32
    %c0_i32_0 = arith.constant 0 : i32
    return %arg0, %c0_i32 : i32, i32
  }
}

module attributes {stable_mosaic.version = 11 : i64} {
  func.func @kernel(%arg0: i32, %arg1: i32, %arg2: memref<48x128xf32, #tpu.memory_space<vmem>>, %arg3: memref<1x1x128xf32, #tpu.memory_space<vmem>>, %arg4: memref<1x1x128xf32, #tpu.memory_space<vmem>>, %arg5: memref<1x128x384xbf16, #tpu.memory_space<vmem>>, %arg6: memref<1x1x384xf32, #tpu.memory_space<vmem>>, %arg7: memref<1x128x128xbf16, #tpu.memory_space<vmem>>, %arg8: memref<1x1x128xf32, #tpu.memory_space<vmem>>, %arg9: memref<1x1x128xf32, #tpu.memory_space<vmem>>, %arg10: memref<1x1x128xf32, #tpu.memory_space<vmem>>, %arg11: memref<1x128x512xbf16, #tpu.memory_space<vmem>>, %arg12: memref<1x1x512xf32, #tpu.memory_space<vmem>>, %arg13: memref<1x512x128xbf16, #tpu.memory_space<vmem>>, %arg14: memref<1x1x128xf32, #tpu.memory_space<vmem>>, %arg15: memref<1x128xf32, #tpu.memory_space<vmem>>, %arg16: memref<1x128xf32, #tpu.memory_space<vmem>>, %arg17: memref<128x128xbf16, #tpu.memory_space<vmem>>, %arg18: memref<1x128xf32, #tpu.memory_space<vmem>>, %arg19: memref<2x128xf32, #tpu.memory_space<vmem>>, %arg20: memref<48x128xf32, #tpu.memory_space<vmem>>) attributes {dimension_semantics = [#tpu.dimension_semantics<parallel>, #tpu.dimension_semantics<arbitrary>], iteration_bounds = array<i64: 1, 2>, scalar_prefetch = 0 : i64, scratch_operands = 1 : i64, tpu.core_type = #tpu.core_type<tc>, window_params = [{transform_indices = @transform_0, window_bounds = array<i64: 48, 128>}, {transform_indices = @transform_1, window_bounds = array<i64: 1, 1, 128>}, {transform_indices = @transform_2, window_bounds = array<i64: 1, 1, 128>}, {transform_indices = @transform_3, window_bounds = array<i64: 1, 128, 384>}, {transform_indices = @transform_4, window_bounds = array<i64: 1, 1, 384>}, {transform_indices = @transform_5, window_bounds = array<i64: 1, 128, 128>}, {transform_indices = @transform_6, window_bounds = array<i64: 1, 1, 128>}, {transform_indices = @transform_7, window_bounds = array<i64: 1, 1, 128>}, {transform_indices = @transform_8, window_bounds = array<i64: 1, 1, 128>}, {transform_indices = @transform_9, window_bounds = array<i64: 1, 128, 512>}, {transform_indices = @transform_10, window_bounds = array<i64: 1, 1, 512>}, {transform_indices = @transform_11, window_bounds = array<i64: 1, 512, 128>}, {transform_indices = @transform_12, window_bounds = array<i64: 1, 1, 128>}, {pipeline_mode = #tpu.pipeline_mode<synchronous>, transform_indices = @transform_13, window_bounds = array<i64: 1, 128>}, {pipeline_mode = #tpu.pipeline_mode<synchronous>, transform_indices = @transform_14, window_bounds = array<i64: 1, 128>}, {pipeline_mode = #tpu.pipeline_mode<synchronous>, transform_indices = @transform_15, window_bounds = array<i64: 128, 128>}, {pipeline_mode = #tpu.pipeline_mode<synchronous>, transform_indices = @transform_16, window_bounds = array<i64: 1, 128>}, {transform_indices = @transform_17, window_bounds = array<i64: 2, 128>}]} {
    %c0_i32 = arith.constant 0 : i32
    %0 = arith.cmpi eq, %arg1, %c0_i32 : i32
    %1 = arith.extui %0 : i1 to i32
    %c0_i32_0 = arith.constant 0 : i32
    %2 = arith.cmpi ne, %1, %c0_i32_0 : i32
    scf.if %2 {
      %c0_94 = arith.constant 0 : index
      %c0_95 = arith.constant 0 : index
      %241 = vector.load %arg2[%c0_94, %c0_95] : memref<48x128xf32, #tpu.memory_space<vmem>>, vector<48x128xf32>
      %c0_96 = arith.constant 0 : index
      %c0_97 = arith.constant 0 : index
      %242 = vector.load %arg20[%c0_96, %c0_97] : memref<48x128xf32, #tpu.memory_space<vmem>>, vector<48x128xf32>
      tpu.vector_store %arg20[%c0_96, %c0_97], %241 {strides = array<i32>} : memref<48x128xf32, #tpu.memory_space<vmem>>, vector<48x128xf32>,
    } else {
    }
    %c0 = arith.constant 0 : index
    %c0_1 = arith.constant 0 : index
    %3 = vector.load %arg20[%c0, %c0_1] : memref<48x128xf32, #tpu.memory_space<vmem>>, vector<48x128xf32>
    %c0_2 = arith.constant 0 : index
    %c0_3 = arith.constant 0 : index
    %c0_4 = arith.constant 0 : index
    %4 = vector.load %arg3[%c0_2, %c0_3, %c0_4] : memref<1x1x128xf32, #tpu.memory_space<vmem>>, vector<1x1x128xf32>
    %5 = vector.shape_cast %4 : vector<1x1x128xf32> to vector<1x128xf32>
    %c0_5 = arith.constant 0 : index
    %c0_6 = arith.constant 0 : index
    %c0_7 = arith.constant 0 : index
    %6 = vector.load %arg4[%c0_5, %c0_6, %c0_7] : memref<1x1x128xf32, #tpu.memory_space<vmem>>, vector<1x1x128xf32>
    %7 = vector.shape_cast %6 : vector<1x1x128xf32> to vector<1x128xf32>
    %cst = arith.constant dense<0.000000e+00> : vector<48xf32>
    %8 = vector.multi_reduction <add>, %3, %cst [1] : vector<48x128xf32> to vector<48xf32>
    %9 = vector.shape_cast %8 : vector<48xf32> to vector<48x1xf32>
    %cst_8 = arith.constant 1.280000e+02 : f32
    %10 = vector.broadcast %cst_8 : f32 to vector<48x1xf32>
    %11 = arith.divf %9, %10 : vector<48x1xf32>
    %12 = vector.broadcast %11 : vector<48x1xf32> to vector<48x128xf32>
    %13 = arith.subf %3, %12 : vector<48x128xf32>
    %14 = arith.mulf %13, %13 : vector<48x128xf32>
    %cst_9 = arith.constant dense<0.000000e+00> : vector<48xf32>
    %15 = vector.multi_reduction <add>, %14, %cst_9 [1] : vector<48x128xf32> to vector<48xf32>
    %16 = vector.shape_cast %15 : vector<48xf32> to vector<48x1xf32>
    %cst_10 = arith.constant 1.280000e+02 : f32
    %17 = vector.broadcast %cst_10 : f32 to vector<48x1xf32>
    %18 = arith.divf %16, %17 : vector<48x1xf32>
    %19 = vector.broadcast %11 : vector<48x1xf32> to vector<48x128xf32>
    %20 = arith.subf %3, %19 : vector<48x128xf32>
    %cst_11 = arith.constant 9.99999997E-7 : f32
    %21 = vector.broadcast %cst_11 : f32 to vector<48x1xf32>
    %22 = arith.addf %18, %21 : vector<48x1xf32>
    %23 = math.rsqrt %22 : vector<48x1xf32>
    %24 = vector.broadcast %23 : vector<48x1xf32> to vector<48x128xf32>
    %25 = arith.mulf %20, %24 : vector<48x128xf32>
    %26 = vector.broadcast %5 : vector<1x128xf32> to vector<48x128xf32>
    %27 = arith.mulf %25, %26 : vector<48x128xf32>
    %28 = vector.broadcast %7 : vector<1x128xf32> to vector<48x128xf32>
    %29 = arith.addf %27, %28 : vector<48x128xf32>
    %30 = arith.truncf %29 : vector<48x128xf32> to vector<48x128xbf16>
    %c0_12 = arith.constant 0 : index
    %c0_13 = arith.constant 0 : index
    %c0_14 = arith.constant 0 : index
    %31 = vector.load %arg5[%c0_12, %c0_13, %c0_14] : memref<1x128x384xbf16, #tpu.memory_space<vmem>>, vector<1x128x384xbf16>
    %32 = vector.shape_cast %31 : vector<1x128x384xbf16> to vector<128x384xbf16>
    %cst_15 = arith.constant dense<0.000000e+00> : vector<48x384xf32>
    %33 = tpu.matmul %30, %32, %cst_15 {dimension_numbers = #tpu.dot_dimension_numbers<[1], [0], [0], [1], [0, 0, 1, 1], [], []>} : vector<48x128xbf16>, vector<128x384xbf16>, vector<48x384xf32> -> vector<48x384xf32>
    %c0_16 = arith.constant 0 : index
    %c0_17 = arith.constant 0 : index
    %c0_18 = arith.constant 0 : index
    %34 = vector.load %arg6[%c0_16, %c0_17, %c0_18] : memref<1x1x384xf32, #tpu.memory_space<vmem>>, vector<1x1x384xf32>
    %35 = vector.shape_cast %34 : vector<1x1x384xf32> to vector<1x384xf32>
    %36 = vector.broadcast %35 : vector<1x384xf32> to vector<48x384xf32>
    %37 = arith.addf %33, %36 : vector<48x384xf32>
    %38 = vector.shape_cast %37 : vector<48x384xf32> to vector<2x24x384xf32>
    %39 = tpu.iota {dimensions = array<i32: 2>} : vector<1x1x24xi32>
    %c17_i32 = arith.constant 17 : i32
    %40 = vector.broadcast %c17_i32 : i32 to vector<1x1x24xi32>
    %41 = arith.cmpi slt, %39, %40 : vector<1x1x24xi32>
    %42 = vector.extract_strided_slice %38 {offsets = [0, 0, 0], sizes = [2, 24, 32], strides = [1, 1, 1]} : vector<2x24x384xf32> to vector<2x24x32xf32>
    %43 = vector.extract_strided_slice %38 {offsets = [0, 0, 128], sizes = [2, 24, 32], strides = [1, 1, 1]} : vector<2x24x384xf32> to vector<2x24x32xf32>
    %44 = vector.extract_strided_slice %38 {offsets = [0, 0, 256], sizes = [2, 24, 32], strides = [1, 1, 1]} : vector<2x24x384xf32> to vector<2x24x32xf32>
    %45 = arith.truncf %42 : vector<2x24x32xf32> to vector<2x24x32xbf16>
    %46 = arith.truncf %43 : vector<2x24x32xf32> to vector<2x24x32xbf16>
    "tpu.trace_start"() <{level = 10 : i32, message = "bqc,bkc->bqk"}> : () -> ()
    %cst_19 = arith.constant dense<0.000000e+00> : vector<2x24x24xf32>
    %47 = tpu.matmul %45, %46, %cst_19 {dimension_numbers = #tpu.dot_dimension_numbers<[2], [2], [1], [1], [0, 0, 0, 1, 1, 1], [0], [0]>} : vector<2x24x32xbf16>, vector<2x24x32xbf16>, vector<2x24x24xf32> -> vector<2x24x24xf32>
    "tpu.trace_stop"() : () -> ()
    %cst_20 = arith.constant 0.176776692 : f32
    %48 = vector.broadcast %cst_20 : f32 to vector<2x24x24xf32>
    %49 = arith.mulf %47, %48 : vector<2x24x24xf32>
    %cst_21 = arith.constant -1.000000e+30 : f32
    %50 = vector.shape_cast %41 : vector<1x1x24xi1> to vector<1x1x24xi1>
    %51 = vector.broadcast %50 : vector<1x1x24xi1> to vector<2x24x24xi1>
    %52 = vector.broadcast %cst_21 : f32 to vector<2x24x24xf32>
    %53 = arith.select %51, %49, %52 : vector<2x24x24xi1>, vector<2x24x24xf32>
    %cst_22 = arith.constant dense<0xFF800000> : vector<2x24xf32>
    %54 = vector.multi_reduction <maximumf>, %53, %cst_22 [2] : vector<2x24x24xf32> to vector<2x24xf32>
    %55 = vector.shape_cast %54 : vector<2x24xf32> to vector<2x24x1xf32>
    %56 = vector.broadcast %55 : vector<2x24x1xf32> to vector<2x24x24xf32>
    %57 = arith.subf %53, %56 : vector<2x24x24xf32>
    %58 = math.exp %57 : vector<2x24x24xf32>
    %cst_23 = arith.constant dense<0.000000e+00> : vector<2x24xf32>
    %59 = vector.multi_reduction <add>, %58, %cst_23 [2] : vector<2x24x24xf32> to vector<2x24xf32>
    %60 = vector.shape_cast %59 : vector<2x24xf32> to vector<2x24x1xf32>
    %61 = tpu.reciprocal %60 {approx = true} : vector<2x24x1xf32> -> vector<2x24x1xf32>
    %62 = vector.broadcast %61 : vector<2x24x1xf32> to vector<2x24x24xf32>
    %63 = arith.mulf %58, %62 : vector<2x24x24xf32>
    %64 = arith.truncf %63 : vector<2x24x24xf32> to vector<2x24x24xbf16>
    %65 = arith.truncf %44 : vector<2x24x32xf32> to vector<2x24x32xbf16>
    "tpu.trace_start"() <{level = 10 : i32, message = "bqk,bkc->bqc"}> : () -> ()
    %cst_24 = arith.constant dense<0.000000e+00> : vector<2x24x32xf32>
    %66 = tpu.matmul %64, %65, %cst_24 {dimension_numbers = #tpu.dot_dimension_numbers<[2], [1], [1], [2], [0, 0, 0, 1, 1, 2], [0], [0]>} : vector<2x24x24xbf16>, vector<2x24x32xbf16>, vector<2x24x32xf32> -> vector<2x24x32xf32>
    "tpu.trace_stop"() : () -> ()
    %67 = vector.extract_strided_slice %38 {offsets = [0, 0, 32], sizes = [2, 24, 32], strides = [1, 1, 1]} : vector<2x24x384xf32> to vector<2x24x32xf32>
    %68 = vector.extract_strided_slice %38 {offsets = [0, 0, 160], sizes = [2, 24, 32], strides = [1, 1, 1]} : vector<2x24x384xf32> to vector<2x24x32xf32>
    %69 = vector.extract_strided_slice %38 {offsets = [0, 0, 288], sizes = [2, 24, 32], strides = [1, 1, 1]} : vector<2x24x384xf32> to vector<2x24x32xf32>
    %70 = arith.truncf %67 : vector<2x24x32xf32> to vector<2x24x32xbf16>
    %71 = arith.truncf %68 : vector<2x24x32xf32> to vector<2x24x32xbf16>
    "tpu.trace_start"() <{level = 10 : i32, message = "bqc,bkc->bqk"}> : () -> ()
    %cst_25 = arith.constant dense<0.000000e+00> : vector<2x24x24xf32>
    %72 = tpu.matmul %70, %71, %cst_25 {dimension_numbers = #tpu.dot_dimension_numbers<[2], [2], [1], [1], [0, 0, 0, 1, 1, 1], [0], [0]>} : vector<2x24x32xbf16>, vector<2x24x32xbf16>, vector<2x24x24xf32> -> vector<2x24x24xf32>
    "tpu.trace_stop"() : () -> ()
    %cst_26 = arith.constant 0.176776692 : f32
    %73 = vector.broadcast %cst_26 : f32 to vector<2x24x24xf32>
    %74 = arith.mulf %72, %73 : vector<2x24x24xf32>
    %cst_27 = arith.constant -1.000000e+30 : f32
    %75 = vector.shape_cast %41 : vector<1x1x24xi1> to vector<1x1x24xi1>
    %76 = vector.broadcast %75 : vector<1x1x24xi1> to vector<2x24x24xi1>
    %77 = vector.broadcast %cst_27 : f32 to vector<2x24x24xf32>
    %78 = arith.select %76, %74, %77 : vector<2x24x24xi1>, vector<2x24x24xf32>
    %cst_28 = arith.constant dense<0xFF800000> : vector<2x24xf32>
    %79 = vector.multi_reduction <maximumf>, %78, %cst_28 [2] : vector<2x24x24xf32> to vector<2x24xf32>
    %80 = vector.shape_cast %79 : vector<2x24xf32> to vector<2x24x1xf32>
    %81 = vector.broadcast %80 : vector<2x24x1xf32> to vector<2x24x24xf32>
    %82 = arith.subf %78, %81 : vector<2x24x24xf32>
    %83 = math.exp %82 : vector<2x24x24xf32>
    %cst_29 = arith.constant dense<0.000000e+00> : vector<2x24xf32>
    %84 = vector.multi_reduction <add>, %83, %cst_29 [2] : vector<2x24x24xf32> to vector<2x24xf32>
    %85 = vector.shape_cast %84 : vector<2x24xf32> to vector<2x24x1xf32>
    %86 = tpu.reciprocal %85 {approx = true} : vector<2x24x1xf32> -> vector<2x24x1xf32>
    %87 = vector.broadcast %86 : vector<2x24x1xf32> to vector<2x24x24xf32>
    %88 = arith.mulf %83, %87 : vector<2x24x24xf32>
    %89 = arith.truncf %88 : vector<2x24x24xf32> to vector<2x24x24xbf16>
    %90 = arith.truncf %69 : vector<2x24x32xf32> to vector<2x24x32xbf16>
    "tpu.trace_start"() <{level = 10 : i32, message = "bqk,bkc->bqc"}> : () -> ()
    %cst_30 = arith.constant dense<0.000000e+00> : vector<2x24x32xf32>
    %91 = tpu.matmul %89, %90, %cst_30 {dimension_numbers = #tpu.dot_dimension_numbers<[2], [1], [1], [2], [0, 0, 0, 1, 1, 2], [0], [0]>} : vector<2x24x24xbf16>, vector<2x24x32xbf16>, vector<2x24x32xf32> -> vector<2x24x32xf32>
    "tpu.trace_stop"() : () -> ()
    %92 = vector.extract_strided_slice %38 {offsets = [0, 0, 64], sizes = [2, 24, 32], strides = [1, 1, 1]} : vector<2x24x384xf32> to vector<2x24x32xf32>
    %93 = vector.extract_strided_slice %38 {offsets = [0, 0, 192], sizes = [2, 24, 32], strides = [1, 1, 1]} : vector<2x24x384xf32> to vector<2x24x32xf32>
    %94 = vector.extract_strided_slice %38 {offsets = [0, 0, 320], sizes = [2, 24, 32], strides = [1, 1, 1]} : vector<2x24x384xf32> to vector<2x24x32xf32>
    %95 = arith.truncf %92 : vector<2x24x32xf32> to vector<2x24x32xbf16>
    %96 = arith.truncf %93 : vector<2x24x32xf32> to vector<2x24x32xbf16>
    "tpu.trace_start"() <{level = 10 : i32, message = "bqc,bkc->bqk"}> : () -> ()
    %cst_31 = arith.constant dense<0.000000e+00> : vector<2x24x24xf32>
    %97 = tpu.matmul %95, %96, %cst_31 {dimension_numbers = #tpu.dot_dimension_numbers<[2], [2], [1], [1], [0, 0, 0, 1, 1, 1], [0], [0]>} : vector<2x24x32xbf16>, vector<2x24x32xbf16>, vector<2x24x24xf32> -> vector<2x24x24xf32>
    "tpu.trace_stop"() : () -> ()
    %cst_32 = arith.constant 0.176776692 : f32
    %98 = vector.broadcast %cst_32 : f32 to vector<2x24x24xf32>
    %99 = arith.mulf %97, %98 : vector<2x24x24xf32>
    %cst_33 = arith.constant -1.000000e+30 : f32
    %100 = vector.shape_cast %41 : vector<1x1x24xi1> to vector<1x1x24xi1>
    %101 = vector.broadcast %100 : vector<1x1x24xi1> to vector<2x24x24xi1>
    %102 = vector.broadcast %cst_33 : f32 to vector<2x24x24xf32>
    %103 = arith.select %101, %99, %102 : vector<2x24x24xi1>, vector<2x24x24xf32>
    %cst_34 = arith.constant dense<0xFF800000> : vector<2x24xf32>
    %104 = vector.multi_reduction <maximumf>, %103, %cst_34 [2] : vector<2x24x24xf32> to vector<2x24xf32>
    %105 = vector.shape_cast %104 : vector<2x24xf32> to vector<2x24x1xf32>
    %106 = vector.broadcast %105 : vector<2x24x1xf32> to vector<2x24x24xf32>
    %107 = arith.subf %103, %106 : vector<2x24x24xf32>
    %108 = math.exp %107 : vector<2x24x24xf32>
    %cst_35 = arith.constant dense<0.000000e+00> : vector<2x24xf32>
    %109 = vector.multi_reduction <add>, %108, %cst_35 [2] : vector<2x24x24xf32> to vector<2x24xf32>
    %110 = vector.shape_cast %109 : vector<2x24xf32> to vector<2x24x1xf32>
    %111 = tpu.reciprocal %110 {approx = true} : vector<2x24x1xf32> -> vector<2x24x1xf32>
    %112 = vector.broadcast %111 : vector<2x24x1xf32> to vector<2x24x24xf32>
    %113 = arith.mulf %108, %112 : vector<2x24x24xf32>
    %114 = arith.truncf %113 : vector<2x24x24xf32> to vector<2x24x24xbf16>
    %115 = arith.truncf %94 : vector<2x24x32xf32> to vector<2x24x32xbf16>
    "tpu.trace_start"() <{level = 10 : i32, message = "bqk,bkc->bqc"}> : () -> ()
    %cst_36 = arith.constant dense<0.000000e+00> : vector<2x24x32xf32>
    %116 = tpu.matmul %114, %115, %cst_36 {dimension_numbers = #tpu.dot_dimension_numbers<[2], [1], [1], [2], [0, 0, 0, 1, 1, 2], [0], [0]>} : vector<2x24x24xbf16>, vector<2x24x32xbf16>, vector<2x24x32xf32> -> vector<2x24x32xf32>
    "tpu.trace_stop"() : () -> ()
    %117 = vector.extract_strided_slice %38 {offsets = [0, 0, 96], sizes = [2, 24, 32], strides = [1, 1, 1]} : vector<2x24x384xf32> to vector<2x24x32xf32>
    %118 = vector.extract_strided_slice %38 {offsets = [0, 0, 224], sizes = [2, 24, 32], strides = [1, 1, 1]} : vector<2x24x384xf32> to vector<2x24x32xf32>
    %119 = vector.extract_strided_slice %38 {offsets = [0, 0, 352], sizes = [2, 24, 32], strides = [1, 1, 1]} : vector<2x24x384xf32> to vector<2x24x32xf32>
    %120 = arith.truncf %117 : vector<2x24x32xf32> to vector<2x24x32xbf16>
    %121 = arith.truncf %118 : vector<2x24x32xf32> to vector<2x24x32xbf16>
    "tpu.trace_start"() <{level = 10 : i32, message = "bqc,bkc->bqk"}> : () -> ()
    %cst_37 = arith.constant dense<0.000000e+00> : vector<2x24x24xf32>
    %122 = tpu.matmul %120, %121, %cst_37 {dimension_numbers = #tpu.dot_dimension_numbers<[2], [2], [1], [1], [0, 0, 0, 1, 1, 1], [0], [0]>} : vector<2x24x32xbf16>, vector<2x24x32xbf16>, vector<2x24x24xf32> -> vector<2x24x24xf32>
    "tpu.trace_stop"() : () -> ()
    %cst_38 = arith.constant 0.176776692 : f32
    %123 = vector.broadcast %cst_38 : f32 to vector<2x24x24xf32>
    %124 = arith.mulf %122, %123 : vector<2x24x24xf32>
    %cst_39 = arith.constant -1.000000e+30 : f32
    %125 = vector.shape_cast %41 : vector<1x1x24xi1> to vector<1x1x24xi1>
    %126 = vector.broadcast %125 : vector<1x1x24xi1> to vector<2x24x24xi1>
    %127 = vector.broadcast %cst_39 : f32 to vector<2x24x24xf32>
    %128 = arith.select %126, %124, %127 : vector<2x24x24xi1>, vector<2x24x24xf32>
    %cst_40 = arith.constant dense<0xFF800000> : vector<2x24xf32>
    %129 = vector.multi_reduction <maximumf>, %128, %cst_40 [2] : vector<2x24x24xf32> to vector<2x24xf32>
    %130 = vector.shape_cast %129 : vector<2x24xf32> to vector<2x24x1xf32>
    %131 = vector.broadcast %130 : vector<2x24x1xf32> to vector<2x24x24xf32>
    %132 = arith.subf %128, %131 : vector<2x24x24xf32>
    %133 = math.exp %132 : vector<2x24x24xf32>
    %cst_41 = arith.constant dense<0.000000e+00> : vector<2x24xf32>
    %134 = vector.multi_reduction <add>, %133, %cst_41 [2] : vector<2x24x24xf32> to vector<2x24xf32>
    %135 = vector.shape_cast %134 : vector<2x24xf32> to vector<2x24x1xf32>
    %136 = tpu.reciprocal %135 {approx = true} : vector<2x24x1xf32> -> vector<2x24x1xf32>
    %137 = vector.broadcast %136 : vector<2x24x1xf32> to vector<2x24x24xf32>
    %138 = arith.mulf %133, %137 : vector<2x24x24xf32>
    %139 = arith.truncf %138 : vector<2x24x24xf32> to vector<2x24x24xbf16>
    %140 = arith.truncf %119 : vector<2x24x32xf32> to vector<2x24x32xbf16>
    "tpu.trace_start"() <{level = 10 : i32, message = "bqk,bkc->bqc"}> : () -> ()
    %cst_42 = arith.constant dense<0.000000e+00> : vector<2x24x32xf32>
    %141 = tpu.matmul %139, %140, %cst_42 {dimension_numbers = #tpu.dot_dimension_numbers<[2], [1], [1], [2], [0, 0, 0, 1, 1, 2], [0], [0]>} : vector<2x24x24xbf16>, vector<2x24x32xbf16>, vector<2x24x32xf32> -> vector<2x24x32xf32>
    "tpu.trace_stop"() : () -> ()
    %142 = tpu.concatenate %66, %91, %116, %141 in 2 : vector<2x24x32xf32>, vector<2x24x32xf32>, vector<2x24x32xf32>, vector<2x24x32xf32> -> vector<2x24x128xf32>
    %143 = vector.shape_cast %142 : vector<2x24x128xf32> to vector<48x128xf32>
    %144 = arith.truncf %143 : vector<48x128xf32> to vector<48x128xbf16>
    %c0_43 = arith.constant 0 : index
    %c0_44 = arith.constant 0 : index
    %c0_45 = arith.constant 0 : index
    %145 = vector.load %arg7[%c0_43, %c0_44, %c0_45] : memref<1x128x128xbf16, #tpu.memory_space<vmem>>, vector<1x128x128xbf16>
    %146 = vector.shape_cast %145 : vector<1x128x128xbf16> to vector<128x128xbf16>
    %cst_46 = arith.constant dense<0.000000e+00> : vector<48x128xf32>
    %147 = tpu.matmul %144, %146, %cst_46 {dimension_numbers = #tpu.dot_dimension_numbers<[1], [0], [0], [1], [0, 0, 1, 1], [], []>} : vector<48x128xbf16>, vector<128x128xbf16>, vector<48x128xf32> -> vector<48x128xf32>
    %c0_47 = arith.constant 0 : index
    %c0_48 = arith.constant 0 : index
    %c0_49 = arith.constant 0 : index
    %148 = vector.load %arg8[%c0_47, %c0_48, %c0_49] : memref<1x1x128xf32, #tpu.memory_space<vmem>>, vector<1x1x128xf32>
    %149 = vector.shape_cast %148 : vector<1x1x128xf32> to vector<1x128xf32>
    %150 = vector.broadcast %149 : vector<1x128xf32> to vector<48x128xf32>
    %151 = arith.addf %147, %150 : vector<48x128xf32>
    %152 = arith.addf %3, %151 : vector<48x128xf32>
    %c0_50 = arith.constant 0 : index
    %c0_51 = arith.constant 0 : index
    %c0_52 = arith.constant 0 : index
    %153 = vector.load %arg9[%c0_50, %c0_51, %c0_52] : memref<1x1x128xf32, #tpu.memory_space<vmem>>, vector<1x1x128xf32>
    %154 = vector.shape_cast %153 : vector<1x1x128xf32> to vector<1x128xf32>
    %c0_53 = arith.constant 0 : index
    %c0_54 = arith.constant 0 : index
    %c0_55 = arith.constant 0 : index
    %155 = vector.load %arg10[%c0_53, %c0_54, %c0_55] : memref<1x1x128xf32, #tpu.memory_space<vmem>>, vector<1x1x128xf32>
    %156 = vector.shape_cast %155 : vector<1x1x128xf32> to vector<1x128xf32>
    %cst_56 = arith.constant dense<0.000000e+00> : vector<48xf32>
    %157 = vector.multi_reduction <add>, %152, %cst_56 [1] : vector<48x128xf32> to vector<48xf32>
    %158 = vector.shape_cast %157 : vector<48xf32> to vector<48x1xf32>
    %cst_57 = arith.constant 1.280000e+02 : f32
    %159 = vector.broadcast %cst_57 : f32 to vector<48x1xf32>
    %160 = arith.divf %158, %159 : vector<48x1xf32>
    %161 = vector.broadcast %160 : vector<48x1xf32> to vector<48x128xf32>
    %162 = arith.subf %152, %161 : vector<48x128xf32>
    %163 = arith.mulf %162, %162 : vector<48x128xf32>
    %cst_58 = arith.constant dense<0.000000e+00> : vector<48xf32>
    %164 = vector.multi_reduction <add>, %163, %cst_58 [1] : vector<48x128xf32> to vector<48xf32>
    %165 = vector.shape_cast %164 : vector<48xf32> to vector<48x1xf32>
    %cst_59 = arith.constant 1.280000e+02 : f32
    %166 = vector.broadcast %cst_59 : f32 to vector<48x1xf32>
    %167 = arith.divf %165, %166 : vector<48x1xf32>
    %168 = vector.broadcast %160 : vector<48x1xf32> to vector<48x128xf32>
    %169 = arith.subf %152, %168 : vector<48x128xf32>
    %cst_60 = arith.constant 9.99999997E-7 : f32
    %170 = vector.broadcast %cst_60 : f32 to vector<48x1xf32>
    %171 = arith.addf %167, %170 : vector<48x1xf32>
    %172 = math.rsqrt %171 : vector<48x1xf32>
    %173 = vector.broadcast %172 : vector<48x1xf32> to vector<48x128xf32>
    %174 = arith.mulf %169, %173 : vector<48x128xf32>
    %175 = vector.broadcast %154 : vector<1x128xf32> to vector<48x128xf32>
    %176 = arith.mulf %174, %175 : vector<48x128xf32>
    %177 = vector.broadcast %156 : vector<1x128xf32> to vector<48x128xf32>
    %178 = arith.addf %176, %177 : vector<48x128xf32>
    %179 = arith.truncf %178 : vector<48x128xf32> to vector<48x128xbf16>
    %c0_61 = arith.constant 0 : index
    %c0_62 = arith.constant 0 : index
    %c0_63 = arith.constant 0 : index
    %180 = vector.load %arg11[%c0_61, %c0_62, %c0_63] : memref<1x128x512xbf16, #tpu.memory_space<vmem>>, vector<1x128x512xbf16>
    %181 = vector.shape_cast %180 : vector<1x128x512xbf16> to vector<128x512xbf16>
    %cst_64 = arith.constant dense<0.000000e+00> : vector<48x512xf32>
    %182 = tpu.matmul %179, %181, %cst_64 {dimension_numbers = #tpu.dot_dimension_numbers<[1], [0], [0], [1], [0, 0, 1, 1], [], []>} : vector<48x128xbf16>, vector<128x512xbf16>, vector<48x512xf32> -> vector<48x512xf32>
    %c0_65 = arith.constant 0 : index
    %c0_66 = arith.constant 0 : index
    %c0_67 = arith.constant 0 : index
    %183 = vector.load %arg12[%c0_65, %c0_66, %c0_67] : memref<1x1x512xf32, #tpu.memory_space<vmem>>, vector<1x1x512xf32>
    %184 = vector.shape_cast %183 : vector<1x1x512xf32> to vector<1x512xf32>
    %185 = vector.broadcast %184 : vector<1x512xf32> to vector<48x512xf32>
    %186 = arith.addf %182, %185 : vector<48x512xf32>
    %cst_68 = arith.constant 5.000000e-01 : f32
    %187 = vector.broadcast %cst_68 : f32 to vector<48x512xf32>
    %188 = arith.mulf %187, %186 : vector<48x512xf32>
    %cst_69 = arith.constant 0.707106769 : f32
    %189 = vector.broadcast %cst_69 : f32 to vector<48x512xf32>
    %190 = arith.mulf %186, %189 : vector<48x512xf32>
    %cst_70 = arith.constant 0.000000e+00 : f32
    %191 = vector.broadcast %cst_70 : f32 to vector<48x512xf32>
    %192 = arith.cmpf oge, %190, %191 : vector<48x512xf32>
    %cst_71 = arith.constant 1.000000e+00 : f32
    %cst_72 = arith.constant -1.000000e+00 : f32
    %193 = vector.broadcast %cst_71 : f32 to vector<48x512xf32>
    %194 = vector.broadcast %cst_72 : f32 to vector<48x512xf32>
    %195 = arith.select %192, %193, %194 : vector<48x512xi1>, vector<48x512xf32>
    %196 = math.absf %190 : vector<48x512xf32>
    %cst_73 = arith.constant 0.327591091 : f32
    %197 = vector.broadcast %cst_73 : f32 to vector<48x512xf32>
    %198 = arith.mulf %197, %196 : vector<48x512xf32>
    %cst_74 = arith.constant 1.000000e+00 : f32
    %199 = vector.broadcast %cst_74 : f32 to vector<48x512xf32>
    %200 = arith.addf %199, %198 : vector<48x512xf32>
    %cst_75 = arith.constant 1.000000e+00 : f32
    %201 = vector.broadcast %cst_75 : f32 to vector<48x512xf32>
    %202 = arith.divf %201, %200 : vector<48x512xf32>
    %cst_76 = arith.constant 1.06140542 : f32
    %203 = vector.broadcast %cst_76 : f32 to vector<48x512xf32>
    %204 = arith.mulf %203, %202 : vector<48x512xf32>
    %cst_77 = arith.constant -1.45315206 : f32
    %205 = vector.broadcast %cst_77 : f32 to vector<48x512xf32>
    %206 = arith.addf %204, %205 : vector<48x512xf32>
    %207 = arith.mulf %206, %202 : vector<48x512xf32>
    %cst_78 = arith.constant 1.42141378 : f32
    %208 = vector.broadcast %cst_78 : f32 to vector<48x512xf32>
    %209 = arith.addf %207, %208 : vector<48x512xf32>
    %210 = arith.mulf %209, %202 : vector<48x512xf32>
    %cst_79 = arith.constant -0.284496725 : f32
    %211 = vector.broadcast %cst_79 : f32 to vector<48x512xf32>
    %212 = arith.addf %210, %211 : vector<48x512xf32>
    %213 = arith.mulf %212, %202 : vector<48x512xf32>
    %cst_80 = arith.constant 0.254829586 : f32
    %214 = vector.broadcast %cst_80 : f32 to vector<48x512xf32>
    %215 = arith.addf %213, %214 : vector<48x512xf32>
    %216 = arith.mulf %215, %202 : vector<48x512xf32>
    %cst_81 = arith.constant 0.000000e+00 : f32
    %217 = vector.broadcast %cst_81 : f32 to vector<48x512xf32>
    %218 = arith.subf %217, %196 : vector<48x512xf32>
    %219 = arith.mulf %218, %196 : vector<48x512xf32>
    %220 = math.exp %219 : vector<48x512xf32>
    %221 = arith.mulf %216, %220 : vector<48x512xf32>
    %cst_82 = arith.constant 1.000000e+00 : f32
    %222 = vector.broadcast %cst_82 : f32 to vector<48x512xf32>
    %223 = arith.subf %222, %221 : vector<48x512xf32>
    %224 = arith.mulf %195, %223 : vector<48x512xf32>
    %cst_83 = arith.constant 1.000000e+00 : f32
    %225 = vector.broadcast %cst_83 : f32 to vector<48x512xf32>
    %226 = arith.addf %225, %224 : vector<48x512xf32>
    %227 = arith.mulf %188, %226 : vector<48x512xf32>
    %228 = arith.truncf %227 : vector<48x512xf32> to vector<48x512xbf16>
    %c0_84 = arith.constant 0 : index
    %c0_85 = arith.constant 0 : index
    %c0_86 = arith.constant 0 : index
    %229 = vector.load %arg13[%c0_84, %c0_85, %c0_86] : memref<1x512x128xbf16, #tpu.memory_space<vmem>>, vector<1x512x128xbf16>
    %230 = vector.shape_cast %229 : vector<1x512x128xbf16> to vector<512x128xbf16>
    %cst_87 = arith.constant dense<0.000000e+00> : vector<48x128xf32>
    %231 = tpu.matmul %228, %230, %cst_87 {dimension_numbers = #tpu.dot_dimension_numbers<[1], [0], [0], [1], [0, 0, 1, 1], [], []>} : vector<48x512xbf16>, vector<512x128xbf16>, vector<48x128xf32> -> vector<48x128xf32>
    %c0_88 = arith.constant 0 : index
    %c0_89 = arith.constant 0 : index
    %c0_90 = arith.constant 0 : index
    %232 = vector.load %arg14[%c0_88, %c0_89, %c0_90] : memref<1x1x128xf32, #tpu.memory_space<vmem>>, vector<1x1x128xf32>
    %233 = vector.shape_cast %232 : vector<1x1x128xf32> to vector<1x128xf32>
    %234 = vector.broadcast %233 : vector<1x128xf32> to vector<48x128xf32>
    %235 = arith.addf %231, %234 : vector<48x128xf32>
    %236 = arith.addf %152, %235 : vector<48x128xf32>
    %c0_91 = arith.constant 0 : index
    %c0_92 = arith.constant 0 : index
    %237 = vector.load %arg20[%c0_91, %c0_92] : memref<48x128xf32, #tpu.memory_space<vmem>>, vector<48x128xf32>
    tpu.vector_store %arg20[%c0_91, %c0_92], %236 {strides = array<i32>} : memref<48x128xf32, #tpu.memory_space<vmem>>, vector<48x128xf32>,
    %c1_i32 = arith.constant 1 : i32
    %238 = arith.cmpi eq, %arg1, %c1_i32 : i32
    %239 = arith.extui %238 : i1 to i32
    %c0_i32_93 = arith.constant 0 : i32
    %240 = arith.cmpi ne, %239, %c0_i32_93 : i32
    scf.if %240 {
      %241 = vector.shape_cast %236 : vector<48x128xf32> to vector<2x24x128xf32>
      %242 = vector.extract_strided_slice %241 {offsets = [0, 0, 0], sizes = [2, 1, 128], strides = [1, 1, 1]} : vector<2x24x128xf32> to vector<2x1x128xf32>
      %243 = vector.shape_cast %242 : vector<2x1x128xf32> to vector<2x128xf32>
      %c0_94 = arith.constant 0 : index
      %c0_95 = arith.constant 0 : index
      %244 = vector.load %arg15[%c0_94, %c0_95] : memref<1x128xf32, #tpu.memory_space<vmem>>, vector<1x128xf32>
      %c0_96 = arith.constant 0 : index
      %c0_97 = arith.constant 0 : index
      %245 = vector.load %arg16[%c0_96, %c0_97] : memref<1x128xf32, #tpu.memory_space<vmem>>, vector<1x128xf32>
      %cst_98 = arith.constant dense<0.000000e+00> : vector<2xf32>
      %246 = vector.multi_reduction <add>, %243, %cst_98 [1] : vector<2x128xf32> to vector<2xf32>
      %247 = vector.shape_cast %246 : vector<2xf32> to vector<2x1xf32>
      %cst_99 = arith.constant 1.280000e+02 : f32
      %248 = vector.broadcast %cst_99 : f32 to vector<2x1xf32>
      %249 = arith.divf %247, %248 : vector<2x1xf32>
      %250 = vector.broadcast %249 : vector<2x1xf32> to vector<2x128xf32>
      %251 = arith.subf %243, %250 : vector<2x128xf32>
      %252 = arith.mulf %251, %251 : vector<2x128xf32>
      %cst_100 = arith.constant dense<0.000000e+00> : vector<2xf32>
      %253 = vector.multi_reduction <add>, %252, %cst_100 [1] : vector<2x128xf32> to vector<2xf32>
      %254 = vector.shape_cast %253 : vector<2xf32> to vector<2x1xf32>
      %cst_101 = arith.constant 1.280000e+02 : f32
      %255 = vector.broadcast %cst_101 : f32 to vector<2x1xf32>
      %256 = arith.divf %254, %255 : vector<2x1xf32>
      %257 = vector.broadcast %249 : vector<2x1xf32> to vector<2x128xf32>
      %258 = arith.subf %243, %257 : vector<2x128xf32>
      %cst_102 = arith.constant 9.99999997E-7 : f32
      %259 = vector.broadcast %cst_102 : f32 to vector<2x1xf32>
      %260 = arith.addf %256, %259 : vector<2x1xf32>
      %261 = math.rsqrt %260 : vector<2x1xf32>
      %262 = vector.broadcast %261 : vector<2x1xf32> to vector<2x128xf32>
      %263 = arith.mulf %258, %262 : vector<2x128xf32>
      %264 = vector.broadcast %244 : vector<1x128xf32> to vector<2x128xf32>
      %265 = arith.mulf %263, %264 : vector<2x128xf32>
      %266 = vector.broadcast %245 : vector<1x128xf32> to vector<2x128xf32>
      %267 = arith.addf %265, %266 : vector<2x128xf32>
      %268 = arith.truncf %267 : vector<2x128xf32> to vector<2x128xbf16>
      %c0_103 = arith.constant 0 : index
      %c0_104 = arith.constant 0 : index
      %269 = vector.load %arg17[%c0_103, %c0_104] : memref<128x128xbf16, #tpu.memory_space<vmem>>, vector<128x128xbf16>
      %cst_105 = arith.constant dense<0.000000e+00> : vector<2x128xf32>
      %270 = tpu.matmul %268, %269, %cst_105 {dimension_numbers = #tpu.dot_dimension_numbers<[1], [0], [0], [1], [0, 0, 1, 1], [], []>} : vector<2x128xbf16>, vector<128x128xbf16>, vector<2x128xf32> -> vector<2x128xf32>
      %c0_106 = arith.constant 0 : index
      %c0_107 = arith.constant 0 : index
      %271 = vector.load %arg18[%c0_106, %c0_107] : memref<1x128xf32, #tpu.memory_space<vmem>>, vector<1x128xf32>
      %272 = vector.broadcast %271 : vector<1x128xf32> to vector<2x128xf32>
      %273 = arith.addf %270, %272 : vector<2x128xf32>
      %c0_108 = arith.constant 0 : index
      %c0_109 = arith.constant 0 : index
      %274 = vector.load %arg19[%c0_108, %c0_109] : memref<2x128xf32, #tpu.memory_space<vmem>>, vector<2x128xf32>
      tpu.vector_store %arg19[%c0_108, %c0_109], %273 {strides = array<i32>} : memref<2x128xf32, #tpu.memory_space<vmem>>, vector<2x128xf32>,
    } else {
    }
    return
  }
  func.func @transform_0(%arg0: i32, %arg1: i32) -> (i32, i32) {
    %c0_i32 = arith.constant 0 : i32
    %c0_i32_0 = arith.constant 0 : i32
    return %arg0, %c0_i32 : i32, i32
  }
  func.func @transform_1(%arg0: i32, %arg1: i32) -> (i32, i32, i32) {
    %c0_i32 = arith.constant 0 : i32
    %c0_i32_0 = arith.constant 0 : i32
    %c0_i32_1 = arith.constant 0 : i32
    return %arg1, %c0_i32, %c0_i32_0 : i32, i32, i32
  }
  func.func @transform_2(%arg0: i32, %arg1: i32) -> (i32, i32, i32) {
    %c0_i32 = arith.constant 0 : i32
    %c0_i32_0 = arith.constant 0 : i32
    %c0_i32_1 = arith.constant 0 : i32
    return %arg1, %c0_i32, %c0_i32_0 : i32, i32, i32
  }
  func.func @transform_3(%arg0: i32, %arg1: i32) -> (i32, i32, i32) {
    %c0_i32 = arith.constant 0 : i32
    %c0_i32_0 = arith.constant 0 : i32
    %c0_i32_1 = arith.constant 0 : i32
    return %arg1, %c0_i32, %c0_i32_0 : i32, i32, i32
  }
  func.func @transform_4(%arg0: i32, %arg1: i32) -> (i32, i32, i32) {
    %c0_i32 = arith.constant 0 : i32
    %c0_i32_0 = arith.constant 0 : i32
    %c0_i32_1 = arith.constant 0 : i32
    return %arg1, %c0_i32, %c0_i32_0 : i32, i32, i32
  }
  func.func @transform_5(%arg0: i32, %arg1: i32) -> (i32, i32, i32) {
    %c0_i32 = arith.constant 0 : i32
    %c0_i32_0 = arith.constant 0 : i32
    %c0_i32_1 = arith.constant 0 : i32
    return %arg1, %c0_i32, %c0_i32_0 : i32, i32, i32
  }
  func.func @transform_6(%arg0: i32, %arg1: i32) -> (i32, i32, i32) {
    %c0_i32 = arith.constant 0 : i32
    %c0_i32_0 = arith.constant 0 : i32
    %c0_i32_1 = arith.constant 0 : i32
    return %arg1, %c0_i32, %c0_i32_0 : i32, i32, i32
  }
  func.func @transform_7(%arg0: i32, %arg1: i32) -> (i32, i32, i32) {
    %c0_i32 = arith.constant 0 : i32
    %c0_i32_0 = arith.constant 0 : i32
    %c0_i32_1 = arith.constant 0 : i32
    return %arg1, %c0_i32, %c0_i32_0 : i32, i32, i32
  }
  func.func @transform_8(%arg0: i32, %arg1: i32) -> (i32, i32, i32) {
    %c0_i32 = arith.constant 0 : i32
    %c0_i32_0 = arith.constant 0 : i32
    %c0_i32_1 = arith.constant 0 : i32
    return %arg1, %c0_i32, %c0_i32_0 : i32, i32, i32
  }
  func.func @transform_9(%arg0: i32, %arg1: i32) -> (i32, i32, i32) {
    %c0_i32 = arith.constant 0 : i32
    %c0_i32_0 = arith.constant 0 : i32
    %c0_i32_1 = arith.constant 0 : i32
    return %arg1, %c0_i32, %c0_i32_0 : i32, i32, i32
  }
  func.func @transform_10(%arg0: i32, %arg1: i32) -> (i32, i32, i32) {
    %c0_i32 = arith.constant 0 : i32
    %c0_i32_0 = arith.constant 0 : i32
    %c0_i32_1 = arith.constant 0 : i32
    return %arg1, %c0_i32, %c0_i32_0 : i32, i32, i32
  }
  func.func @transform_11(%arg0: i32, %arg1: i32) -> (i32, i32, i32) {
    %c0_i32 = arith.constant 0 : i32
    %c0_i32_0 = arith.constant 0 : i32
    %c0_i32_1 = arith.constant 0 : i32
    return %arg1, %c0_i32, %c0_i32_0 : i32, i32, i32
  }
  func.func @transform_12(%arg0: i32, %arg1: i32) -> (i32, i32, i32) {
    %c0_i32 = arith.constant 0 : i32
    %c0_i32_0 = arith.constant 0 : i32
    %c0_i32_1 = arith.constant 0 : i32
    return %arg1, %c0_i32, %c0_i32_0 : i32, i32, i32
  }
  func.func @transform_13(%arg0: i32, %arg1: i32) -> (i32, i32) {
    %c0_i32 = arith.constant 0 : i32
    %c0_i32_0 = arith.constant 0 : i32
    %c0_i32_1 = arith.constant 0 : i32
    return %c0_i32, %c0_i32_0 : i32, i32
  }
  func.func @transform_14(%arg0: i32, %arg1: i32) -> (i32, i32) {
    %c0_i32 = arith.constant 0 : i32
    %c0_i32_0 = arith.constant 0 : i32
    %c0_i32_1 = arith.constant 0 : i32
    return %c0_i32, %c0_i32_0 : i32, i32
  }
  func.func @transform_15(%arg0: i32, %arg1: i32) -> (i32, i32) {
    %c0_i32 = arith.constant 0 : i32
    %c0_i32_0 = arith.constant 0 : i32
    %c0_i32_1 = arith.constant 0 : i32
    return %c0_i32, %c0_i32_0 : i32, i32
  }
  func.func @transform_16(%arg0: i32, %arg1: i32) -> (i32, i32) {
    %c0_i32 = arith.constant 0 : i32
    %c0_i32_0 = arith.constant 0 : i32
    %c0_i32_1 = arith.constant 0 : i32
    return %c0_i32, %c0_i32_0 : i32, i32
  }
  func.func @transform_17(%arg0: i32, %arg1: i32) -> (i32, i32) {
    %c0_i32 = arith.constant 0 : i32
    %c0_i32_0 = arith.constant 0 : i32
    return %arg0, %c0_i32 : i32, i32
  }
}

</mosaic_0001>

<bundles_post_ra>
// kernel: forward.2
= control target key start
LH: loop header
LB: loop body
LE: loop exit
PB: predicated region body
PF: predicated region fallthrough
CT: control target
= control target key end

     0   :  { %v631_v0 = vmov 0   ;;  %vm145_vm0 = vcmask 523264   ;;  %s827_s1 = inlined_call_operand.vmem [shape: bf16[192,128], index: 1, kind: input, shape index: {}]   ;;  %s828_s0 = inlined_call_operand.vmem [shape: f32[32,192], index: 0, kind: input, shape index: {}]   ;;  %s829_s4 = inlined_call_operand.vmem [shape: bf16[128,128], index: 4, kind: input, shape index: {}]   ;;  %s830_s6 = inlined_call_operand.vmem [shape: bf16[128,128], index: 6, kind: input, shape index: {}]   ;;  %s831_s2 = inlined_call_operand.vmem [shape: f32[1,128], index: 2, kind: input, shape index: {}]   ;;  %s832_s3 = inlined_call_operand.vmem [shape: f32[1,128], index: 3, kind: input, shape index: {}]   ;;  %s833_s5 = inlined_call_operand.vmem [shape: f32[1,128], index: 5, kind: input, shape index: {}]   ;;  %s834_s7 = inlined_call_operand.vmem [shape: f32[1,128], index: 7, kind: input, shape index: {}]   ;;  %s835_s8 = inlined_call_operand.vmem [shape: f32[32,128], index: 8, kind: output, shape index: {}]  }
   0x1   :  { %152 = vmatprep.subr.bf16.mxu0 %v631_v0  ;;  %v587_v1 = vld [vmem:[%s827_s1] sm:$0xff]   ;;  %v588_v2 = vld [vmem:[%s827_s1 + $0x8] sm:$0xff]   ;;  %v589_v3 = vld [vmem:[%s827_s1 + $0x10] sm:$0xff]  }
   0x2   :  { %153 = vmatpush1.bf16.msra.mxu0 %v587_v1  ;;  %v590_v4 = vld [vmem:[%s827_s1 + $0x18] sm:$0xff]   ;;  %v31_v5 = vld [vmem:[%s828_s0 + $0x8] sm:$0xff]  ;;  %v591_v8 = vld [vmem:[%s827_s1 + $0x20] sm:$0xff]  }
   0x3   :  { %154 = vmatprep.subr.bf16.mxu0 %v631_v0  ;;  %v33_v6 = vld [vmem:[%s828_s0 + $0x18] sm:$0xff]  ;;  %v599_v9 = vld [vmem:[%s829_s4] sm:$0xff]   ;;  %v600_v10 = vld [vmem:[%s829_s4 + $0x8] sm:$0xff]  }
   0x4   :  { %v39_v7 = vpack.c.bf16 %v33_v6, %v31_v5  ;;  %546 = vmatprep.subr.bf16.mxu1 %v599_v9  ;;  %v592_v11 = vld [vmem:[%s827_s1 + $0x28] sm:$0xff]   ;;  %v601_v12 = vld [vmem:[%s829_s4 + $0x10] sm:$0xff]   ;;  %v602_v14 = vld [vmem:[%s829_s4 + $0x18] sm:$0xff]  }
   0x5   :  { %547 = vmatpush3.bf16.msra.mxu1 %v599_v9  ;;  %v593_v13 = vld [vmem:[%s827_s1 + $0x30] sm:$0xff]   ;;  %v594_v15 = vld [vmem:[%s827_s1 + $0x38] sm:$0xff]   ;;  %v595_v16 = vld [vmem:[%s827_s1 + $0x40] sm:$0xff]  }
   0x6   :  { %155 = vmatpush1.bf16.msra.mxu0 %v588_v2  ;;  %505 = vmatprep.mubr.msk.bf16.mxu0 %vm145_vm0, %v39_v7  ;;  %v596_v17 = vld [vmem:[%s827_s1 + $0x48] sm:$0xff]   ;;  %v597_v18 = vld [vmem:[%s827_s1 + $0x50] sm:$0xff]   ;;  %v598_v19 = vld [vmem:[%s827_s1 + $0x58] sm:$0xff]  }
   0x7   :  { %156 = vmatprep.subr.bf16.mxu0 %v631_v0  ;;  %548 = vmatprep.subr.bf16.mxu1 %v600_v10  ;;  %v30_v20 = vld [vmem:[%s828_s0] sm:$0xff]  ;;  %v32_v21 = vld [vmem:[%s828_s0 + $0x10] sm:$0xff]  ;;  %v35_v22 = vld [vmem:[%s828_s0 + $0x28] sm:$0xff] }
   0x8   :  { %v37_v23 = vld [vmem:[%s828_s0 + $0x38] sm:$0xff]  ;;  %v38_v24 = vpack.c.bf16 %v32_v21, %v30_v20  ;;  %v34_v26 = vld [vmem:[%s828_s0 + $0x20] sm:$0xff]  ;;  %v36_v27 = vld [vmem:[%s828_s0 + $0x30] sm:$0xff] }
   0x9   :  { %549 = vmatpush3.bf16.msra.mxu1 %v600_v10  ;;  %v41_v25 = vpack.c.bf16 %v37_v23, %v35_v22  ;;  %v40_v28 = vpack.c.bf16 %v36_v27, %v34_v26  ;;  %v603_v29 = vld [vmem:[%s829_s4 + $0x20] sm:$0xff]   ;;  %v604_v30 = vld [vmem:[%s829_s4 + $0x28] sm:$0xff]   ;;  %v605_v31 = vld [vmem:[%s829_s4 + $0x30] sm:$0xff]  }
   0xa   :  { %157 = vmatpush1.bf16.msra.mxu0 %v589_v3  ;;  %550 = vmatprep.subr.bf16.mxu1 %v601_v12  ;;  %v606_v32 = vld [vmem:[%s829_s4 + $0x38] sm:$0xff]   ;;  %v607_v33 = vld [vmem:[%s830_s6] sm:$0xff]   ;;  %v608_v54 = vld [vmem:[%s830_s6 + $0x8] sm:$0xff]  }
   0xb   :  { %158 = vmatprep.subr.bf16.mxu0 %v631_v0  ;;  %v492_v34 = vld [vmem:[%s831_s2] ss:$0 sm:$0xff]  ;;  %v609_v55 = vld [vmem:[%s830_s6 + $0x10] sm:$0xff]   ;;  %v610_v56 = vld [vmem:[%s830_s6 + $0x18] sm:$0xff]  }
   0xc   :  { %v507_v39 = vld [vmem:[%s832_s3] ss:$0 sm:$0xff]  ;;  %v612_v58 = vld [vmem:[%s830_s6 + $0x28] sm:$0xff]   ;;  %v613_v59 = vld [vmem:[%s830_s6 + $0x30] sm:$0xff]  }
   0xd   :  { %551 = vmatpush3.bf16.msra.mxu1 %v601_v12  ;;  %v611_v57 = vld [vmem:[%s830_s6 + $0x20] sm:$0xff]   ;;  %v614_v60 = vld [vmem:[%s830_s6 + $0x38] sm:$0xff]  }
   0xe   :  { %159 = vmatpush1.bf16.msra.mxu0 %v590_v4  ;;  %552 = vmatprep.subr.bf16.mxu1 %v602_v14  ;;  %v508_v61 = vld [vmem:[%s833_s5] ss:$0 sm:$0xff] }
   0xf   :  { %160 = vmatprep.subr.bf16.mxu0 %v631_v0  ;;  %v517_v12 = vld [vmem:[%s834_s7] ss:$0 sm:$0xff] }
  0x11   :  { %553 = vmatpush3.bf16.msra.mxu1 %v602_v14 }
  0x12   :  { %161 = vmatpush1.bf16.msra.mxu0 %v591_v8  ;;  %554 = vmatprep.subr.bf16.mxu1 %v603_v29 }
  0x13   :  { %162 = vmatprep.subr.bf16.mxu0 %v631_v0 }
  0x15   :  { %555 = vmatpush3.bf16.msra.mxu1 %v603_v29 }
  0x16   :  { %163 = vmatpush1.bf16.msra.mxu0 %v592_v11  ;;  %556 = vmatprep.subr.bf16.mxu1 %v604_v30 }
  0x17   :  { %164 = vmatprep.subr.bf16.mxu0 %v631_v0 }
  0x19   :  { %557 = vmatpush3.bf16.msra.mxu1 %v604_v30 }
  0x1a   :  { %165 = vmatpush1.bf16.msra.mxu0 %v593_v13  ;;  %558 = vmatprep.subr.bf16.mxu1 %v605_v31 }
  0x1b   :  { %166 = vmatprep.subr.bf16.mxu0 %v631_v0 }
  0x1d   :  { %559 = vmatpush3.bf16.msra.mxu1 %v605_v31 }
  0x1e   :  { %167 = vmatpush1.bf16.msra.mxu0 %v594_v15  ;;  %560 = vmatprep.subr.bf16.mxu1 %v606_v32 }
  0x1f   :  { %168 = vmatprep.subr.bf16.mxu0 %v631_v0 }
  0x21   :  { %561 = vmatpush3.bf16.msra.mxu1 %v606_v32 }
  0x22   :  { %169 = vmatpush1.bf16.msra.mxu0 %v595_v16  ;;  %566 = vmatprep.subr.bf16.mxu1 %v607_v33 }
  0x23   :  { %170 = vmatprep.subr.bf16.mxu0 %v631_v0 }
  0x26   :  { %171 = vmatpush1.bf16.msra.mxu0 %v596_v17 }
  0x27   :  { %172 = vmatprep.subr.bf16.mxu0 %v631_v0 }
  0x2a   :  { %173 = vmatpush1.bf16.msra.mxu0 %v597_v18 }
  0x2b   :  { %174 = vmatprep.subr.bf16.mxu0 %v631_v0 }
  0x2e   :  { %175 = vmatpush1.bf16.msra.mxu0 %v598_v19 }
  0x31   :  { %185 = vmatmul.mubr.bf16.vlgmr.msra.gmra.mrb[0].mxu0 %v38_v24 }
  0x32   :  { %506 = vmatprep.mubr.msk.bf16.mxu0 %vm145_vm0, %v41_v25 }
  0x39   :  { %193 = vmatmul.mubr.bf16.gmra.mrb[4].mxu0 %v40_v28 }
 0x104   :  { %v186_v35 = vpop.f32.mrb[0].mxu0 }
 0x105   :  { %v769_v36 = vadd.f32 %v492_v34, %v186_v35  ;;  %v188_v37 = vpop.f32.mrb[1].mxu0 }
 0x106   :  { %v189_v38 = vpop.f32.mrb[2].mxu0 }
 0x107   :  { %v774_v40 = vadd.f32 %v492_v34, %v189_v38  ;;  %v191_v41 = vpop.f32.mrb[3].mxu0  ;;  %v208_v42 = vsub.f32 %v769_v36, %v507_v39 }
 0x109   :  { %v209_v43 = vsub.f32 %v774_v40, %v507_v39 }
 0x10b   :  { %v212_v44 = vpack.c.bf16 %v209_v43, %v208_v42 }
 0x10c   :  { %v194_v45 = vpop.f32.mrb[4].mxu0 }
 0x10d   :  { %v778_v46 = vadd.f32 %v492_v34, %v194_v45  ;;  %v196_v47 = vpop.f32.mrb[5].mxu0  ;;  %562 = vmatprep.mubr.bf16.mxu1 %v212_v44 }
 0x10e   :  { %v197_v48 = vpop.f32.mrb[6].mxu0 }
 0x10f   :  { %v780_v49 = vadd.f32 %v492_v34, %v197_v48  ;;  %v199_v50 = vpop.f32.mrb[7].mxu0  ;;  %v210_v51 = vsub.f32 %v778_v46, %v507_v39 }
 0x111   :  { %v211_v52 = vsub.f32 %v780_v49, %v507_v39 }
 0x113   :  { %v213_v53 = vpack.c.bf16 %v211_v52, %v210_v51 }
 0x115   :  { %563 = vmatmul.mubr.bf16.vlgmr.msra.gmra.mrb[0].mxu1 %v213_v53 }
 0x116   :  { %567 = vmatpush3.bf16.msra.mxu1 %v607_v33 }
 0x117   :  { %568 = vmatprep.subr.bf16.mxu1 %v608_v54 }
 0x11a   :  { %569 = vmatpush3.bf16.msra.mxu1 %v608_v54 }
 0x11b   :  { %570 = vmatprep.subr.bf16.mxu1 %v609_v55 }
 0x11e   :  { %571 = vmatpush3.bf16.msra.mxu1 %v609_v55 }
 0x11f   :  { %572 = vmatprep.subr.bf16.mxu1 %v610_v56 }
 0x122   :  { %573 = vmatpush3.bf16.msra.mxu1 %v610_v56 }
 0x123   :  { %574 = vmatprep.subr.bf16.mxu1 %v611_v57 }
 0x126   :  { %575 = vmatpush3.bf16.msra.mxu1 %v611_v57 }
 0x127   :  { %576 = vmatprep.subr.bf16.mxu1 %v612_v58 }
 0x12a   :  { %577 = vmatpush3.bf16.msra.mxu1 %v612_v58 }
 0x12b   :  { %578 = vmatprep.subr.bf16.mxu1 %v613_v59 }
 0x12e   :  { %579 = vmatpush3.bf16.msra.mxu1 %v613_v59 }
 0x12f   :  { %580 = vmatprep.subr.bf16.mxu1 %v614_v60 }
 0x132   :  { %581 = vmatpush3.bf16.msra.mxu1 %v614_v60 }
 0x1e8   :  { %v564_v62 = vpop.f32.mrb[0].mxu1 }
 0x1e9   :  { %v328_v63 = vadd.f32 %v564_v62, %v508_v61  ;;  %v319_v0 = vpop.f32.mrb[1].mxu1 }
 0x1ea   :  { %v320_v1 = vadd.f32 %v508_v61, %v319_v0  ;;  %v565_v2 = vpop.f32.mrb[2].mxu1 }
 0x1eb   :  { %v331_v3 = vadd.f32 %v565_v2, %v508_v61  ;;  %v322_v4 = vpop.f32.mrb[3].mxu1  ;;  %v336_v6 = vmax.f32 %v328_v63, 0.0 }
 0x1ec   :  { %v323_v5 = vadd.f32 %v508_v61, %v322_v4  ;;  %v334_v8 = vmax.f32 %v320_v1, 0.0 }
 0x1ed   :  { %v337_v7 = vmax.f32 %v331_v3, 0.0 }
 0x1ee   :  { %v335_v9 = vmax.f32 %v323_v5, 0.0 }
 0x1ef   :  { %v339_v10 = vpack.c.bf16 %v337_v7, %v336_v6 }
 0x1f0   :  { %v338_v11 = vpack.c.bf16 %v335_v9, %v334_v8 }
 0x1f2   :  { %582 = vmatprep.mubr.bf16.mxu1 %v338_v11 }
 0x1f3   :  { %583 = vmatmul.mubr.bf16.vlgmr.msra.gmra.mrb[4].mxu1 %v339_v10 }
 0x2c6   :  { %v584_v13 = vpop.f32.mrb[4].mxu1 }
 0x2c7   :  { %v454_v14 = vadd.f32 %v584_v13, %v517_v12  ;;  %v445_v15 = vpop.f32.mrb[5].mxu1 }
 0x2c8   :  { %v446_v16 = vadd.f32 %v517_v12, %v445_v15  ;;  %v585_v17 = vpop.f32.mrb[6].mxu1 }
 0x2c9   :  { %v462_v18 = vsub.f32 0.0, %v454_v14  ;;  %v457_v19 = vadd.f32 %v585_v17, %v517_v12  ;;  %v448_v20 = vpop.f32.mrb[7].mxu1 }
 0x2ca   :  { %v460_v21 = vsub.f32 0.0, %v446_v16  ;;  %v449_v22 = vadd.f32 %v517_v12, %v448_v20 }
 0x2cb   :  { %v468_v23 = vmul.f32 1.442695, %v462_v18  ;;  %v463_v24 = vsub.f32 0.0, %v457_v19 }
 0x2cc   :  { %v464_v25 = vmul.f32 1.442695, %v460_v21  ;;  %v461_v26 = vsub.f32 0.0, %v449_v22 }
 0x2cd   :  { %615 = vpow2.f32 %v468_v23  ;;  %v470_v27 = vmul.f32 1.442695, %v463_v24 }
 0x2ce   :  { %617 = vpow2.f32 %v464_v25  ;;  %v466_v28 = vmul.f32 1.442695, %v461_v26 }
 0x2cf   :  { %619 = vpow2.f32 %v470_v27 }
 0x2d0   :  { %621 = vpow2.f32 %v466_v28 }
 0x2d7   :  { %v616_v29 = vpop.eup %615 }
 0x2d8   :  { %v618_v30 = vpop.eup %617  ;;  %v474_v31 = vadd.f32 1.0, %v616_v29 }
 0x2d9   :  { %v620_v32 = vpop.eup %619  ;;  %v472_v33 = vadd.f32 1.0, %v618_v30 }
 0x2da   :  { %v622_v34 = vpop.eup %621  ;;  %623 = vrcp.f32 %v474_v31  ;;  %v475_v35 = vadd.f32 1.0, %v620_v32 }
 0x2db   :  { %625 = vrcp.f32 %v472_v33  ;;  %v473_v37 = vadd.f32 1.0, %v622_v34 }
 0x2dc   :  { %627 = vrcp.f32 %v475_v35 }
 0x2dd   :  { %629 = vrcp.f32 %v473_v37 }
 0x2e4   :  { %v624_v38 = vpop.eup %623 }
 0x2e5   :  { %v626_v39 = vpop.eup %625  ;;  %v482_v41 = vadd.f32 %v624_v38, %v778_v46 }
 0x2e6   :  { %v628_v42 = vpop.eup %627  ;;  %v480_v43 = vadd.f32 %v626_v39, %v769_v36 }
 0x2e7   :  { %v630_v44 = vpop.eup %629  ;;  %486 = vst [vmem:[%s835_s8 + $0x10] sm:$0xff] %v482_v41  ;;  %v483_v45 = vadd.f32 %v628_v42, %v780_v49 }
 0x2e8   :  { %484 = vst [vmem:[%s835_s8] sm:$0xff] %v480_v43  ;;  %v481_v47 = vadd.f32 %v630_v44, %v774_v40 }
 0x2e9   :  { %487 = vst [vmem:[%s835_s8 + $0x18] sm:$0xff] %v483_v45 }
 0x2ea   :  { %485 = vst [vmem:[%s835_s8 + $0x8] sm:$0xff] %v481_v47 }

// kernel: forward.3
= control target key start
LH: loop header
LB: loop body
LE: loop exit
PB: predicated region body
PF: predicated region fallthrough
CT: control target
= control target key end

     0   :  { %s7421_s0 = inlined_call_operand.vmem [shape: f32[48,128], index: 0, kind: input, shape index: {}]   ;;  %s7422_s1 = inlined_call_operand.vmem [shape: f32[2,1,128], index: 1, kind: input, shape index: {}]   ;;  %s7423_s2 = inlined_call_operand.vmem [shape: f32[2,1,128], index: 2, kind: input, shape index: {}]   ;;  %s7424_s3 = inlined_call_operand.vmem [shape: bf16[2,128,384], index: 3, kind: input, shape index: {}]   ;;  %s7425_s4 = inlined_call_operand.vmem [shape: f32[2,1,384], index: 4, kind: input, shape index: {}]   ;;  %s7426_s5 = inlined_call_operand.vmem [shape: bf16[2,128,128], index: 5, kind: input, shape index: {}]   ;;  %s7427_s6 = inlined_call_operand.vmem [shape: f32[2,1,128], index: 6, kind: input, shape index: {}]   ;;  %s7428_s7 = inlined_call_operand.vmem [shape: f32[2,1,128], index: 7, kind: input, shape index: {}]   ;;  %s7429_s8 = inlined_call_operand.vmem [shape: f32[2,1,128], index: 8, kind: input, shape index: {}]   ;;  %s7430_s9 = inlined_call_operand.vmem [shape: bf16[2,128,512], index: 9, kind: input, shape index: {}]   ;;  %s7431_s10 = inlined_call_operand.vmem [shape: f32[2,1,512], index: 10, kind: input, shape index: {}]   ;;  %s7432_s11 = inlined_call_operand.vmem [shape: bf16[2,512,128], index: 11, kind: input, shape index: {}]   ;;  %s7433_s12 = inlined_call_operand.vmem [shape: f32[2,1,128], index: 12, kind: input, shape index: {}]   ;;  %s7434_s13 = inlined_call_operand.vmem [shape: f32[1,128], index: 13, kind: input, shape index: {}]   ;;  %s7435_s14 = inlined_call_operand.vmem [shape: f32[1,128], index: 14, kind: input, shape index: {}]   ;;  %s7436_s15 = inlined_call_operand.vmem [shape: bf16[128,128], index: 15, kind: input, shape index: {}]   ;;  %s7437_s16 = inlined_call_operand.vmem [shape: f32[1,128], index: 16, kind: input, shape index: {}]   ;;  %s7438_s17 = inlined_call_operand.hbm [shape: f32[2,128], index: 17, kind: output, shape index: {}]  }
   0x1   :  { %7456 = sst [smem:[#allocation27_spill]] %s7421_s0 }
   0x2   :  { %7457 = sst [smem:[#allocation28_spill]] %s7422_s1 }
   0x3   :  { %7458 = sst [smem:[#allocation29_spill]] %s7424_s3 }
   0x4   :  { %7459 = sst [smem:[#allocation30_spill]] %s7426_s5 }
   0x5   :  { %7460 = sst [smem:[#allocation31_spill]] %s7434_s13 }
   0x6   :  { %7461 = sst [smem:[#allocation32_spill]] %s7435_s14 }
   0x7   :  { %7462 = sst [smem:[#allocation33_spill]] %s7437_s16 }
   0x8   :  { %7463 = sst [smem:[#allocation34_spill]] %s7438_s17 }
   0x9   :  { %22 = vsyncpa [#allocation4], 0  ;;  %s5774_s24 = smov 0   ;;  %s5776_s25 = smov 0  }
   0xa   :  { %s5778_s26 = smov 0  }
   0xb LB: > { %7464 = sst [smem:[#allocation6_spill]] %s5668_s25  ;;  %s37_s28 = sadd.s32 1, %s5668_s25  ;;  %s5672_s26 = sphi %s5778_s26, %s28_s26   ;;  %s5668_s25 = sphi %s5776_s25, %s7534_s25   ;;  %s5664_s24 = sphi %s5774_s24, %s7533_s24  }
   0xc   : > { %7465 = sst [smem:[#allocation7_spill]] %s5672_s26  ;;  %p38_p0 = scmp.ge.s32.totalorder %s37_s28, 2 }
   0xd   : > { %p4627_p1 = scmp.ge.s32.totalorder %s5672_s26, 1  ;;  %p607_p2 = scmp.lt.s32.totalorder %s5672_s26, 3 }
   0xe   : > { %s7536_s28 = smov (%p38_p0, %s37_s28), 0 }
   0xf   : > { %7466 = sst [smem:[#allocation8_spill]] %s7536_s28  ;;  %p608_p3 = pnand %p4627_p1, %p607_p2 }
  0x11   : > { %611 = sbr.rel (%p608_p3) target bundleno = 4927 (0x133f), region = 88 }
  0x18   : > { %p706_p4 = scmp.lt.s32.totalorder %s5664_s24, 1  ;;  %s7468_s5 = sld [smem:[#allocation30_spill]] }
  0x19   : > { %s7469_s3 = sld [smem:[#allocation29_spill]]  ;;  %p4636_p5 = scmp.ne.s32.totalorder %s5664_s24, 0 }
  0x1a   : > { %s5797_s29 = scalar_select %p706_p4, %s5664_s24, 1 }
  0x1b   : > { %756 = sbr.rel (%p4636_p5) target bundleno = 44 (0x2c), region = 92 }
  0x1c   : > { %s5181_s22 = smul.u32 192, %s5797_s29  ;;  %s4787_s23 = sshll.u32 %s5797_s29, 6 }
  0x1d   : > { %s5182_s27 = smul.u32 3, %s5797_s29  ;;  %s4788_s17 = sshll.u32 %s5797_s29, 8 }
  0x1e   : > { %s5813_s30 = scalar_lea.vmem %s7468_s5, %s4787_s23  ;;  %s4633_s16 = sshll.u32 %s5797_s29, 2 }
  0x1f   : > { %s5818_s26 = scalar_lea.vmem %s7469_s3, %s5181_s22  ;;  %s5827_s21 = scalar_lea.vmem %s7425_s4, %s5182_s27 }
  0x20   : > { %s5841_s3 = scalar_lea.vmem %s7430_s9, %s4788_s17  ;;  %s5847_s27 = scalar_lea.vmem %s7431_s10, %s4633_s16 }
  0x21   : > { %s5852_s13 = scalar_lea.vmem %s7432_s11, %s4788_s17  ;;  %s751_s0 = scalar_lea.vmem %s7433_s12, %s5797_s29 }
  0x22   : > { %s7470_s5 = sld [smem:[#allocation27_spill]] }
  0x28   : > { %v757_v0 = vld [vmem:[%s7470_s5] sm:$0xff]  ;;  %v758_v1 = vld [vmem:[%s7470_s5 + $0x8] sm:$0xff]  ;;  %v759_v2 = vld [vmem:[%s7470_s5 + $0x10] sm:$0xff] }
  0x29   : > { %763 = vst [vmem:[#allocation2] sm:$0xff] %v757_v0  ;;  %764 = vst [vmem:[#allocation2 + $0x8] sm:$0xff] %v758_v1  ;;  %v760_v3 = vld [vmem:[%s7470_s5 + $0x18] sm:$0xff]  ;;  %v761_v4 = vld [vmem:[%s7470_s5 + $0x20] sm:$0xff] }
  0x2a   : > { %765 = vst [vmem:[#allocation2 + $0x10] sm:$0xff] %v759_v2  ;;  %v762_v5 = vld [vmem:[%s7470_s5 + $0x28] sm:$0xff]  ;;  %766 = vst [vmem:[#allocation2 + $0x18] sm:$0xff] %v760_v3 }
  0x2b   : > { %767 = vst [vmem:[#allocation2 + $0x20] sm:$0xff] %v761_v4  ;;  %768 = vst [vmem:[#allocation2 + $0x28] sm:$0xff] %v762_v5 }
  0x2c PF: > { %v5268_v12 = vld [vmem:[%s5818_s26 + $0x4] ss:$12 sps:$4 sm:$0xff]   ;;  %v5270_v13 = vld [vmem:[%s5818_s26] ss:$12 sps:$4 sm:$0xff]   ;;  %v5674_v14 = vmov 0.0   ;;  %v5675_v59 = vmov 0   ;;  %s7473_s17 = scalar_lea.vmem %s7423_s2, %s5797_s29  ;;  %s7474_s23 = scalar_lea.vmem %s7427_s6, %s5797_s29 }
  0x2d   : > { %4953 = vmatprep.subr.bf16.mxu1 %v5674_v14  ;;  %v5271_v15 = vld [vmem:[%s5818_s26 + $0x8] ss:$12 sps:$4 sm:$0xff]   ;;  %1048 = vmatprep.subr.bf16.mxu0 %v5268_v12  ;;  %v5274_v41 = vld [vmem:[%s5818_s26 + $0x18] ss:$12 sps:$4 sm:$0xff]   ;;  %v5275_v42 = vld [vmem:[%s5818_s26 + $0x20] ss:$12 sps:$4 sm:$0xff]  }
  0x2e   : > { %v5272_v16 = vld [vmem:[%s5818_s26 + $0x1c] ss:$12 sps:$4 sm:$0xff]   ;;  %1049 = vmatpush1.bf16.msra.mxu0 %v5270_v13  ;;  %4954 = vmatpush3.bf16.msra.mxu1 %v5271_v15  ;;  %v5276_v43 = vld [vmem:[%s5818_s26 + $0x34] ss:$12 sps:$4 sm:$0xff]   ;;  %v5279_v45 = vld [vmem:[%s5818_s26 + $0x38] ss:$12 sps:$4 sm:$0xff]  }
  0x2f   : > { %1050 = vmatprep.subr.bf16.mxu0 %v5272_v16  ;;  %4955 = vmatprep.subr.bf16.mxu1 %v5674_v14  ;;  %v5278_v44 = vld [vmem:[%s5818_s26 + $0x30] ss:$12 sps:$4 sm:$0xff]   ;;  %v5280_v46 = vld [vmem:[%s5818_s26 + $0x4c] ss:$12 sps:$4 sm:$0xff]   ;;  %v5282_v47 = vld [vmem:[%s5818_s26 + $0x48] ss:$12 sps:$4 sm:$0xff]  }
  0x30   : > { %v769_v6 = vld [vmem:[#allocation2] sm:$0xff]  ;;  %v770_v8 = vld [vmem:[#allocation2 + $0x8] sm:$0xff]  ;;  %v5283_v48 = vld [vmem:[%s5818_s26 + $0x50] ss:$12 sps:$4 sm:$0xff]   ;;  %1080 = vmatprep.mubr.bf16.mxu0 %v5675_v59  ;;  %vm5676_vm0 = vmmov 0   ;;  %s7471_s22 = sld [smem:[#allocation28_spill]] }
  0x31   : > { %v771_v7 = vld [vmem:[#allocation2 + $0x10] sm:$0xff]  ;;  %777 = vadd.xlane.f32.xlu0 %v769_v6  ;;  %v772_v9 = vld [vmem:[#allocation2 + $0x18] sm:$0xff]  ;;  %v5286_v50 = vld [vmem:[%s5818_s26 + $0x60] ss:$12 sps:$4 sm:$0xff]   ;;  %4969 = vmatprep.mubr.msk.bf16.mxu1 %vm5676_vm0, %v5674_v14  ;;  %vm1179_vm1 = vcmask 261120   ;;  %vm1395_vm2 = vcmask 1043456  }
  0x32   : > { %781 = vadd.xlane.f32.xlu1 %v771_v7  ;;  %v773_v10 = vld [vmem:[#allocation2 + $0x20] sm:$0xff]  ;;  %v774_v11 = vld [vmem:[#allocation2 + $0x28] sm:$0xff]  ;;  %1051 = vmatpush1.bf16.msra.mxu0 %v5274_v41  ;;  %v5294_v56 = vld [vmem:[%s5818_s26 + $0x90] ss:$12 sps:$4 sm:$0xff]   ;;  %vm1314_vm4 = vcmask 195584   ;;  %s5678_s1 = smov 64  }
  0x33   : > { %4956 = vmatpush3.bf16.msra.mxu1 %v5275_v42  ;;  %1052 = vmatprep.subr.bf16.mxu0 %v5276_v43  ;;  %v5284_v49 = vld [vmem:[%s5818_s26 + $0x64] ss:$12 sps:$4 sm:$0xff]   ;;  %v5287_v51 = vld [vmem:[%s5818_s26 + $0x68] ss:$12 sps:$4 sm:$0xff]   ;;  %v5291_v54 = vld [vmem:[%s5818_s26 + $0x80] ss:$12 sps:$4 sm:$0xff]  }
  0x34   : > { %4957 = vmatprep.subr.bf16.mxu1 %v5674_v14  ;;  %v5288_v52 = vld [vmem:[%s5818_s26 + $0x7c] ss:$12 sps:$4 sm:$0xff]   ;;  %v5290_v53 = vld [vmem:[%s5818_s26 + $0x78] ss:$12 sps:$4 sm:$0xff]   ;;  %v5292_v55 = vld [vmem:[%s5818_s26 + $0x94] ss:$12 sps:$4 sm:$0xff]  }
  0x35   : > { %779 = vadd.xlane.f32.xlu0 %v770_v8  ;;  %v5295_v57 = vld [vmem:[%s5818_s26 + $0x98] ss:$12 sps:$4 sm:$0xff]   ;;  %v5298_v60 = vld [vmem:[%s5818_s26 + $0xa8] ss:$12 sps:$4 sm:$0xff]   ;;  %v5299_v61 = vld [vmem:[%s5818_s26 + $0xb0] ss:$12 sps:$4 sm:$0xff]  }
  0x36   : > { %783 = vadd.xlane.f32.xlu1 %v772_v9  ;;  %1053 = vmatpush1.bf16.msra.mxu0 %v5278_v44  ;;  %v5296_v58 = vld [vmem:[%s5818_s26 + $0xac] ss:$12 sps:$4 sm:$0xff]   ;;  %s7472_s19 = scalar_lea.vmem %s7471_s22, %s5797_s29  ;;  %s5679_s20 = smov 32   ;;  %vm2620_vm5 = vcmask 523264   ;;  %vm2627_vm6 = vcmask 785408  }
  0x37   : > { %4958 = vmatpush3.bf16.msra.mxu1 %v5279_v45  ;;  %1054 = vmatprep.subr.bf16.mxu0 %v5280_v46  ;;  %s7481_s26 = scalar_lea.vmem %s7428_s7, %s5797_s29  ;;  %p4771_p6 = scmp.ne.s32.totalorder %s5664_s24, 1 }
  0x38   : > { %4959 = vmatprep.subr.bf16.mxu1 %v5674_v14  ;;  %s7526_s18 = sld [smem:[#allocation33_spill]] (!%p4771_p6) }
  0x39   : > { %785 = vadd.xlane.f32.xlu0 %v773_v10 }
  0x3a   : > { %787 = vadd.xlane.f32.xlu1 %v774_v11  ;;  %1055 = vmatpush1.bf16.msra.mxu0 %v5282_v47 }
  0x3b   : > { %4960 = vmatpush3.bf16.msra.mxu1 %v5283_v48  ;;  %1056 = vmatprep.subr.bf16.mxu0 %v5284_v49 }
  0x3c   : > { %4961 = vmatprep.subr.bf16.mxu1 %v5674_v14 }
  0x3e   : > { %1057 = vmatpush1.bf16.msra.mxu0 %v5286_v50  ;;  %v903_v50 = vld [vmem:[%s5827_s21] sm:$0x7]  ;;  %s5677_s21 = smov 96  }
  0x3f   : > { %4962 = vmatpush3.bf16.msra.mxu1 %v5287_v51  ;;  %1058 = vmatprep.subr.bf16.mxu0 %v5288_v52 }
  0x40   : > { %4963 = vmatprep.subr.bf16.mxu1 %v5674_v14 }
  0x42   : > { %1059 = vmatpush1.bf16.msra.mxu0 %v5290_v53 }
  0x43   : > { %4964 = vmatpush3.bf16.msra.mxu1 %v5291_v54  ;;  %1060 = vmatprep.subr.bf16.mxu0 %v5292_v55 }
  0x44   : > { %4965 = vmatprep.subr.bf16.mxu1 %v5674_v14 }
  0x46   : > { %1061 = vmatpush1.bf16.msra.mxu0 %v5294_v56 }
  0x47   : > { %4966 = vmatpush3.bf16.msra.mxu1 %v5295_v57  ;;  %1062 = vmatprep.subr.bf16.mxu0 %v5296_v58 }
  0x48   : > { %4967 = vmatprep.subr.bf16.mxu1 %v5674_v14 }
  0x4a   : > { %1063 = vmatpush1.bf16.msra.mxu0 %v5298_v60 }
  0x4b   : > { %4968 = vmatpush3.bf16.msra.mxu1 %v5299_v61 }
  0xbe   : > { %v778_v17 = vpop.xlane.xlu0 %777 }
  0xbf   : > { %v782_v18 = vpop.xlane.xlu1 %781  ;;  %v790_v19 = vmul.f32 0.0078125, %v778_v17 }
  0xc0   : > { %v792_v20 = vmul.f32 0.0078125, %v782_v18 }
  0xc1   : > { %v5883_v21 = vsub.f32 %v769_v6, %v790_v19  ;;  %v4637_v19 = vld [vmem:[%s7472_s19] ss:$0 sm:$0xff]  ;;  %s7482_s19 = scalar_lea.vmem %s7429_s8, %s5797_s29  ;;  %s7525_s29 = sld [smem:[#allocation32_spill]] (!%p4771_p6) }
  0xc2   : > { %v5885_v22 = vsub.f32 %v771_v7, %v792_v20  ;;  %v780_v23 = vpop.xlane.xlu0 %779 }
  0xc3   : > { %v784_v24 = vpop.xlane.xlu1 %783  ;;  %v791_v25 = vmul.f32 0.0078125, %v780_v23  ;;  %v802_v26 = vmul.f32 %v5883_v21, %v5883_v21 }
  0xc4   : > { %v793_v27 = vmul.f32 0.0078125, %v784_v24  ;;  %v804_v28 = vmul.f32 %v5885_v22, %v5885_v22 }
  0xc5   : > { %808 = vadd.xlane.f32.xlu0 %v802_v26  ;;  %v5891_v29 = vsub.f32 %v770_v8, %v791_v25  ;;  %v4638_v26 = vld [vmem:[%s7473_s17] ss:$0 sm:$0xff] }
  0xc6   : > { %v5893_v30 = vsub.f32 %v772_v9, %v793_v27  ;;  %v786_v31 = vpop.xlane.xlu0 %785 }
  0xc7   : > { %v788_v32 = vpop.xlane.xlu1 %787  ;;  %v794_v33 = vmul.f32 0.0078125, %v786_v31  ;;  %v803_v34 = vmul.f32 %v5891_v29, %v5891_v29 }
  0xc8   : > { %v795_v35 = vmul.f32 0.0078125, %v788_v32  ;;  %v805_v36 = vmul.f32 %v5893_v30, %v5893_v30 }
  0xc9   : > { %812 = vadd.xlane.f32.xlu0 %v804_v28  ;;  %810 = vadd.xlane.f32.xlu1 %v803_v34  ;;  %v5899_v37 = vsub.f32 %v773_v10, %v794_v33 }
  0xca   : > { %v5901_v38 = vsub.f32 %v774_v11, %v795_v35 }
  0xcb   : > { %v806_v39 = vmul.f32 %v5899_v37, %v5899_v37 }
  0xcc   : > { %v807_v40 = vmul.f32 %v5901_v38, %v5901_v38 }
  0xcd   : > { %814 = vadd.xlane.f32.xlu1 %v805_v36  ;;  %816 = vadd.xlane.f32.xlu0 %v806_v39 }
  0xd1   : > { %818 = vadd.xlane.f32.xlu1 %v807_v40 }
 0x152   : > { %v809_v62 = vpop.xlane.xlu0 %808 }
 0x153   : > { %v820_v63 = vmul.f32 0.0078125, %v809_v62 }
 0x155   : > { %v826_v0 = vadd.f32 1e-06, %v820_v63 }
 0x156   : > { %v811_v1 = vpop.xlane.xlu1 %810  ;;  %v813_v2 = vpop.xlane.xlu0 %812 }
 0x157   : > { %5388 = vrsqrt.f32 %v826_v0  ;;  %v821_v3 = vmul.f32 0.0078125, %v811_v1  ;;  %v822_v4 = vmul.f32 0.0078125, %v813_v2 }
 0x159   : > { %v827_v5 = vadd.f32 1e-06, %v821_v3  ;;  %v828_v6 = vadd.f32 1e-06, %v822_v4 }
 0x15a   : > { %v815_v7 = vpop.xlane.xlu1 %814  ;;  %v817_v8 = vpop.xlane.xlu0 %816 }
 0x15b   : > { %5390 = vrsqrt.f32 %v827_v5  ;;  %v823_v9 = vmul.f32 0.0078125, %v815_v7  ;;  %v824_v11 = vmul.f32 0.0078125, %v817_v8 }
 0x15c   : > { %5392 = vrsqrt.f32 %v828_v6 }
 0x15d   : > { %v829_v10 = vadd.f32 1e-06, %v823_v9  ;;  %v830_v16 = vadd.f32 1e-06, %v824_v11 }
 0x15e   : > { %v819_v12 = vpop.xlane.xlu1 %818 }
 0x15f   : > { %5394 = vrsqrt.f32 %v829_v10  ;;  %v825_v13 = vmul.f32 0.0078125, %v819_v12 }
 0x161   : > { %v5389_v15 = vpop.eup %5388  ;;  %v831_v17 = vadd.f32 1e-06, %v825_v13 }
 0x162   : > { %v838_v18 = vmul.f32 %v5389_v15, %v5883_v21 }
 0x163   : > { %5396 = vrsqrt.f32 %v831_v17 }
 0x164   : > { %5398 = vrsqrt.f32 %v830_v16  ;;  %v850_v24 = vmul.f32 %v4637_v19, %v838_v18 }
 0x165   : > { %v5391_v20 = vpop.eup %5390 }
 0x166   : > { %v839_v23 = vmul.f32 %v5391_v20, %v5891_v29  ;;  %v5393_v25 = vpop.eup %5392  ;;  %v862_v21 = vadd.f32 %v4638_v26, %v850_v24 }
 0x167   : > { %v840_v32 = vmul.f32 %v5393_v25, %v5885_v22 }
 0x168   : > { %v851_v27 = vmul.f32 %v4637_v19, %v839_v23 }
 0x169   : > { %v5395_v28 = vpop.eup %5394  ;;  %v852_v29 = vmul.f32 %v4637_v19, %v840_v32 }
 0x16a   : > { %v863_v31 = vadd.f32 %v4638_v26, %v851_v27  ;;  %v841_v33 = vmul.f32 %v5395_v28, %v5893_v30 }
 0x16b   : > { %v864_v42 = vadd.f32 %v4638_v26, %v852_v29 }
 0x16c   : > { %v868_v34 = vpack.c.bf16 %v863_v31, %v862_v21  ;;  %v853_v35 = vmul.f32 %v4637_v19, %v841_v33 }
 0x16d   : > { %v5397_v36 = vpop.eup %5396 }
 0x16e   : > { %1081 = vmatmul.mubr.bf16.vlgmr.msra.gmra.mrb[0].mxu0 %v868_v34  ;;  %4970 = vmatmul.mubr.bf16.vlgmr.msra.gmra.mrb[0].mxu1 %v868_v34  ;;  %v5399_v39 = vpop.eup %5398  ;;  %v865_v40 = vadd.f32 %v4638_v26, %v853_v35  ;;  %v843_v41 = vmul.f32 %v5397_v36, %v5901_v38  ;;  %v905_v38 = vlaneseq }
 0x16f   : > { %1090 = vmatprep.mubr.bf16.mxu0 %v5675_v59  ;;  %4973 = vmatprep.mubr.msk.bf16.mxu1 %vm5676_vm0, %v5674_v14  ;;  %v842_v22 = vmul.f32 %v5399_v39, %v5899_v37 }
 0x170   : > { %v869_v43 = vpack.c.bf16 %v865_v40, %v864_v42  ;;  %v855_v30 = vmul.f32 %v4637_v19, %v843_v41  ;;  %v5959_v48 = vshrl.u32 %v905_v38, 7 }
 0x171   : > { %v854_v44 = vmul.f32 %v4637_v19, %v842_v22 }
 0x172   : > { %v867_v45 = vadd.f32 %v4638_v26, %v855_v30  ;;  %v907_v37 = vsub.s32 0, %v5959_v48  ;;  %v915_v49 = vsub.s32 2, %v5959_v48  ;;  %v911_v51 = vsub.s32 1, %v5959_v48 }
 0x173   : > { %v866_v46 = vadd.f32 %v4638_v26, %v854_v44 }
 0x174   : > { %v5967_v52 = vrot.slane %v903_v50, %v907_v37  ;;  %v5971_v53 = vrot.slane %v903_v50, %v915_v49  ;;  %v912_v56 = vrot.slane %v903_v50, %v911_v51 }
 0x175   : > { %v870_v47 = vpack.c.bf16 %v867_v45, %v866_v46 }
 0x176   : > { %1091 = vmatmul.mubr.bf16.gmra.mrb[4].mxu0 %v869_v43  ;;  %4974 = vmatmul.mubr.bf16.gmra.mrb[4].mxu1 %v869_v43 }
 0x177   : > { %1100 = vmatprep.mubr.bf16.mxu0 %v5675_v59  ;;  %4977 = vmatprep.mubr.msk.bf16.mxu1 %vm5676_vm0, %v5674_v14 }
 0x17e   : > { %1101 = vmatmul.mubr.bf16.gmra.mrb[8].mxu0 %v870_v47  ;;  %4978 = vmatmul.mubr.bf16.gmra.mrb[8].mxu1 %v870_v47 }
 0x241   : > { %v1082_v54 = vpop.f32.mrb[0].mxu0  ;;  %v1145_v55 = vpop.f32.mrb[0].mxu1 }
 0x242   : > { %v1084_v57 = vpop.f32.mrb[1].mxu0  ;;  %v4971_v58 = vpop.f32.mrb[1].mxu1  ;;  %v1083_v62 = vadd.f32 %v1082_v54, %v5967_v52  ;;  %v1146_v63 = vadd.f32 %v1145_v55, %v5971_v53 }
 0x243   : > { %v1086_v60 = vpop.f32.mrb[2].mxu0  ;;  %v1148_v61 = vpop.f32.mrb[2].mxu1  ;;  %v1085_v4 = vadd.f32 %v1084_v57, %v912_v56 }
 0x244   : > { %v1087_v0 = vadd.f32 %v1086_v60, %v5967_v52  ;;  %v1149_v1 = vadd.f32 %v1148_v61, %v5971_v53  ;;  %v1088_v2 = vpop.f32.mrb[3].mxu0  ;;  %v4972_v3 = vpop.f32.mrb[3].mxu1 }
 0x245   : > { %v1089_v5 = vadd.f32 %v1088_v2, %v912_v56 }
 0x246   : > { %v5979_v6 = vpack.c.bf16 %v1087_v0, %v1083_v62  ;;  %v5981_v7 = vpack.c.bf16 %v1149_v1, %v1146_v63  ;;  %v6048_v63 = vand.u32 127, %v905_v38 }
 0x247   : > { %v5983_v8 = vpack.c.bf16 %v1089_v5, %v1085_v4 }
 0x248   : > { %4985 = vmatprep.mubr.msk.bf16.mxu0 %vm1179_vm1, %v5979_v6  ;;  %vm1170_vm3 = vcmp.lt.s32.totalorder %v6048_v63, 17 }
 0x249   : > { %v1092_v9 = vpop.f32.mrb[4].mxu0  ;;  %v1153_v10 = vpop.f32.mrb[4].mxu1  ;;  %5157 = vmatprep.subr.msk.bf16.mxu0 %vm1179_vm1, %v5983_v8  ;;  %v1187_v11 = vsel %vm1179_vm1, %v5983_v8, 0 }
 0x24a   : > { %v1094_v12 = vpop.f32.mrb[5].mxu0  ;;  %v4975_v13 = vpop.f32.mrb[5].mxu1  ;;  %4982 = vmatpush3.bf16.xpose.msra.mxu0 %v1187_v11  ;;  %v1093_v33 = vadd.f32 %v1092_v9, %v5967_v52  ;;  %v1154_v22 = vadd.f32 %v1153_v10, %v5971_v53 }
 0x24b   : > { %v1095_v15 = vadd.f32 %v1094_v12, %v912_v56  ;;  %v1096_v16 = vpop.f32.mrb[6].mxu0  ;;  %v1156_v17 = vpop.f32.mrb[6].mxu1 }
 0x24c   : > { %v1098_v18 = vpop.f32.mrb[7].mxu0  ;;  %v4976_v19 = vpop.f32.mrb[7].mxu1  ;;  %v1097_v26 = vadd.f32 %v1096_v16, %v5967_v52  ;;  %v1157_v27 = vadd.f32 %v1156_v17, %v5971_v53  ;;  %v6012_v44 = vpack.c.bf16 %v1093_v33, %v1093_v33  ;;  %v6020_v47 = vpack.c.bf16 %v1154_v22, %v1154_v22 }
 0x24d   : > { %v5991_v20 = vpack.c.bf16 %v1095_v15, %v1095_v15  ;;  %v1099_v34 = vadd.f32 %v1098_v18, %v912_v56 }
 0x24e   : > { %v1397_v50 = vsel %vm1395_vm2, %v6020_v47, 0 }
 0x24f   : > { %5158 = vmatprep.subr.msk.bf16.mxu0 %vm1179_vm1, %v5991_v20  ;;  %v1190_v25 = vsel %vm1179_vm1, %v5991_v20, 0 }
 0x251   : > { %v1102_v23 = vpop.f32.mrb[8].mxu0  ;;  %v1161_v24 = vpop.f32.mrb[8].mxu1 }
 0x252   : > { %v1103_v28 = vadd.f32 %v1102_v23, %v5967_v52  ;;  %v1162_v21 = vadd.f32 %v1161_v24, %v5971_v53  ;;  %v1104_v31 = vpop.f32.mrb[9].mxu0  ;;  %v4979_v32 = vpop.f32.mrb[9].mxu1  ;;  %4984 = vmatpush3.bf16.xpose.msra.mxu0 %v1190_v25 }
 0x253   : > { %v1105_v35 = vadd.f32 %v1104_v31, %v912_v56  ;;  %v1106_v36 = vpop.f32.mrb[10].mxu0  ;;  %v1164_v29 = vpop.f32.mrb[10].mxu1  ;;  %4997 = vmatprep.subr.bf16.mxu0 %v5981_v7 }
 0x254   : > { %v6003_v39 = vpack.c.bf16 %v1103_v28, %v1097_v26  ;;  %v6005_v40 = vpack.c.bf16 %v1162_v21, %v1157_v27  ;;  %v1108_v41 = vpop.f32.mrb[11].mxu0  ;;  %v4980_v42 = vpop.f32.mrb[11].mxu1  ;;  %v1107_v55 = vadd.f32 %v1106_v36, %v5967_v52 }
 0x255   : > { %v6008_v43 = vpack.c.bf16 %v1105_v35, %v1099_v34  ;;  %v1109_v30 = vadd.f32 %v1108_v41, %v912_v56  ;;  %v1165_v56 = vadd.f32 %v1164_v29, %v5971_v53 }
 0x256   : > { %4993 = vmatprep.mubr.msk.bf16.mxu1 %vm1179_vm1, %v6003_v39  ;;  %v6036_v57 = vpack.c.bf16 %v1107_v55, %v1107_v55 }
 0x257   : > { %v6014_v45 = vpack.c.bf16 %v1109_v30, %v1109_v30  ;;  %5159 = vmatprep.subr.msk.bf16.mxu1 %vm1179_vm1, %v6008_v43  ;;  %v1247_v46 = vsel %vm1179_vm1, %v6008_v43, 0  ;;  %v6038_v58 = vpack.c.bf16 %v1165_v56, %v1165_v56 }
 0x258   : > { %4990 = vmatpush3.bf16.xpose.msra.mxu1 %v1247_v46 }
 0x259   : > { %4986 = vmatmul.mubr.msk.bf16.vlgmr.msra.gmra.mrb[12].mxu0 %vm1179_vm1, %v6012_v44  ;;  %5160 = vmatprep.subr.msk.bf16.mxu1 %vm1179_vm1, %v6014_v45  ;;  %v1250_v54 = vsel %vm1179_vm1, %v6014_v45, 0  ;;  %v1454_v60 = vsel %vm1395_vm2, %v6038_v58, 0 }
 0x25a   : > { %4998 = vmatpush3.bf16.msra.mxu0 %v5981_v7 }
 0x25b   : > { %5161 = vmatprep.subr.msk.bf16.mxu0 %vm1395_vm2, %v6020_v47 }
 0x25e   : > { %5000 = vmatpush3.bf16.msra.mxu0 %v1397_v50 }
 0x260   : > { %4992 = vmatpush3.bf16.xpose.msra.mxu1 %v1250_v54 }
 0x261   : > { %5005 = vmatprep.subr.bf16.mxu1 %v6005_v40 }
 0x267   : > { %4994 = vmatmul.mubr.msk.bf16.vlgmr.msra.gmra.mrb[12].mxu1 %vm1179_vm1, %v6036_v57 }
 0x268   : > { %5006 = vmatpush3.bf16.msra.mxu1 %v6005_v40 }
 0x269   : > { %5162 = vmatprep.subr.msk.bf16.mxu1 %vm1395_vm2, %v6038_v58 }
 0x26c   : > { %5008 = vmatpush3.bf16.msra.mxu1 %v1454_v60 }
 0x32c   : > { %v4987_v52 = vpop.f32.mrb[12].mxu0 }
 0x32d   : > { %v1226_v61 = vpop.f32.mrb[13].mxu0  ;;  %v1302_v36 = vmul.f32 0.17677669, %v4987_v52 }
 0x32e   : > { %v4988_v62 = vpop.f32.mrb[14].mxu0  ;;  %v1300_v35 = vmul.f32 0.17677669, %v1226_v61 }
 0x32f   : > { %v1229_v53 = vpop.f32.mrb[15].mxu0  ;;  %v6087_v42 = vsel %vm1170_vm3, %v1302_v36, -1e+30 }
 0x330   : > { %v6081_v29 = vsel %vm1170_vm3, %v1300_v35, -1e+30  ;;  %v1301_v22 = vmul.f32 0.17677669, %v1229_v53  ;;  %v1321_v30 = vsel %vm1314_vm4, %v6087_v42, -inf }
 0x331   : > { %v1315_v41 = vsel %vm1314_vm4, %v6081_v29, -inf }
 0x332   : > { %v6093_v46 = vsel %vm1170_vm3, %v1301_v22, -1e+30 }
 0x333   : > { %v1318_v50 = vsel %vm1314_vm4, %v6093_v46, -inf }
 0x33a   : > { %v4995_v0 = vpop.f32.mrb[12].mxu1 }
 0x33b   : > { %v1286_v1 = vpop.f32.mrb[13].mxu1  ;;  %v1305_v2 = vmul.f32 0.17677669, %v4995_v0 }
 0x33c   : > { %v1303_v3 = vmul.f32 0.17677669, %v1286_v1  ;;  %v4996_v4 = vpop.f32.mrb[14].mxu1 }
 0x33d   : > { %v1289_v5 = vpop.f32.mrb[15].mxu1  ;;  %v1313_v12 = vsel %vm1170_vm3, %v1305_v2, -1e+30 }
 0x33e   : > { %v1304_v9 = vmul.f32 0.17677669, %v1289_v5  ;;  %v1311_v10 = vsel %vm1170_vm3, %v1303_v3, -1e+30  ;;  %v1330_v15 = vsel %vm1314_vm4, %v1313_v12, -inf }
 0x33f   : > { %v1324_v11 = vsel %vm1314_vm4, %v1311_v10, -inf }
 0x340   : > { %1325 = vmax.xlane.f32.xlu0 %v1324_v11  ;;  %v1312_v38 = vsel %vm1170_vm3, %v1304_v9, -1e+30 }
 0x341   : > { %v1327_v13 = vsel %vm1314_vm4, %v1312_v38, -inf }
 0x342   : > { %1328 = vmax.xlane.f32.xlu1 %v1327_v13 }
 0x344   : > { %1331 = vmax.xlane.f32.xlu0 %v1330_v15 }
 0x3cd   : > { %v1326_v16 = vpop.xlane.xlu0 %1325 }
 0x3ce   : > { %v1336_v17 = vsub.f32 %v1311_v10, %v1326_v16 }
 0x3cf   : > { %v1329_v18 = vpop.xlane.xlu1 %1328 }
 0x3d0   : > { %v1345_v19 = vmul.f32 1.442695, %v1336_v17  ;;  %v1337_v23 = vsub.f32 %v1312_v38, %v1329_v18 }
 0x3d1   : > { %v1332_v24 = vpop.xlane.xlu0 %1331 }
 0x3d2   : > { %5400 = vpow2.f32 %v1345_v19  ;;  %v1347_v25 = vmul.f32 1.442695, %v1337_v23  ;;  %v1338_v26 = vsub.f32 %v1313_v12, %v1332_v24 }
 0x3d4   : > { %5402 = vpow2.f32 %v1347_v25  ;;  %v1349_v27 = vmul.f32 1.442695, %v1338_v26 }
 0x3d6   : > { %5404 = vpow2.f32 %v1349_v27 }
 0x3dc   : > { %v5401_v28 = vpop.eup %5400 }
 0x3dd   : > { %v1360_v21 = vsel %vm1314_vm4, %v5401_v28, 0.0 }
 0x3de   : > { %v5403_v31 = vpop.eup %5402  ;;  %1361 = vadd.xlane.f32.xlu1 %v1360_v21 }
 0x3df   : > { %v1363_v32 = vsel %vm1314_vm4, %v5403_v31, 0.0 }
 0x3e0   : > { %v5405_v33 = vpop.eup %5404  ;;  %1364 = vadd.xlane.f32.xlu0 %v1363_v32 }
 0x3e1   : > { %v1366_v34 = vsel %vm1314_vm4, %v5405_v33, 0.0 }
 0x3e2   : > { %1367 = vadd.xlane.f32.xlu1 %v1366_v34 }
 0x3f3   : > { %1514 = vrot.lane.b32.xlu1 %v5991_v20, %s5677_s21 }
 0x3f6   : > { %1512 = vrot.lane.b32.xlu0 %v5983_v8, %s5677_s21 }
 0x3f7   : > { %1506 = vrot.lane.b32.xlu1 %v5979_v6, %s5677_s21 }
 0x3fa   : > { %1508 = vrot.lane.b32.xlu0 %v6012_v44, %s5677_s21 }
 0x3fb   : > { %1584 = vrot.lane.b32.xlu1 %v6008_v43, %s5677_s21 }
 0x3fe   : > { %1578 = vrot.lane.b32.xlu0 %v6003_v39, %s5677_s21 }
 0x3ff   : > { %1586 = vrot.lane.b32.xlu1 %v6014_v45, %s5677_s21 }
 0x403   : > { %1580 = vrot.lane.b32.xlu1 %v6036_v57, %s5677_s21 }
 0x41d   : > { %1316 = vmax.xlane.f32.xlu0 %v1315_v41 }
 0x421   : > { %1322 = vmax.xlane.f32.xlu0 %v1321_v30 }
 0x427   : > { %1319 = vmax.xlane.f32.xlu1 %v1318_v50 }
 0x46b   : > { %v1362_v54 = vpop.xlane.xlu1 %1361 }
 0x46c   : > { %5406 = vrcp.f32 %v1362_v54 }
 0x46d   : > { %v1365_v55 = vpop.xlane.xlu0 %1364 }
 0x46e   : > { %5408 = vrcp.f32 %v1365_v55 }
 0x46f   : > { %v1368_v56 = vpop.xlane.xlu1 %1367 }
 0x470   : > { %5410 = vrcp.f32 %v1368_v56 }
 0x471   : > { %v1513_v60 = vpop.permute.xlu0 %1512 }
 0x472   : > { %5163 = vmatprep.subr.msk.bf16.mxu1 %vm1179_vm1, %v1513_v60  ;;  %v1523_v9 = vsel %vm1179_vm1, %v1513_v60, 0 }
 0x473   : > { %v1515_v62 = vpop.permute.xlu1 %1514 }
 0x474   : > { %v1526_v10 = vsel %vm1179_vm1, %v1515_v62, 0 }
 0x475   : > { %v1509_v38 = vpop.permute.xlu0 %1508 }
 0x476   : > { %v5407_v52 = vpop.eup %5406 }
 0x477   : > { %v1378_v53 = vmul.f32 %v5407_v52, %v5401_v28  ;;  %v1507_v5 = vpop.permute.xlu1 %1506 }
 0x478   : > { %v5409_v61 = vpop.eup %5408 }
 0x479   : > { %v1379_v0 = vmul.f32 %v5409_v61, %v5403_v31  ;;  %v1579_v12 = vpop.permute.xlu0 %1578 }
 0x47a   : > { %v5411_v1 = vpop.eup %5410 }
 0x47b   : > { %v1383_v2 = vpack.c.bf16 %v1379_v0, %v1378_v53  ;;  %v1380_v3 = vmul.f32 %v5411_v1, %v5405_v33  ;;  %v1585_v11 = vpop.permute.xlu1 %1584 }
 0x47c   : > { %v1595_v13 = vsel %vm1179_vm1, %v1585_v11, 0 }
 0x47d   : > { %5009 = vmatprep.mubr.msk.bf16.mxu1 %vm1314_vm4, %v1383_v2  ;;  %v1384_v4 = vpack.c.bf16 %v1380_v3, %v1380_v3 }
 0x47f   : > { %5010 = vmatmul.mubr.msk.bf16.vlgmr.msra.gmra.mrb[16].mxu1 %vm1314_vm4, %v1384_v4  ;;  %v1587_v15 = vpop.permute.xlu1 %1586 }
 0x480   : > { %5014 = vmatpush3.bf16.xpose.msra.mxu1 %v1523_v9  ;;  %5017 = vmatprep.mubr.msk.bf16.mxu1 %vm1179_vm1, %v1507_v5  ;;  %v1598_v16 = vsel %vm1179_vm1, %v1587_v15, 0 }
 0x481   : > { %5164 = vmatprep.subr.msk.bf16.mxu1 %vm1179_vm1, %v1515_v62 }
 0x483   : > { %v1581_v17 = vpop.permute.xlu1 %1580 }
 0x488   : > { %5016 = vmatpush3.bf16.xpose.msra.mxu1 %v1526_v10 }
 0x489   : > { %5165 = vmatprep.subr.msk.bf16.mxu1 %vm1179_vm1, %v1585_v11 }
 0x48f   : > { %5018 = vmatmul.mubr.msk.bf16.vlgmr.msra.gmra.mrb[20].mxu1 %vm1179_vm1, %v1509_v38 }
 0x490   : > { %5022 = vmatpush3.bf16.xpose.msra.mxu1 %v1595_v13  ;;  %5025 = vmatprep.mubr.msk.bf16.mxu1 %vm1179_vm1, %v1579_v12 }
 0x491   : > { %5166 = vmatprep.subr.msk.bf16.mxu1 %vm1179_vm1, %v1587_v15 }
 0x498   : > { %5024 = vmatpush3.bf16.xpose.msra.mxu1 %v1598_v16 }
 0x49f   : > { %5026 = vmatmul.mubr.msk.bf16.vlgmr.msra.gmra.mrb[24].mxu1 %vm1179_vm1, %v1581_v17 }
 0x4aa   : > { %v1317_v26 = vpop.xlane.xlu0 %1316 }
 0x4ab   : > { %v1333_v30 = vsub.f32 %v6081_v29, %v1317_v26 }
 0x4ad   : > { %v1339_v60 = vmul.f32 1.442695, %v1333_v30 }
 0x4ae   : > { %v1323_v54 = vpop.xlane.xlu0 %1322 }
 0x4af   : > { %v1335_v52 = vsub.f32 %v6087_v42, %v1323_v54  ;;  %5412 = vpow2.f32 %v1339_v60 }
 0x4b1   : > { %v1343_v62 = vmul.f32 1.442695, %v1335_v52 }
 0x4b4   : > { %v1320_v41 = vpop.xlane.xlu1 %1319 }
 0x4b5   : > { %v1334_v55 = vsub.f32 %v6093_v46, %v1320_v41 }
 0x4b7   : > { %v1341_v61 = vmul.f32 1.442695, %v1334_v55 }
 0x4b9   : > { %5414 = vpow2.f32 %v1341_v61  ;;  %v6140_v11 = vpop.eup %5412 }
 0x4ba   : > { %5416 = vpow2.f32 %v1343_v62  ;;  %v1351_v13 = vsel %vm1314_vm4, %v6140_v11, 0.0 }
 0x4c3   : > { %v6143_v12 = vpop.eup %5414 }
 0x4c4   : > { %v6147_v15 = vpop.eup %5416  ;;  %v1354_v16 = vsel %vm1314_vm4, %v6143_v12, 0.0 }
 0x4c5   : > { %v1357_v17 = vsel %vm1314_vm4, %v6147_v15, 0.0 }
 0x552   : > { %v6111_v18 = vpop.f32.mrb[16].mxu1 }
 0x553   : > { %v6113_v19 = vpop.f32.mrb[17].mxu1 }
 0x554   : > { %v5012_v23 = vpop.f32.mrb[18].mxu1 }
 0x555   : > { %v6115_v24 = vpop.f32.mrb[19].mxu1 }
 0x562   : > { %v5019_v25 = vpop.f32.mrb[20].mxu1 }
 0x563   : > { %v1650_v27 = vmul.f32 0.17677669, %v5019_v25  ;;  %v1562_v28 = vpop.f32.mrb[21].mxu1 }
 0x564   : > { %v1648_v21 = vmul.f32 0.17677669, %v1562_v28  ;;  %v5020_v31 = vpop.f32.mrb[22].mxu1 }
 0x565   : > { %v1565_v32 = vpop.f32.mrb[23].mxu1  ;;  %v1656_v33 = vsel %vm1170_vm3, %v1650_v27, -1e+30 }
 0x566   : > { %v1649_v34 = vmul.f32 0.17677669, %v1565_v32  ;;  %v1666_v35 = vsel %vm1314_vm4, %v1656_v33, -inf  ;;  %v1654_v36 = vsel %vm1170_vm3, %v1648_v21, -1e+30 }
 0x567   : > { %1667 = vmax.xlane.f32.xlu1 %v1666_v35  ;;  %v1660_v22 = vsel %vm1314_vm4, %v1654_v36, -inf }
 0x568   : > { %1661 = vmax.xlane.f32.xlu0 %v1660_v22  ;;  %v1655_v50 = vsel %vm1170_vm3, %v1649_v34, -1e+30 }
 0x569   : > { %v1663_v56 = vsel %vm1314_vm4, %v1655_v50, -inf }
 0x56c   : > { %1664 = vmax.xlane.f32.xlu0 %v1663_v56 }
 0x572   : > { %v5027_v53 = vpop.f32.mrb[24].mxu1 }
 0x573   : > { %v1634_v0 = vpop.f32.mrb[25].mxu1  ;;  %v1653_v29 = vmul.f32 0.17677669, %v5027_v53 }
 0x574   : > { %v1651_v1 = vmul.f32 0.17677669, %v1634_v0  ;;  %v5028_v2 = vpop.f32.mrb[26].mxu1 }
 0x575   : > { %v1637_v3 = vpop.f32.mrb[27].mxu1  ;;  %v1659_v9 = vsel %vm1170_vm3, %v1653_v29, -1e+30 }
 0x576   : > { %v1652_v4 = vmul.f32 0.17677669, %v1637_v3  ;;  %v1657_v46 = vsel %vm1170_vm3, %v1651_v1, -1e+30  ;;  %v1675_v38 = vsel %vm1314_vm4, %v1659_v9, -inf }
 0x577   : > { %v1669_v5 = vsel %vm1314_vm4, %v1657_v46, -inf }
 0x578   : > { %1670 = vmax.xlane.f32.xlu0 %v1669_v5  ;;  %v6134_v42 = vsel %vm1170_vm3, %v1652_v4, -1e+30 }
 0x579   : > { %v1672_v10 = vsel %vm1314_vm4, %v6134_v42, -inf }
 0x57a   : > { %1673 = vmax.xlane.f32.xlu1 %v1672_v10 }
 0x57c   : > { %1676 = vmax.xlane.f32.xlu0 %v1675_v38 }
 0x57e   : > { %1352 = vadd.xlane.f32.xlu1 %v1351_v13 }
 0x580   : > { %1355 = vadd.xlane.f32.xlu0 %v1354_v16 }
 0x582   : > { %1358 = vadd.xlane.f32.xlu1 %v1357_v17 }
 0x593   : > { %1734 = vrot.lane.b32.xlu1 %v6020_v47, %s5677_s21 }
 0x596   : > { %1732 = vrot.lane.b32.xlu0 %v5981_v7, %s5677_s21 }
 0x597   : > { %1796 = vrot.lane.b32.xlu1 %v6005_v40, %s5677_s21 }
 0x59b   : > { %1862 = vrot.lane.b32.xlu1 %v5983_v8, %s5678_s1 }
 0x59f   : > { %1864 = vrot.lane.b32.xlu1 %v5991_v20, %s5678_s1 }
 0x5f4   : > { %v1668_v23 = vpop.xlane.xlu1 %1667 }
 0x5f5   : > { %v1680_v25 = vsub.f32 %v1656_v33, %v1668_v23  ;;  %v1662_v26 = vpop.xlane.xlu0 %1661 }
 0x5f6   : > { %v1678_v27 = vsub.f32 %v1654_v36, %v1662_v26 }
 0x5f7   : > { %v1688_v28 = vmul.f32 1.442695, %v1680_v25 }
 0x5f8   : > { %v1684_v21 = vmul.f32 1.442695, %v1678_v27 }
 0x5f9   : > { %5418 = vpow2.f32 %v1688_v28  ;;  %v1665_v31 = vpop.xlane.xlu0 %1664 }
 0x5fa   : > { %v1679_v32 = vsub.f32 %v1655_v50, %v1665_v31  ;;  %5420 = vpow2.f32 %v1684_v21 }
 0x5fc   : > { %v1686_v34 = vmul.f32 1.442695, %v1679_v32 }
 0x5fe   : > { %5422 = vpow2.f32 %v1686_v34 }
 0x603   : > { %v6163_v35 = vpop.eup %5418 }
 0x604   : > { %v1702_v41 = vsel %vm1314_vm4, %v6163_v35, 0.0  ;;  %v6167_v22 = vpop.eup %5420 }
 0x605   : > { %v1671_v30 = vpop.xlane.xlu0 %1670  ;;  %1703 = vadd.xlane.f32.xlu0 %v1702_v41  ;;  %v1696_v50 = vsel %vm1314_vm4, %v6167_v22, 0.0 }
 0x606   : > { %v1681_v33 = vsub.f32 %v1657_v46, %v1671_v30 }
 0x607   : > { %v1674_v54 = vpop.xlane.xlu1 %1673 }
 0x608   : > { %v6169_v36 = vpop.eup %5422  ;;  %v1690_v55 = vmul.f32 1.442695, %v1681_v33 }
 0x609   : > { %v1677_v56 = vpop.xlane.xlu0 %1676  ;;  %1697 = vadd.xlane.f32.xlu0 %v1696_v50  ;;  %v1699_v60 = vsel %vm1314_vm4, %v6169_v36, 0.0 }
 0x60a   : > { %v1683_v52 = vsub.f32 %v1659_v9, %v1677_v56  ;;  %1700 = vadd.xlane.f32.xlu1 %v1699_v60  ;;  %5424 = vpow2.f32 %v1690_v55 }
 0x60b   : > { %v1353_v61 = vpop.xlane.xlu1 %1352 }
 0x60c   : > { %v1694_v62 = vmul.f32 1.442695, %v1683_v52  ;;  %5426 = vrcp.f32 %v1353_v61 }
 0x60d   : > { %v1356_v53 = vpop.xlane.xlu0 %1355 }
 0x60e   : > { %5428 = vpow2.f32 %v1694_v62 }
 0x60f   : > { %5430 = vrcp.f32 %v1356_v53  ;;  %v1359_v0 = vpop.xlane.xlu1 %1358 }
 0x610   : > { %5432 = vrcp.f32 %v1359_v0 }
 0x611   : > { %v1733_v29 = vpop.permute.xlu0 %1732 }
 0x612   : > { %5029 = vmatprep.subr.bf16.mxu0 %v1733_v29 }
 0x613   : > { %v1735_v1 = vpop.permute.xlu1 %1734 }
 0x614   : > { %v6175_v2 = vpop.eup %5424 }
 0x615   : > { %v1705_v23 = vsel %vm1314_vm4, %v6175_v2, 0.0 }
 0x616   : > { %v5427_v3 = vpop.eup %5426 }
 0x617   : > { %v1797_v4 = vpop.permute.xlu1 %1796  ;;  %v1375_v38 = vmul.f32 %v5427_v3, %v6140_v11  ;;  %v1744_v11 = vsel %vm1395_vm2, %v1735_v1, 0 }
 0x618   : > { %v6177_v46 = vpop.eup %5428  ;;  %5037 = vmatprep.subr.bf16.mxu1 %v1797_v4 }
 0x619   : > { %v5431_v5 = vpop.eup %5430  ;;  %5038 = vmatpush3.bf16.msra.mxu1 %v1797_v4  ;;  %v1711_v9 = vsel %vm1314_vm4, %v6177_v46, 0.0 }
 0x61a   : > { %v5433_v10 = vpop.eup %5432  ;;  %1712 = vadd.xlane.f32.xlu1 %v1711_v9  ;;  %v1376_v13 = vmul.f32 %v5431_v5, %v6143_v12 }
 0x61b   : > { %v1377_v16 = vmul.f32 %v5433_v10, %v6147_v15  ;;  %v1863_v12 = vpop.permute.xlu1 %1862  ;;  %v1682_v15 = vsub.f32 %v6134_v42, %v1674_v54 }
 0x61c   : > { %v1381_v17 = vpack.c.bf16 %v1376_v13, %v1375_v38  ;;  %v1873_v62 = vsel %vm1179_vm1, %v1863_v12, 0 }
 0x61d   : > { %v1382_v25 = vpack.c.bf16 %v1377_v16, %v1377_v16  ;;  %v1692_v26 = vmul.f32 1.442695, %v1682_v15 }
 0x61e   : > { %5001 = vmatprep.mubr.msk.bf16.mxu0 %vm1314_vm4, %v1381_v17  ;;  %1706 = vadd.xlane.f32.xlu1 %v1705_v23 }
 0x61f   : > { %1798 = vrot.lane.b32.xlu0 %v6038_v58, %s5677_s21  ;;  %5002 = vmatmul.mubr.msk.bf16.vlgmr.msra.gmra.mrb[16].mxu0 %vm1314_vm4, %v1382_v25  ;;  %5434 = vpow2.f32 %v1692_v26  ;;  %v1865_v21 = vpop.permute.xlu1 %1864 }
 0x620   : > { %5030 = vmatpush3.bf16.msra.mxu0 %v1733_v29 }
 0x621   : > { %5167 = vmatprep.subr.msk.bf16.mxu0 %vm1395_vm2, %v1735_v1 }
 0x624   : > { %5032 = vmatpush3.bf16.msra.mxu0 %v1744_v11 }
 0x625   : > { %5169 = vmatprep.subr.msk.bf16.mxu0 %vm1179_vm1, %v1863_v12 }
 0x629   : > { %v5435_v27 = vpop.eup %5434 }
 0x62a   : > { %v1708_v28 = vsel %vm1314_vm4, %v5435_v27, 0.0 }
 0x62f   : > { %1858 = vrot.lane.b32.xlu1 %v5979_v6, %s5678_s1 }
 0x633   : > { %1932 = vrot.lane.b32.xlu1 %v6014_v45, %s5678_s1 }
 0x637   : > { %1928 = vrot.lane.b32.xlu1 %v6036_v57, %s5678_s1 }
 0x63e   : > { %1709 = vadd.xlane.f32.xlu0 %v1708_v28 }
 0x654   : > { %1930 = vrot.lane.b32.xlu0 %v6008_v43, %s5678_s1 }
 0x658   : > { %1860 = vrot.lane.b32.xlu0 %v6012_v44, %s5678_s1 }
 0x65c   : > { %1926 = vrot.lane.b32.xlu0 %v6003_v39, %s5678_s1 }
 0x692   : > { %v1704_v42 = vpop.xlane.xlu0 %1703 }
 0x693   : > { %5436 = vrcp.f32 %v1704_v42 }
 0x696   : > { %v1698_v31 = vpop.xlane.xlu0 %1697 }
 0x697   : > { %5438 = vrcp.f32 %v1698_v31  ;;  %v1701_v32 = vpop.xlane.xlu1 %1700 }
 0x698   : > { %5440 = vrcp.f32 %v1701_v32 }
 0x69a   : > { %v1799_v34 = vpop.permute.xlu0 %1798 }
 0x69b   : > { %v1808_v41 = vsel %vm1395_vm2, %v1799_v34, 0  ;;  %5168 = vmatprep.subr.msk.bf16.mxu1 %vm1395_vm2, %v1799_v34 }
 0x69c   : > { %5040 = vmatpush3.bf16.msra.mxu1 %v1808_v41 }
 0x69d   : > { %v5437_v30 = vpop.eup %5436 }
 0x69e   : > { %v1722_v55 = vmul.f32 %v5437_v30, %v6163_v35  ;;  %v1876_v35 = vsel %vm1179_vm1, %v1865_v21, 0 }
 0x6a0   : > { %v1727_v52 = vpack.c.bf16 %v1722_v55, %v1722_v55 }
 0x6a1   : > { %v5439_v33 = vpop.eup %5438 }
 0x6a2   : > { %v5441_v54 = vpop.eup %5440  ;;  %v1720_v50 = vmul.f32 %v5439_v33, %v6167_v22 }
 0x6a3   : > { %v1721_v56 = vmul.f32 %v5441_v54, %v6169_v36 }
 0x6a5   : > { %v1726_v60 = vpack.c.bf16 %v1721_v56, %v1720_v50 }
 0x6a7   : > { %5033 = vmatprep.mubr.msk.bf16.mxu0 %vm1314_vm4, %v1726_v60  ;;  %v1713_v61 = vpop.xlane.xlu1 %1712 }
 0x6a8   : > { %5034 = vmatmul.mubr.msk.bf16.vlgmr.msra.gmra.mrb[20].mxu0 %vm1314_vm4, %v1727_v52  ;;  %5442 = vrcp.f32 %v1713_v61 }
 0x6a9   : > { %5046 = vmatpush3.bf16.xpose.msra.mxu0 %v1873_v62 }
 0x6aa   : > { %5170 = vmatprep.subr.msk.bf16.mxu0 %vm1179_vm1, %v1865_v21 }
 0x6ab   : > { %v1707_v53 = vpop.xlane.xlu1 %1706 }
 0x6ac   : > { %5444 = vrcp.f32 %v1707_v53 }
 0x6af   : > { %v1859_v0 = vpop.permute.xlu1 %1858 }
 0x6b0   : > { %5049 = vmatprep.mubr.msk.bf16.mxu0 %vm1179_vm1, %v1859_v0 }
 0x6b1   : > { %5048 = vmatpush3.bf16.xpose.msra.mxu0 %v1876_v35 }
 0x6b2   : > { %v5443_v29 = vpop.eup %5442 }
 0x6b3   : > { %v1725_v5 = vmul.f32 %v5443_v29, %v6177_v46  ;;  %v1933_v23 = vpop.permute.xlu1 %1932 }
 0x6b4   : > { %v1944_v46 = vsel %vm1179_vm1, %v1933_v23, 0 }
 0x6b5   : > { %v1729_v13 = vpack.c.bf16 %v1725_v5, %v1725_v5 }
 0x6b6   : > { %v5445_v3 = vpop.eup %5444 }
 0x6b7   : > { %v1723_v9 = vmul.f32 %v5445_v3, %v6175_v2  ;;  %v1929_v2 = vpop.permute.xlu1 %1928 }
 0x6cb   : > { %v1710_v22 = vpop.xlane.xlu0 %1709 }
 0x6cc   : > { %5446 = vrcp.f32 %v1710_v22 }
 0x6cf   : > { %v1931_v36 = vpop.permute.xlu0 %1930 }
 0x6d0   : > { %5171 = vmatprep.subr.msk.bf16.mxu1 %vm1179_vm1, %v1931_v36  ;;  %v1941_v16 = vsel %vm1179_vm1, %v1931_v36, 0 }
 0x6d3   : > { %v1861_v1 = vpop.permute.xlu0 %1860 }
 0x6d4   : > { %5050 = vmatmul.mubr.msk.bf16.vlgmr.msra.gmra.mrb[24].mxu0 %vm1179_vm1, %v1861_v1 }
 0x6d6   : > { %v5447_v4 = vpop.eup %5446 }
 0x6d7   : > { %v1724_v10 = vmul.f32 %v5447_v4, %v5435_v27  ;;  %v1927_v17 = vpop.permute.xlu0 %1926 }
 0x6d9   : > { %v1728_v38 = vpack.c.bf16 %v1724_v10, %v1723_v9 }
 0x6db   : > { %5041 = vmatprep.mubr.msk.bf16.mxu1 %vm1314_vm4, %v1728_v38 }
 0x6dc   : > { %5042 = vmatmul.mubr.msk.bf16.vlgmr.msra.gmra.mrb[28].mxu1 %vm1314_vm4, %v1729_v13 }
 0x6dd   : > { %5054 = vmatpush3.bf16.xpose.msra.mxu1 %v1941_v16  ;;  %5057 = vmatprep.mubr.msk.bf16.mxu1 %vm1179_vm1, %v1927_v17 }
 0x6de   : > { %5172 = vmatprep.subr.msk.bf16.mxu1 %vm1179_vm1, %v1933_v23 }
 0x6e5   : > { %5056 = vmatpush3.bf16.xpose.msra.mxu1 %v1944_v46 }
 0x6ec   : > { %5058 = vmatmul.mubr.msk.bf16.vlgmr.msra.gmra.mrb[32].mxu1 %vm1179_vm1, %v1929_v2 }
 0x6f2   : > { %v6229_v25 = vpop.f32.mrb[16].mxu0 }
 0x6f3   : > { %v6231_v11 = vpop.f32.mrb[17].mxu0 }
 0x6f4   : > { %v5004_v12 = vpop.f32.mrb[18].mxu0 }
 0x6f5   : > { %v6233_v15 = vpop.f32.mrb[19].mxu0 }
 0x77b   : > { %v6235_v26 = vpop.f32.mrb[20].mxu0 }
 0x77c   : > { %v6237_v27 = vpop.f32.mrb[21].mxu0 }
 0x77d   : > { %v5036_v28 = vpop.f32.mrb[22].mxu0 }
 0x77e   : > { %v6239_v42 = vpop.f32.mrb[23].mxu0 }
 0x77f   : > { %v5223_v21 = vpack.i.bf16 %v6239_v42, %v6237_v27 }
 0x7a7   : > { %v5051_v31 = vpop.f32.mrb[24].mxu0 }
 0x7a8   : > { %v1912_v32 = vpop.f32.mrb[25].mxu0  ;;  %v1996_v34 = vmul.f32 0.17677669, %v5051_v31 }
 0x7a9   : > { %v1994_v41 = vmul.f32 0.17677669, %v1912_v32  ;;  %v5052_v30 = vpop.f32.mrb[26].mxu0 }
 0x7aa   : > { %v1915_v33 = vpop.f32.mrb[27].mxu0  ;;  %v2002_v60 = vsel %vm1170_vm3, %v1996_v34, -1e+30 }
 0x7ab   : > { %v1995_v54 = vmul.f32 0.17677669, %v1915_v33  ;;  %v2000_v55 = vsel %vm1170_vm3, %v1994_v41, -1e+30  ;;  %v2012_v53 = vsel %vm1314_vm4, %v2002_v60, -inf }
 0x7ac   : > { %v2006_v50 = vsel %vm1314_vm4, %v2000_v55, -inf }
 0x7ad   : > { %2007 = vmax.xlane.f32.xlu0 %v2006_v50  ;;  %v2001_v56 = vsel %vm1170_vm3, %v1995_v54, -1e+30 }
 0x7ae   : > { %v2009_v52 = vsel %vm1314_vm4, %v2001_v56, -inf }
 0x7af   : > { %v6251_v61 = vpop.f32.mrb[28].mxu1  ;;  %2010 = vmax.xlane.f32.xlu1 %v2009_v52 }
 0x7b0   : > { %v6253_v62 = vpop.f32.mrb[29].mxu1 }
 0x7b1   : > { %v5238_v0 = vpack.i.bf16 %v6253_v62, %v6235_v26  ;;  %v5044_v35 = vpop.f32.mrb[30].mxu1  ;;  %2013 = vmax.xlane.f32.xlu0 %v2012_v53 }
 0x7b2   : > { %v6258_v22 = vpop.f32.mrb[31].mxu1 }
 0x7b3   : > { %v5253_v36 = vpack.i.bf16 %v6251_v61, %v6258_v22 }
 0x7bf   : > { %v5059_v29 = vpop.f32.mrb[32].mxu1 }
 0x7c0   : > { %v1999_v1 = vmul.f32 0.17677669, %v5059_v29  ;;  %v1980_v3 = vpop.f32.mrb[33].mxu1 }
 0x7c1   : > { %v1997_v4 = vmul.f32 0.17677669, %v1980_v3  ;;  %v5060_v5 = vpop.f32.mrb[34].mxu1 }
 0x7c2   : > { %v1983_v9 = vpop.f32.mrb[35].mxu1  ;;  %v2005_v10 = vsel %vm1170_vm3, %v1999_v1, -1e+30 }
 0x7c3   : > { %v1998_v38 = vmul.f32 0.17677669, %v1983_v9  ;;  %v2021_v13 = vsel %vm1314_vm4, %v2005_v10, -inf  ;;  %v2003_v16 = vsel %vm1170_vm3, %v1997_v4, -1e+30 }
 0x7c4   : > { %2022 = vmax.xlane.f32.xlu1 %v2021_v13  ;;  %v2015_v17 = vsel %vm1314_vm4, %v2003_v16, -inf }
 0x7c5   : > { %2016 = vmax.xlane.f32.xlu0 %v2015_v17  ;;  %v2004_v23 = vsel %vm1170_vm3, %v1998_v38, -1e+30 }
 0x7c6   : > { %v2018_v46 = vsel %vm1314_vm4, %v2004_v23, -inf }
 0x7c9   : > { %2019 = vmax.xlane.f32.xlu0 %v2018_v46 }
 0x7d5   : > { %2078 = vrot.lane.b32.xlu1 %v6020_v47, %s5678_s1 }
 0x7d9   : > { %2138 = vrot.lane.b32.xlu1 %v6005_v40, %s5678_s1 }
 0x7dd   : > { %2204 = vrot.lane.b32.xlu1 %v5983_v8, %s5679_s20 }
 0x7df   : > { %2076 = vrot.lane.b32.xlu0 %v5981_v7, %s5678_s1 }
 0x7e1   : > { %2206 = vrot.lane.b32.xlu1 %v5991_v20, %s5679_s20 }
 0x83a   : > { %v2008_v2 = vpop.xlane.xlu0 %2007 }
 0x83b   : > { %v2024_v28 = vsub.f32 %v2000_v55, %v2008_v2 }
 0x83c   : > { %v2011_v12 = vpop.xlane.xlu1 %2010 }
 0x83d   : > { %v2025_v31 = vsub.f32 %v2001_v56, %v2011_v12  ;;  %v2030_v30 = vmul.f32 1.442695, %v2024_v28 }
 0x83e   : > { %v2014_v32 = vpop.xlane.xlu0 %2013 }
 0x83f   : > { %v2032_v34 = vmul.f32 1.442695, %v2025_v31  ;;  %v2026_v41 = vsub.f32 %v2002_v60, %v2014_v32 }
 0x841   : > { %5448 = vpow2.f32 %v2032_v34  ;;  %v2034_v33 = vmul.f32 1.442695, %v2026_v41 }
 0x843   : > { %5450 = vpow2.f32 %v2034_v33 }
 0x844   : > { %5452 = vpow2.f32 %v2030_v30 }
 0x84b   : > { %v6281_v54 = vpop.eup %5448 }
 0x84c   : > { %v2045_v8 = vsel %vm1314_vm4, %v6281_v54, 0.0 }
 0x84d   : > { %v5451_v50 = vpop.eup %5450  ;;  %2046 = vadd.xlane.f32.xlu1 %v2045_v8 }
 0x84e   : > { %v2048_v20 = vsel %vm1314_vm4, %v5451_v50, 0.0  ;;  %v5453_v52 = vpop.eup %5452 }
 0x84f   : > { %2049 = vadd.xlane.f32.xlu0 %v2048_v20  ;;  %v2042_v60 = vsel %vm1314_vm4, %v5453_v52, 0.0 }
 0x851   : > { %v2023_v55 = vpop.xlane.xlu1 %2022 }
 0x852   : > { %v2029_v56 = vsub.f32 %v2005_v10, %v2023_v55  ;;  %v2017_v53 = vpop.xlane.xlu0 %2016 }
 0x853   : > { %v2027_v35 = vsub.f32 %v2003_v16, %v2017_v53  ;;  %2043 = vadd.xlane.f32.xlu0 %v2042_v60 }
 0x854   : > { %v2040_v29 = vmul.f32 1.442695, %v2029_v56 }
 0x855   : > { %v2036_v1 = vmul.f32 1.442695, %v2027_v35  ;;  %v2079_v3 = vpop.permute.xlu1 %2078 }
 0x856   : > { %5454 = vpow2.f32 %v2040_v29  ;;  %v2020_v4 = vpop.xlane.xlu0 %2019  ;;  %v2088_v10 = vsel %vm1395_vm2, %v2079_v3, 0 }
 0x857   : > { %5456 = vpow2.f32 %v2036_v1  ;;  %v2028_v2 = vsub.f32 %v2004_v23, %v2020_v4 }
 0x859   : > { %v2139_v5 = vpop.permute.xlu1 %2138  ;;  %v2038_v12 = vmul.f32 1.442695, %v2028_v2 }
 0x85a   : > { %v2077_v9 = vpop.permute.xlu0 %2076  ;;  %5069 = vmatprep.subr.bf16.mxu1 %v2139_v5 }
 0x85b   : > { %5061 = vmatprep.subr.bf16.mxu0 %v2077_v9  ;;  %5070 = vmatpush3.bf16.msra.mxu1 %v2139_v5  ;;  %5458 = vpow2.f32 %v2038_v12 }
 0x85c   : > { %5062 = vmatpush3.bf16.msra.mxu0 %v2077_v9 }
 0x85d   : > { %5173 = vmatprep.subr.msk.bf16.mxu0 %vm1395_vm2, %v2079_v3  ;;  %v2205_v13 = vpop.permute.xlu1 %2204 }
 0x85e   : > { %v2215_v56 = vsel %vm1179_vm1, %v2205_v13, 0 }
 0x860   : > { %v6289_v38 = vpop.eup %5454  ;;  %5064 = vmatpush3.bf16.msra.mxu0 %v2088_v10 }
 0x861   : > { %5175 = vmatprep.subr.msk.bf16.mxu0 %vm1179_vm1, %v2205_v13  ;;  %v2057_v16 = vsel %vm1314_vm4, %v6289_v38, 0.0  ;;  %v5457_v17 = vpop.eup %5456 }
 0x862   : > { %2058 = vadd.xlane.f32.xlu1 %v2057_v16  ;;  %v2051_v46 = vsel %vm1314_vm4, %v5457_v17, 0.0 }
 0x865   : > { %v5459_v28 = vpop.eup %5458 }
 0x866   : > { %2052 = vadd.xlane.f32.xlu1 %v2051_v46  ;;  %v2054_v31 = vsel %vm1314_vm4, %v5459_v28, 0.0 }
 0x869   : > { %2140 = vrot.lane.b32.xlu0 %v6038_v58, %s5678_s1 }
 0x877   : > { %2200 = vrot.lane.b32.xlu1 %v5979_v6, %s5679_s20  ;;  %v2207_v6 = vpop.permute.xlu1 %2206 }
 0x87b   : > { %2274 = vrot.lane.b32.xlu1 %v6014_v45, %s5679_s20 }
 0x87f   : > { %2270 = vrot.lane.b32.xlu1 %v6036_v57, %s5679_s20 }
 0x888   : > { %2055 = vadd.xlane.f32.xlu0 %v2054_v31 }
 0x89e   : > { %2272 = vrot.lane.b32.xlu0 %v6008_v43, %s5679_s20 }
 0x8a2   : > { %2202 = vrot.lane.b32.xlu0 %v6012_v44, %s5679_s20 }
 0x8a6   : > { %2268 = vrot.lane.b32.xlu0 %v6003_v39, %s5679_s20 }
 0x8da   : > { %v2047_v23 = vpop.xlane.xlu1 %2046 }
 0x8dc   : > { %v2050_v32 = vpop.xlane.xlu0 %2049 }
 0x8dd   : > { %5460 = vrcp.f32 %v2050_v32 }
 0x8de   : > { %5462 = vrcp.f32 %v2047_v23 }
 0x8e0   : > { %v2044_v45 = vpop.xlane.xlu0 %2043 }
 0x8e1   : > { %5464 = vrcp.f32 %v2044_v45 }
 0x8e4   : > { %v2141_v57 = vpop.permute.xlu0 %2140 }
 0x8e5   : > { %v2150_v34 = vsel %vm1395_vm2, %v2141_v57, 0  ;;  %5174 = vmatprep.subr.msk.bf16.mxu1 %vm1395_vm2, %v2141_v57 }
 0x8e6   : > { %5072 = vmatpush3.bf16.msra.mxu1 %v2150_v34 }
 0x8e7   : > { %v5461_v43 = vpop.eup %5460 }
 0x8e8   : > { %v5463_v41 = vpop.eup %5462  ;;  %v2068_v44 = vmul.f32 %v5461_v43, %v5451_v50  ;;  %v2218_v50 = vsel %vm1179_vm1, %v2207_v6, 0 }
 0x8e9   : > { %v2067_v39 = vmul.f32 %v5463_v41, %v6281_v54 }
 0x8ea   : > { %v2073_v55 = vpack.c.bf16 %v2068_v44, %v2068_v44 }
 0x8eb   : > { %v5465_v30 = vpop.eup %5464 }
 0x8ec   : > { %v2066_v33 = vmul.f32 %v5465_v30, %v5453_v52 }
 0x8ee   : > { %v2072_v8 = vpack.c.bf16 %v2067_v39, %v2066_v33 }
 0x8ef   : > { %v2059_v20 = vpop.xlane.xlu1 %2058 }
 0x8f0   : > { %5065 = vmatprep.mubr.msk.bf16.mxu0 %vm1314_vm4, %v2072_v8  ;;  %5466 = vrcp.f32 %v2059_v20 }
 0x8f1   : > { %5066 = vmatmul.mubr.msk.bf16.vlgmr.msra.gmra.mrb[28].mxu0 %vm1314_vm4, %v2073_v55 }
 0x8f2   : > { %5078 = vmatpush3.bf16.xpose.msra.mxu0 %v2215_v56 }
 0x8f3   : > { %5176 = vmatprep.subr.msk.bf16.mxu0 %vm1179_vm1, %v2207_v6  ;;  %v2053_v53 = vpop.xlane.xlu1 %2052 }
 0x8f4   : > { %5468 = vrcp.f32 %v2053_v53 }
 0x8f7   : > { %v2201_v60 = vpop.permute.xlu1 %2200 }
 0x8f8   : > { %5081 = vmatprep.mubr.msk.bf16.mxu0 %vm1179_vm1, %v2201_v60 }
 0x8fa   : > { %5080 = vmatpush3.bf16.xpose.msra.mxu0 %v2218_v50  ;;  %v5467_v35 = vpop.eup %5466 }
 0x8fb   : > { %v2071_v4 = vmul.f32 %v5467_v35, %v6289_v38  ;;  %v2275_v2 = vpop.permute.xlu1 %2274 }
 0x8fc   : > { %v2286_v12 = vsel %vm1179_vm1, %v2275_v2, 0 }
 0x8fd   : > { %v2075_v13 = vpack.c.bf16 %v2071_v4, %v2071_v4 }
 0x8fe   : > { %v5469_v1 = vpop.eup %5468 }
 0x8ff   : > { %v2069_v5 = vmul.f32 %v5469_v1, %v5457_v17  ;;  %v2271_v38 = vpop.permute.xlu1 %2270 }
 0x915   : > { %v2056_v54 = vpop.xlane.xlu0 %2055 }
 0x916   : > { %5470 = vrcp.f32 %v2056_v54 }
 0x919   : > { %v2273_v52 = vpop.permute.xlu0 %2272 }
 0x91a   : > { %5177 = vmatprep.subr.msk.bf16.mxu1 %vm1179_vm1, %v2273_v52  ;;  %v2283_v16 = vsel %vm1179_vm1, %v2273_v52, 0 }
 0x91d   : > { %v2203_v29 = vpop.permute.xlu0 %2202 }
 0x91e   : > { %5082 = vmatmul.mubr.msk.bf16.vlgmr.msra.gmra.mrb[32].mxu0 %vm1179_vm1, %v2203_v29 }
 0x920   : > { %v5471_v3 = vpop.eup %5470 }
 0x921   : > { %v2070_v9 = vmul.f32 %v5471_v3, %v5459_v28  ;;  %v2269_v46 = vpop.permute.xlu0 %2268 }
 0x923   : > { %v2074_v10 = vpack.c.bf16 %v2070_v9, %v2069_v5 }
 0x925   : > { %5073 = vmatprep.mubr.msk.bf16.mxu1 %vm1314_vm4, %v2074_v10 }
 0x926   : > { %5074 = vmatmul.mubr.msk.bf16.vlgmr.msra.gmra.mrb[36].mxu1 %vm1314_vm4, %v2075_v13 }
 0x927   : > { %5086 = vmatpush3.bf16.xpose.msra.mxu1 %v2283_v16  ;;  %5089 = vmatprep.mubr.msk.bf16.mxu1 %vm1179_vm1, %v2269_v46 }
 0x928   : > { %5178 = vmatprep.subr.msk.bf16.mxu1 %vm1179_vm1, %v2275_v2 }
 0x92f   : > { %5088 = vmatpush3.bf16.xpose.msra.mxu1 %v2286_v12 }
 0x936   : > { %5090 = vmatmul.mubr.msk.bf16.vlgmr.msra.gmra.mrb[40].mxu1 %vm1179_vm1, %v2271_v38 }
 0x9c4   : > { %v6329_v17 = vpop.f32.mrb[28].mxu0 }
 0x9c5   : > { %v6331_v28 = vpop.f32.mrb[29].mxu0 }
 0x9c6   : > { %v5068_v31 = vpop.f32.mrb[30].mxu0 }
 0x9c7   : > { %v6333_v6 = vpop.f32.mrb[31].mxu0 }
 0x9c8   : > { %v5228_v23 = vpack.i.bf16 %v6333_v6, %v6331_v28 }
 0x9f1   : > { %v5083_v32 = vpop.f32.mrb[32].mxu0 }
 0x9f2   : > { %v2254_v45 = vpop.f32.mrb[33].mxu0  ;;  %v2338_v57 = vmul.f32 0.17677669, %v5083_v32 }
 0x9f3   : > { %v2336_v34 = vmul.f32 0.17677669, %v2254_v45  ;;  %v5084_v43 = vpop.f32.mrb[34].mxu0 }
 0x9f4   : > { %v2257_v41 = vpop.f32.mrb[35].mxu0  ;;  %v2344_v8 = vsel %vm1170_vm3, %v2338_v57, -1e+30 }
 0x9f5   : > { %v2337_v30 = vmul.f32 0.17677669, %v2257_v41  ;;  %v2342_v44 = vsel %vm1170_vm3, %v2336_v34, -1e+30  ;;  %v2354_v53 = vsel %vm1314_vm4, %v2344_v8, -inf }
 0x9f6   : > { %v2348_v33 = vsel %vm1314_vm4, %v2342_v44, -inf }
 0x9f7   : > { %2349 = vmax.xlane.f32.xlu0 %v2348_v33  ;;  %v2343_v39 = vsel %vm1170_vm3, %v2337_v30, -1e+30 }
 0x9f8   : > { %v2351_v20 = vsel %vm1314_vm4, %v2343_v39, -inf }
 0x9f9   : > { %v6345_v55 = vpop.f32.mrb[36].mxu1  ;;  %2352 = vmax.xlane.f32.xlu1 %v2351_v20 }
 0x9fa   : > { %v6347_v56 = vpop.f32.mrb[37].mxu1 }
 0x9fb   : > { %v5243_v60 = vpack.i.bf16 %v6347_v56, %v6329_v17  ;;  %v5076_v50 = vpop.f32.mrb[38].mxu1  ;;  %2355 = vmax.xlane.f32.xlu0 %v2354_v53 }
 0x9fc   : > { %v6352_v54 = vpop.f32.mrb[39].mxu1 }
 0x9fd   : > { %v5258_v52 = vpack.i.bf16 %v6345_v55, %v6352_v54 }
 0xa09   : > { %v5091_v35 = vpop.f32.mrb[40].mxu1 }
 0xa0a   : > { %v2341_v29 = vmul.f32 0.17677669, %v5091_v35  ;;  %v2322_v1 = vpop.f32.mrb[41].mxu1 }
 0xa0b   : > { %v2339_v3 = vmul.f32 0.17677669, %v2322_v1  ;;  %v5092_v4 = vpop.f32.mrb[42].mxu1 }
 0xa0c   : > { %v2325_v5 = vpop.f32.mrb[43].mxu1  ;;  %v2347_v9 = vsel %vm1170_vm3, %v2341_v29, -1e+30 }
 0xa0d   : > { %v2340_v10 = vmul.f32 0.17677669, %v2325_v5  ;;  %v2363_v13 = vsel %vm1314_vm4, %v2347_v9, -inf  ;;  %v2345_v16 = vsel %vm1170_vm3, %v2339_v3, -1e+30 }
 0xa0e   : > { %2364 = vmax.xlane.f32.xlu1 %v2363_v13  ;;  %v2357_v46 = vsel %vm1314_vm4, %v2345_v16, -inf }
 0xa0f   : > { %2358 = vmax.xlane.f32.xlu0 %v2357_v46  ;;  %v2346_v2 = vsel %vm1170_vm3, %v2340_v10, -1e+30 }
 0xa10   : > { %v2360_v12 = vsel %vm1314_vm4, %v2346_v2, -inf }
 0xa13   : > { %2361 = vmax.xlane.f32.xlu0 %v2360_v12 }
 0xa84   : > { %v2350_v38 = vpop.xlane.xlu0 %2349 }
 0xa85   : > { %v2366_v32 = vsub.f32 %v2342_v44, %v2350_v38 }
 0xa86   : > { %v2353_v31 = vpop.xlane.xlu1 %2352 }
 0xa87   : > { %v2367_v45 = vsub.f32 %v2343_v39, %v2353_v31  ;;  %v2372_v41 = vmul.f32 1.442695, %v2366_v32 }
 0xa88   : > { %v2356_v57 = vpop.xlane.xlu0 %2355 }
 0xa89   : > { %v2374_v34 = vmul.f32 1.442695, %v2367_v45  ;;  %v2368_v43 = vsub.f32 %v2344_v8, %v2356_v57 }
 0xa8b   : > { %5472 = vpow2.f32 %v2374_v34  ;;  %v2376_v30 = vmul.f32 1.442695, %v2368_v43 }
 0xa8d   : > { %5474 = vpow2.f32 %v2376_v30 }
 0xa8e   : > { %5476 = vpow2.f32 %v2372_v41 }
 0xa95   : > { %v5473_v33 = vpop.eup %5472 }
 0xa96   : > { %v2387_v20 = vsel %vm1314_vm4, %v5473_v33, 0.0 }
 0xa97   : > { %v5475_v63 = vpop.eup %5474  ;;  %2388 = vadd.xlane.f32.xlu1 %v2387_v20 }
 0xa98   : > { %v2390_v53 = vsel %vm1314_vm4, %v5475_v63, 0.0  ;;  %v5477_v50 = vpop.eup %5476 }
 0xa99   : > { %2391 = vadd.xlane.f32.xlu0 %v2390_v53  ;;  %v2384_v29 = vsel %vm1314_vm4, %v5477_v50, 0.0 }
 0xa9b   : > { %v2365_v35 = vpop.xlane.xlu1 %2364 }
 0xa9c   : > { %v2371_v44 = vsub.f32 %v2347_v9, %v2365_v35  ;;  %v2359_v39 = vpop.xlane.xlu0 %2358 }
 0xa9d   : > { %v2369_v8 = vsub.f32 %v2345_v16, %v2359_v39  ;;  %2385 = vadd.xlane.f32.xlu0 %v2384_v29  ;;  %v5301_v39 = vld [vmem:[%s5813_s30 + $0x8] sm:$0xff]   ;;  %v5302_v29 = vld [vmem:[%s5813_s30 + $0x10] sm:$0xff]  }
 0xa9e   : > { %v2382_v1 = vmul.f32 1.442695, %v2371_v44  ;;  %v5300_v44 = vld [vmem:[%s5813_s30] sm:$0xff]  }
 0xa9f   : > { %v2378_v3 = vmul.f32 1.442695, %v2369_v8  ;;  %v5303_v8 = vld [vmem:[%s5813_s30 + $0x18] sm:$0xff]  }
 0xaa0   : > { %5478 = vpow2.f32 %v2382_v1  ;;  %v2362_v4 = vpop.xlane.xlu0 %2361  ;;  %v5304_v1 = vld [vmem:[%s5813_s30 + $0x20] sm:$0xff]  }
 0xaa1   : > { %v2370_v5 = vsub.f32 %v2346_v2, %v2362_v4  ;;  %5480 = vpow2.f32 %v2378_v3  ;;  %v5305_v3 = vld [vmem:[%s5813_s30 + $0x28] sm:$0xff]   ;;  %v5306_v4 = vld [vmem:[%s5813_s30 + $0x30] sm:$0xff]  }
 0xaa3   : > { %v2380_v10 = vmul.f32 1.442695, %v2370_v5  ;;  %v5307_v5 = vld [vmem:[%s5813_s30 + $0x38] sm:$0xff]  }
 0xaa5   : > { %5482 = vpow2.f32 %v2380_v10 }
 0xaaa   : > { %v5479_v13 = vpop.eup %5478 }
 0xaab   : > { %v2399_v46 = vsel %vm1314_vm4, %v5479_v13, 0.0  ;;  %v5481_v12 = vpop.eup %5480 }
 0xaac   : > { %2400 = vadd.xlane.f32.xlu1 %v2399_v46  ;;  %v2393_v9 = vsel %vm1314_vm4, %v5481_v12, 0.0 }
 0xaaf   : > { %v5483_v38 = vpop.eup %5482 }
 0xab0   : > { %2394 = vadd.xlane.f32.xlu1 %v2393_v9  ;;  %v2396_v16 = vsel %vm1314_vm4, %v5483_v38, 0.0 }
 0xab1   : > { %2397 = vadd.xlane.f32.xlu0 %v2396_v16 }
 0xac1   : > { %2420 = vrot.lane.b32.xlu1 %v6020_v47, %s5679_s20 }
 0xac5   : > { %2480 = vrot.lane.b32.xlu1 %v6005_v40, %s5679_s20 }
 0xac7   : > { %2418 = vrot.lane.b32.xlu0 %v5981_v7, %s5679_s20 }
 0xac9   : > { %2482 = vrot.lane.b32.xlu1 %v6038_v58, %s5679_s20 }
 0xacb   : > { %5224 = vrot.lane.b32.xlu0 %v5223_v21, %s5679_s20 }
 0xacd   : > { %5229 = vrot.lane.b32.xlu1 %v5228_v23, %s5678_s1 }
 0xad1   : > { %5239 = vrot.lane.b32.xlu1 %v5238_v0, %s5679_s20 }
 0xb24   : > { %v2389_v40 = vpop.xlane.xlu1 %2388 }
 0xb25   : > { %5484 = vrcp.f32 %v2389_v40 }
 0xb26   : > { %v2392_v7 = vpop.xlane.xlu0 %2391 }
 0xb2a   : > { %v2386_v47 = vpop.xlane.xlu0 %2385 }
 0xb2b   : > { %5486 = vrcp.f32 %v2386_v47 }
 0xb2c   : > { %5488 = vrcp.f32 %v2392_v7 }
 0xb2f   : > { %v5485_v58 = vpop.eup %5484 }
 0xb30   : > { %v2409_v27 = vmul.f32 %v5485_v58, %v5473_v33 }
 0xb35   : > { %v5487_v2 = vpop.eup %5486 }
 0xb36   : > { %v2408_v31 = vmul.f32 %v5487_v2, %v5477_v50  ;;  %v5489_v62 = vpop.eup %5488 }
 0xb37   : > { %v2410_v23 = vmul.f32 %v5489_v62, %v5475_v63 }
 0xb38   : > { %v2414_v42 = vpack.c.bf16 %v2409_v27, %v2408_v31 }
 0xb39   : > { %v2401_v21 = vpop.xlane.xlu1 %2400  ;;  %v2415_v33 = vpack.c.bf16 %v2410_v23, %v2410_v23 }
 0xb3a   : > { %5097 = vmatprep.mubr.msk.bf16.mxu0 %vm1314_vm4, %v2414_v42  ;;  %5490 = vrcp.f32 %v2401_v21 }
 0xb3d   : > { %v2395_v28 = vpop.xlane.xlu1 %2394 }
 0xb3e   : > { %5492 = vrcp.f32 %v2395_v28  ;;  %v2398_v6 = vpop.xlane.xlu0 %2397 }
 0xb3f   : > { %5494 = vrcp.f32 %v2398_v6 }
 0xb41   : > { %v2421_v26 = vpop.permute.xlu1 %2420 }
 0xb42   : > { %v2419_v0 = vpop.permute.xlu0 %2418  ;;  %v2430_v57 = vsel %vm1395_vm2, %v2421_v26, 0 }
 0xb43   : > { %5093 = vmatprep.subr.bf16.mxu0 %v2419_v0 }
 0xb44   : > { %5094 = vmatpush3.bf16.msra.mxu0 %v2419_v0  ;;  %v5491_v45 = vpop.eup %5490 }
 0xb45   : > { %5179 = vmatprep.subr.msk.bf16.mxu0 %vm1395_vm2, %v2421_v26  ;;  %v2481_v32 = vpop.permute.xlu1 %2480  ;;  %v2413_v41 = vmul.f32 %v5491_v45, %v5479_v13 }
 0xb46   : > { %5101 = vmatprep.subr.bf16.mxu1 %v2481_v32  ;;  %v5225_v31 = vpop.permute.xlu0 %5224 }
 0xb47   : > { %5102 = vmatpush3.bf16.msra.mxu1 %v2481_v32  ;;  %v2417_v35 = vpack.c.bf16 %v2413_v41, %v2413_v41  ;;  %v5227_v27 = vunpack.i.h.bf16 %v5225_v31  ;;  %v5226_v42 = vunpack.i.l.bf16 %v5225_v31 }
 0xb48   : > { %v5493_v34 = vpop.eup %5492  ;;  %5096 = vmatpush3.bf16.msra.mxu0 %v2430_v57 }
 0xb49   : > { %v5495_v43 = vpop.eup %5494  ;;  %v2483_v30 = vpop.permute.xlu1 %2482  ;;  %v2411_v20 = vmul.f32 %v5493_v34, %v5481_v12  ;;  %5109 = vmatprep.subr.bf16.mxu0 %v5674_v14  ;;  %v2615_v55 = vsel %vm1179_vm1, %v6233_v15, %v5227_v27 }
 0xb4a   : > { %v2492_v63 = vsel %vm1395_vm2, %v2483_v30, 0  ;;  %5180 = vmatprep.subr.msk.bf16.mxu1 %vm1395_vm2, %v2483_v30  ;;  %v2412_v53 = vmul.f32 %v5495_v43, %v5483_v38 }
 0xb4b   : > { %5098 = vmatmul.mubr.msk.bf16.vlgmr.msra.gmra.mrb[36].mxu0 %vm1314_vm4, %v2415_v33  ;;  %5104 = vmatpush3.bf16.msra.mxu1 %v2492_v63 }
 0xb4c   : > { %v2416_v50 = vpack.c.bf16 %v2412_v53, %v2411_v20  ;;  %5125 = vmatprep.mubr.msk.bf16.mxu0 %vm5676_vm0, %v5674_v14  ;;  %5110 = vmatpush3.bf16.msra.mxu0 %v5300_v44 }
 0xb4d   : > { %5111 = vmatprep.subr.bf16.mxu0 %v5674_v14  ;;  %v5230_v2 = vpop.permute.xlu1 %5229 }
 0xb4e   : > { %5105 = vmatprep.mubr.msk.bf16.mxu1 %vm1314_vm4, %v2416_v50  ;;  %v5232_v21 = vunpack.i.h.bf16 %v5230_v2  ;;  %v5231_v28 = vunpack.i.l.bf16 %v5230_v2 }
 0xb4f   : > { %5106 = vmatmul.mubr.msk.bf16.vlgmr.msra.gmra.mrb[44].mxu1 %vm1314_vm4, %v2417_v35 }
 0xb50   : > { %3112 = vmatprep.mubr.bf16.mxu1 %v5675_v59  ;;  %5112 = vmatpush3.bf16.msra.mxu0 %v5301_v39 }
 0xb51   : > { %5113 = vmatprep.subr.bf16.mxu0 %v5674_v14  ;;  %v5240_v17 = vpop.permute.xlu1 %5239 }
 0xb52   : > { %v5241_v6 = vunpack.i.l.bf16 %v5240_v17 }
 0xb54   : > { %5114 = vmatpush3.bf16.msra.mxu0 %v5302_v29  ;;  %v2616_v57 = vsel %vm1179_vm1, %v6229_v25, %v5241_v6 }
 0xb55   : > { %5115 = vmatprep.subr.bf16.mxu0 %v5674_v14 }
 0xb58   : > { %5116 = vmatpush3.bf16.msra.mxu0 %v5303_v8 }
 0xb59   : > { %5117 = vmatprep.subr.bf16.mxu0 %v5674_v14 }
 0xb5c   : > { %5118 = vmatpush3.bf16.msra.mxu0 %v5304_v1 }
 0xb5d   : > { %5119 = vmatprep.subr.bf16.mxu0 %v5674_v14 }
 0xb60   : > { %5120 = vmatpush3.bf16.msra.mxu0 %v5305_v3 }
 0xb61   : > { %5121 = vmatprep.subr.bf16.mxu0 %v5674_v14 }
 0xb64   : > { %5122 = vmatpush3.bf16.msra.mxu0 %v5306_v4 }
 0xb65   : > { %5123 = vmatprep.subr.bf16.mxu0 %v5674_v14 }
 0xb68   : > { %5124 = vmatpush3.bf16.msra.mxu0 %v5307_v5 }
 0xc1e   : > { %v5099_v10 = vpop.f32.mrb[36].mxu0 }
 0xc1f   : > { %v2466_v13 = vpop.f32.mrb[37].mxu0 }
 0xc20   : > { %v5100_v46 = vpop.f32.mrb[38].mxu0 }
 0xc21   : > { %v2469_v12 = vpop.f32.mrb[39].mxu0 }
 0xc22   : > { %v5233_v38 = vpack.i.bf16 %v2469_v12, %v2466_v13  ;;  %v5107_v9 = vpop.f32.mrb[44].mxu1 }
 0xc23   : > { %v2528_v16 = vpop.f32.mrb[45].mxu1 }
 0xc24   : > { %v5248_v40 = vpack.i.bf16 %v2528_v16, %v5099_v10  ;;  %5234 = vrot.lane.b32.xlu0 %v5233_v38, %s5677_s21  ;;  %v5108_v7 = vpop.f32.mrb[46].mxu1  ;;  %v5604_v16 = vld [vmem:[#allocation2] sm:$0xff] }
 0xc25   : > { %v2531_v47 = vpop.f32.mrb[47].mxu1 }
 0xc26   : > { %v5263_v58 = vpack.i.bf16 %v5107_v9, %v2531_v47  ;;  %5249 = vrot.lane.b32.xlu1 %v5248_v40, %s5677_s21  ;;  %v5605_v47 = vld [vmem:[#allocation2 + $0x8] sm:$0xff] }
 0xc28   : > { %5244 = vrot.lane.b32.xlu0 %v5243_v60, %s5678_s1  ;;  %v2614_v60 = vsel %vm1179_vm1, %v6231_v11, %v5226_v42 }
 0xc29   : > { %v2621_v54 = vsel %vm2620_vm5, %v2614_v60, %v5231_v28 }
 0xc2a   : > { %5259 = vrot.lane.b32.xlu1 %v5258_v52, %s5678_s1  ;;  %v5242_v52 = vunpack.i.h.bf16 %v5240_v17 }
 0xc2c   : > { %5254 = vrot.lane.b32.xlu0 %v5253_v36, %s5679_s20  ;;  %v2622_v36 = vsel %vm2620_vm5, %v2615_v55, %v5232_v21  ;;  %v2617_v11 = vsel %vm1179_vm1, %v6113_v19, %v5242_v52  ;;  %v5606_v21 = vld [vmem:[#allocation2 + $0x10] sm:$0xff]  ;;  %v5607_v55 = vld [vmem:[#allocation2 + $0x18] sm:$0xff]  ;;  %v5608_v52 = vld [vmem:[#allocation2 + $0x20] sm:$0xff] }
 0xc30   : > { %5264 = vrot.lane.b32.xlu0 %v5263_v58, %s5677_s21 }
 0xc96   : > { %v5235_v56 = vpop.permute.xlu0 %5234 }
 0xc97   : > { %v5237_v61 = vunpack.i.h.bf16 %v5235_v56  ;;  %v5236_v22 = vunpack.i.l.bf16 %v5235_v56 }
 0xc98   : > { %v5250_v0 = vpop.permute.xlu1 %5249 }
 0xc99   : > { %v2628_v26 = vsel %vm2627_vm6, %v2621_v54, %v5236_v22  ;;  %v2629_v62 = vsel %vm2627_vm6, %v2622_v36, %v5237_v61  ;;  %v5252_v34 = vunpack.i.h.bf16 %v5250_v0  ;;  %v5251_v43 = vunpack.i.l.bf16 %v5250_v0  ;;  %v5609_v0 = vld [vmem:[#allocation2 + $0x28] sm:$0xff] }
 0xc9a   : > { %v2634_v23 = vpack.c.bf16 %v2629_v62, %v2628_v26  ;;  %v5245_v32 = vpop.permute.xlu0 %5244 }
 0xc9b   : > { %v5247_v45 = vunpack.i.h.bf16 %v5245_v32  ;;  %v5246_v15 = vunpack.i.l.bf16 %v5245_v32  ;;  %v5308_v32 = vld [vmem:[%s5841_s3] ss:$16 sps:$4 sm:$0xff]  }
 0xc9c   : > { %5126 = vmatmul.mubr.bf16.vlgmr.msra.gmra.mrb[40].mxu0 %v2634_v23  ;;  %v5260_v53 = vpop.permute.xlu1 %5259 }
 0xc9d   : > { %v2623_v41 = vsel %vm2620_vm5, %v2616_v57, %v5246_v15  ;;  %v2624_v30 = vsel %vm2620_vm5, %v2617_v11, %v5247_v45  ;;  %5129 = vmatprep.mubr.msk.bf16.mxu0 %vm5676_vm0, %v5674_v14  ;;  %v5262_v39 = vunpack.i.h.bf16 %v5260_v53  ;;  %v5261_v29 = vunpack.i.l.bf16 %v5260_v53  ;;  %v5310_v45 = vld [vmem:[%s5841_s3 + $0x4] ss:$16 sps:$4 sm:$0xff]   ;;  %v5311_v15 = vld [vmem:[%s5841_s3 + $0x8] ss:$16 sps:$4 sm:$0xff]   ;;  %v5313_v11 = vld [vmem:[%s5841_s3 + $0xc] ss:$16 sps:$4 sm:$0xff]  }
 0xc9e   : > { %v5255_v33 = vpop.permute.xlu0 %5254  ;;  %v2630_v20 = vsel %vm2627_vm6, %v2623_v41, %v5251_v43  ;;  %v2631_v63 = vsel %vm2627_vm6, %v2624_v30, %v5252_v34  ;;  %v5316_v57 = vld [vmem:[%s5841_s3 + $0x24] ss:$16 sps:$4 sm:$0xff]   ;;  %3080 = vmatprep.subr.bf16.mxu1 %v5310_v45  ;;  %v5319_v34 = vld [vmem:[%s5841_s3 + $0x2c] ss:$16 sps:$4 sm:$0xff]   ;;  %3143 = vmatprep.subr.bf16.mxu0 %v5313_v11  ;;  %v5314_v43 = vld [vmem:[%s5841_s3 + $0x20] ss:$16 sps:$4 sm:$0xff]  }
 0xc9f   : > { %v5257_v19 = vunpack.i.h.bf16 %v5255_v33  ;;  %v5256_v50 = vunpack.i.l.bf16 %v5255_v33  ;;  %v2635_v35 = vpack.c.bf16 %v2631_v63, %v2630_v20  ;;  %3081 = vmatpush1.bf16.msra.mxu1 %v5308_v32  ;;  %3144 = vmatpush1.bf16.msra.mxu0 %v5311_v15  ;;  %v5317_v41 = vld [vmem:[%s5841_s3 + $0x28] ss:$16 sps:$4 sm:$0xff]   ;;  %v5355_v32 = vld [vmem:[%s5841_s3 + $0xec] ss:$16 sps:$4 sm:$0xff]   ;;  %v5350_v45 = vld [vmem:[%s5841_s3 + $0xe0] ss:$16 sps:$4 sm:$0xff]  }
 0xca0   : > { %3082 = vmatprep.subr.bf16.mxu1 %v5316_v57  ;;  %3145 = vmatprep.subr.bf16.mxu0 %v5319_v34  ;;  %v5353_v15 = vld [vmem:[%s5841_s3 + $0xe8] ss:$16 sps:$4 sm:$0xff]  }
 0xca1   : > { %v2619_v25 = vsel %vm1179_vm1, %v6111_v18, %v5257_v19  ;;  %v2618_v44 = vsel %vm1179_vm1, %v6115_v24, %v5256_v50  ;;  %v4695_v24 = vld [vmem:[%s7474_s23] ss:$0 sm:$0xff] }
 0xca2   : > { %v5265_v8 = vpop.permute.xlu0 %5264  ;;  %v2625_v4 = vsel %vm2620_vm5, %v2618_v44, %v5261_v29  ;;  %v2626_v5 = vsel %vm2620_vm5, %v2619_v25, %v5262_v39 }
 0xca3   : > { %v5267_v1 = vunpack.i.h.bf16 %v5265_v8  ;;  %v5266_v3 = vunpack.i.l.bf16 %v5265_v8  ;;  %3083 = vmatpush1.bf16.msra.mxu1 %v5314_v43  ;;  %3146 = vmatpush1.bf16.msra.mxu0 %v5317_v41 }
 0xca4   : > { %5130 = vmatmul.mubr.bf16.gmra.mrb[44].mxu0 %v2635_v35 }
 0xca5   : > { %5133 = vmatprep.mubr.msk.bf16.mxu0 %vm5676_vm0, %v5674_v14  ;;  %v2632_v10 = vsel %vm2627_vm6, %v2625_v4, %v5266_v3  ;;  %v2633_v18 = vsel %vm2627_vm6, %v2626_v5, %v5267_v1 }
 0xca6   : > { %v2636_v13 = vpack.c.bf16 %v2633_v18, %v2632_v10 }
 0xcac   : > { %5134 = vmatmul.mubr.bf16.gmra.mrb[48].mxu0 %v2636_v13 }
 0xcad   : > { %3175 = vmatprep.mubr.bf16.mxu0 %v5675_v59 }
 0xd6f   : > { %v2742_v46 = vpop.f32.mrb[40].mxu0 }
 0xd70   : > { %v2743_v12 = vadd.f32 %v4695_v24, %v2742_v46  ;;  %v5127_v38 = vpop.f32.mrb[41].mxu0  ;;  %v5322_v46 = vld [vmem:[%s5841_s3 + $0x44] ss:$16 sps:$4 sm:$0xff]  }
 0xd71   : > { %v2745_v9 = vpop.f32.mrb[42].mxu0  ;;  %3084 = vmatprep.subr.bf16.mxu1 %v5322_v46 }
 0xd72   : > { %v6467_v40 = vadd.f32 %v5604_v16, %v2743_v12  ;;  %v2746_v14 = vadd.f32 %v4695_v24, %v2745_v9  ;;  %v5128_v7 = vpop.f32.mrb[43].mxu0  ;;  %v5325_v12 = vld [vmem:[%s5841_s3 + $0x4c] ss:$16 sps:$4 sm:$0xff]   ;;  %v5320_v16 = vld [vmem:[%s5841_s3 + $0x40] ss:$16 sps:$4 sm:$0xff]  }
 0xd73   : > { %3147 = vmatprep.subr.bf16.mxu0 %v5325_v12  ;;  %3085 = vmatpush1.bf16.msra.mxu1 %v5320_v16 }
 0xd74   : > { %7475 = vst [vmem:[#allocation9_spill] sm:$0xff] %v6467_v40  ;;  %v6469_v58 = vadd.f32 %v5605_v47, %v2746_v14  ;;  %2773 = vadd.xlane.f32.xlu1 %v6467_v40  ;;  %v5323_v14 = vld [vmem:[%s5841_s3 + $0x48] ss:$16 sps:$4 sm:$0xff]   ;;  %v5328_v47 = vld [vmem:[%s5841_s3 + $0x64] ss:$16 sps:$4 sm:$0xff]  }
 0xd75   : > { %3148 = vmatpush1.bf16.msra.mxu0 %v5323_v14  ;;  %3086 = vmatprep.subr.bf16.mxu1 %v5328_v47 }
 0xd76   : > { %7476 = vst [vmem:[#allocation10_spill] sm:$0xff] %v6469_v58  ;;  %2775 = vadd.xlane.f32.xlu0 %v6469_v58 }
 0xd77   : > { %v2750_v2 = vpop.f32.mrb[44].mxu0 }
 0xd78   : > { %v2751_v31 = vadd.f32 %v4695_v24, %v2750_v2  ;;  %v5131_v27 = vpop.f32.mrb[45].mxu0  ;;  %v5331_v2 = vld [vmem:[%s5841_s3 + $0x6c] ss:$16 sps:$4 sm:$0xff]  }
 0xd79   : > { %v2753_v42 = vpop.f32.mrb[46].mxu0  ;;  %v5329_v27 = vld [vmem:[%s5841_s3 + $0x68] ss:$16 sps:$4 sm:$0xff]   ;;  %3149 = vmatprep.subr.bf16.mxu0 %v5331_v2 }
 0xd7a   : > { %v6473_v28 = vadd.f32 %v5606_v21, %v2751_v31  ;;  %v2754_v17 = vadd.f32 %v4695_v24, %v2753_v42  ;;  %v5132_v56 = vpop.f32.mrb[47].mxu0  ;;  %v5326_v31 = vld [vmem:[%s5841_s3 + $0x60] ss:$16 sps:$4 sm:$0xff]   ;;  %3150 = vmatpush1.bf16.msra.mxu0 %v5329_v27  ;;  %v5334_v42 = vld [vmem:[%s5841_s3 + $0x84] ss:$16 sps:$4 sm:$0xff]  }
 0xd7b   : > { %3087 = vmatpush1.bf16.msra.mxu1 %v5326_v31  ;;  %v5337_v21 = vld [vmem:[%s5841_s3 + $0x8c] ss:$16 sps:$4 sm:$0xff]   ;;  %v5335_v56 = vld [vmem:[%s5841_s3 + $0x88] ss:$16 sps:$4 sm:$0xff]  }
 0xd7c   : > { %7477 = vst [vmem:[#allocation11_spill] sm:$0xff] %v6473_v28  ;;  %2777 = vadd.xlane.f32.xlu0 %v6473_v28  ;;  %v6476_v60 = vadd.f32 %v5607_v55, %v2754_v17  ;;  %v5332_v17 = vld [vmem:[%s5841_s3 + $0x80] ss:$16 sps:$4 sm:$0xff]   ;;  %3088 = vmatprep.subr.bf16.mxu1 %v5334_v42  ;;  %v5340_v55 = vld [vmem:[%s5841_s3 + $0xa4] ss:$16 sps:$4 sm:$0xff]  }
 0xd7d   : > { %3151 = vmatprep.subr.bf16.mxu0 %v5337_v21 }
 0xd7e   : > { %7478 = vst [vmem:[#allocation12_spill] sm:$0xff] %v6476_v60  ;;  %3152 = vmatpush1.bf16.msra.mxu0 %v5335_v56 }
 0xd7f   : > { %v2758_v61 = vpop.f32.mrb[48].mxu0  ;;  %3089 = vmatpush1.bf16.msra.mxu1 %v5332_v17 }
 0xd80   : > { %v2759_v22 = vadd.f32 %v4695_v24, %v2758_v61  ;;  %2779 = vadd.xlane.f32.xlu0 %v6476_v60  ;;  %v5135_v36 = vpop.f32.mrb[49].mxu0  ;;  %v5343_v61 = vld [vmem:[%s5841_s3 + $0xac] ss:$16 sps:$4 sm:$0xff]   ;;  %3090 = vmatprep.subr.bf16.mxu1 %v5340_v55 }
 0xd81   : > { %v2761_v54 = vpop.f32.mrb[50].mxu0  ;;  %v5341_v36 = vld [vmem:[%s5841_s3 + $0xa8] ss:$16 sps:$4 sm:$0xff]   ;;  %3153 = vmatprep.subr.bf16.mxu0 %v5343_v61 }
 0xd82   : > { %v6479_v6 = vadd.f32 %v5608_v52, %v2759_v22  ;;  %v2762_v26 = vadd.f32 %v4695_v24, %v2761_v54  ;;  %v5136_v62 = vpop.f32.mrb[51].mxu0  ;;  %v5338_v22 = vld [vmem:[%s5841_s3 + $0xa0] ss:$16 sps:$4 sm:$0xff]   ;;  %3154 = vmatpush1.bf16.msra.mxu0 %v5341_v36  ;;  %v5346_v54 = vld [vmem:[%s5841_s3 + $0xc4] ss:$16 sps:$4 sm:$0xff]  }
 0xd83   : > { %3091 = vmatpush1.bf16.msra.mxu1 %v5338_v22  ;;  %v5349_v52 = vld [vmem:[%s5841_s3 + $0xcc] ss:$16 sps:$4 sm:$0xff]   ;;  %v5347_v62 = vld [vmem:[%s5841_s3 + $0xc8] ss:$16 sps:$4 sm:$0xff]  }
 0xd84   : > { %7479 = vst [vmem:[#allocation13_spill] sm:$0xff] %v6479_v6  ;;  %v6481_v23 = vadd.f32 %v5609_v0, %v2762_v26  ;;  %2781 = vadd.xlane.f32.xlu1 %v6479_v6  ;;  %v5344_v26 = vld [vmem:[%s5841_s3 + $0xc0] ss:$16 sps:$4 sm:$0xff]   ;;  %3092 = vmatprep.subr.bf16.mxu1 %v5346_v54  ;;  %v5352_v0 = vld [vmem:[%s5841_s3 + $0xe4] ss:$16 sps:$4 sm:$0xff]  }
 0xd85   : > { %3155 = vmatprep.subr.bf16.mxu0 %v5349_v52 }
 0xd86   : > { %7480 = vst [vmem:[#allocation14_spill] sm:$0xff] %v6481_v23  ;;  %2783 = vadd.xlane.f32.xlu0 %v6481_v23  ;;  %3156 = vmatpush1.bf16.msra.mxu0 %v5347_v62 }
 0xd87   : > { %3093 = vmatpush1.bf16.msra.mxu1 %v5344_v26  ;;  %3157 = vmatprep.subr.bf16.mxu0 %v5355_v32 }
 0xd88   : > { %3094 = vmatprep.subr.bf16.mxu1 %v5352_v0  ;;  %v2898_v0 = vld [vmem:[%s5847_s27] sm:$0xf]  ;;  %s7524_s27 = sld [smem:[#allocation31_spill]] (!%p4771_p6) }
 0xd89   : > { %v6571_v32 = vrot.slane %v2898_v0, %v907_v37 }
 0xd8a   : > { %3158 = vmatpush1.bf16.msra.mxu0 %v5353_v15 }
 0xd8b   : > { %3095 = vmatpush1.bf16.msra.mxu1 %v5350_v45  ;;  %v6579_v45 = vrot.slane %v2898_v0, %v911_v51 }
 0xe01   : > { %v2774_v30 = vpop.xlane.xlu1 %2773 }
 0xe02   : > { %v2785_v33 = vmul.f32 0.0078125, %v2774_v30 }
 0xe03   : > { %v2776_v20 = vpop.xlane.xlu0 %2775 }
 0xe04   : > { %v6494_v63 = vsub.f32 %v6467_v40, %v2785_v33  ;;  %v2786_v53 = vmul.f32 0.0078125, %v2776_v20 }
 0xe06   : > { %v6497_v19 = vsub.f32 %v6469_v58, %v2786_v53  ;;  %v2797_v50 = vmul.f32 %v6494_v63, %v6494_v63  ;;  %v5371_v58 = vld [vmem:[%s5852_s13 + $0x98] sm:$0xff]  }
 0xe08   : > { %2803 = vadd.xlane.f32.xlu1 %v2797_v50  ;;  %v2798_v35 = vmul.f32 %v6497_v19, %v6497_v19 }
 0xe09   : > { %v2778_v25 = vpop.xlane.xlu0 %2777 }
 0xe0a   : > { %v2787_v44 = vmul.f32 0.0078125, %v2778_v25  ;;  %2805 = vadd.xlane.f32.xlu0 %v2798_v35 }
 0xe0c   : > { %v6504_v39 = vsub.f32 %v6473_v28, %v2787_v44 }
 0xe0d   : > { %v2780_v29 = vpop.xlane.xlu0 %2779 }
 0xe0e   : > { %v2788_v8 = vmul.f32 0.0078125, %v2780_v29  ;;  %v2799_v1 = vmul.f32 %v6504_v39, %v6504_v39  ;;  %v4704_v29 = vld [vmem:[%s7481_s26] ss:$0 sm:$0xff] }
 0xe10   : > { %v6509_v3 = vsub.f32 %v6476_v60, %v2788_v8  ;;  %2807 = vadd.xlane.f32.xlu1 %v2799_v1 }
 0xe11   : > { %v2782_v4 = vpop.xlane.xlu1 %2781 }
 0xe12   : > { %v2789_v5 = vmul.f32 0.0078125, %v2782_v4  ;;  %v2800_v10 = vmul.f32 %v6509_v3, %v6509_v3 }
 0xe13   : > { %v2784_v18 = vpop.xlane.xlu0 %2783 }
 0xe14   : > { %v6514_v13 = vsub.f32 %v6479_v6, %v2789_v5  ;;  %v2790_v24 = vmul.f32 0.0078125, %v2784_v18  ;;  %2809 = vadd.xlane.f32.xlu0 %v2800_v10 }
 0xe16   : > { %v6519_v38 = vsub.f32 %v6481_v23, %v2790_v24  ;;  %v2801_v9 = vmul.f32 %v6514_v13, %v6514_v13 }
 0xe18   : > { %2811 = vadd.xlane.f32.xlu1 %v2801_v9  ;;  %v2802_v7 = vmul.f32 %v6519_v38, %v6519_v38  ;;  %v4705_v9 = vld [vmem:[%s7482_s19] ss:$0 sm:$0xff] }
 0xe1a   : > { %2813 = vadd.xlane.f32.xlu0 %v2802_v7 }
 0xe95   : > { %v2804_v11 = vpop.xlane.xlu1 %2803 }
 0xe96   : > { %v2815_v57 = vmul.f32 0.0078125, %v2804_v11 }
 0xe97   : > { %v2806_v34 = vpop.xlane.xlu0 %2805 }
 0xe98   : > { %v2821_v43 = vadd.f32 1e-06, %v2815_v57  ;;  %v2816_v41 = vmul.f32 0.0078125, %v2806_v34 }
 0xe9a   : > { %5496 = vrsqrt.f32 %v2821_v43  ;;  %v2822_v30 = vadd.f32 1e-06, %v2816_v41 }
 0xe9c   : > { %5498 = vrsqrt.f32 %v2822_v30 }
 0xe9d   : > { %v2808_v33 = vpop.xlane.xlu1 %2807 }
 0xe9e   : > { %v2817_v20 = vmul.f32 0.0078125, %v2808_v33 }
 0xea0   : > { %v2823_v53 = vadd.f32 1e-06, %v2817_v20 }
 0xea1   : > { %v2810_v50 = vpop.xlane.xlu0 %2809 }
 0xea2   : > { %5500 = vrsqrt.f32 %v2823_v53  ;;  %v2818_v35 = vmul.f32 0.0078125, %v2810_v50 }
 0xea4   : > { %v5497_v25 = vpop.eup %5496  ;;  %v2824_v44 = vadd.f32 1e-06, %v2818_v35 }
 0xea5   : > { %v2833_v8 = vmul.f32 %v5497_v25, %v6494_v63  ;;  %v2812_v1 = vpop.xlane.xlu1 %2811 }
 0xea6   : > { %v5499_v4 = vpop.eup %5498  ;;  %5502 = vrsqrt.f32 %v2824_v44  ;;  %v2819_v5 = vmul.f32 0.0078125, %v2812_v1 }
 0xea7   : > { %v2834_v10 = vmul.f32 %v5499_v4, %v6497_v19  ;;  %v2814_v18 = vpop.xlane.xlu0 %2813  ;;  %v2845_v24 = vmul.f32 %v4704_v29, %v2833_v8 }
 0xea8   : > { %v2825_v46 = vadd.f32 1e-06, %v2819_v5  ;;  %v2820_v12 = vmul.f32 0.0078125, %v2814_v18 }
 0xea9   : > { %v2846_v16 = vmul.f32 %v4704_v29, %v2834_v10  ;;  %v2857_v7 = vadd.f32 %v4705_v9, %v2845_v24 }
 0xeaa   : > { %5504 = vrsqrt.f32 %v2825_v46  ;;  %v2826_v14 = vadd.f32 1e-06, %v2820_v12 }
 0xeab   : > { %v2858_v63 = vadd.f32 %v4705_v9, %v2846_v16 }
 0xeac   : > { %v5501_v47 = vpop.eup %5500  ;;  %5506 = vrsqrt.f32 %v2826_v14 }
 0xead   : > { %v2863_v2 = vpack.c.bf16 %v2858_v63, %v2857_v7  ;;  %v2835_v31 = vmul.f32 %v5501_v47, %v6504_v39 }
 0xeaf   : > { %3113 = vmatmul.mubr.bf16.vlgmr.msra.gmra.mrb[48].mxu1 %v2863_v2  ;;  %3176 = vmatmul.mubr.bf16.vlgmr.msra.gmra.mrb[52].mxu0 %v2863_v2  ;;  %v2847_v42 = vmul.f32 %v4704_v29, %v2835_v31 }
 0xeb0   : > { %v5503_v19 = vpop.eup %5502  ;;  %3122 = vmatprep.mubr.bf16.mxu1 %v5675_v59  ;;  %3185 = vmatprep.mubr.bf16.mxu0 %v5675_v59 }
 0xeb1   : > { %v2836_v27 = vmul.f32 %v5503_v19, %v6509_v3  ;;  %v2859_v56 = vadd.f32 %v4705_v9, %v2847_v42 }
 0xeb3   : > { %v2848_v21 = vmul.f32 %v4704_v29, %v2836_v27  ;;  %v5356_v27 = vld [vmem:[%s5852_s13 + $0x40] sm:$0xff]  }
 0xeb4   : > { %v5505_v17 = vpop.eup %5504  ;;  %4876 = vmatprep.subr.bf16.mxu1 %v5356_v27 }
 0xeb5   : > { %v2860_v55 = vadd.f32 %v4705_v9, %v2848_v21  ;;  %v2837_v61 = vmul.f32 %v5505_v17, %v6514_v13  ;;  %v2914_v13 = vsub.s32 3, %v5959_v48 }
 0xeb6   : > { %v5507_v22 = vpop.eup %5506 }
 0xeb7   : > { %v2864_v36 = vpack.c.bf16 %v2860_v55, %v2859_v56  ;;  %v2838_v39 = vmul.f32 %v5507_v22, %v6519_v38  ;;  %v2849_v54 = vmul.f32 %v4704_v29, %v2837_v61  ;;  %v6575_v38 = vrot.slane %v2898_v0, %v915_v49  ;;  %v5357_v56 = vld [vmem:[%s5852_s13 + $0xc0] sm:$0xff]  }
 0xeb8   : > { %v5358_v55 = vld [vmem:[%s5852_s13] sm:$0xff]   ;;  %4910 = vmatprep.subr.bf16.mxu0 %v5357_v56 }
 0xeb9   : > { %3123 = vmatmul.mubr.bf16.gmra.mrb[52].mxu1 %v2864_v36  ;;  %3186 = vmatmul.mubr.bf16.gmra.mrb[56].mxu0 %v2864_v36  ;;  %v2850_v52 = vmul.f32 %v4704_v29, %v2838_v39  ;;  %v2861_v26 = vadd.f32 %v4705_v9, %v2849_v54  ;;  %v5359_v61 = vld [vmem:[%s5852_s13 + $0x80] sm:$0xff]   ;;  %v5360_v36 = vld [vmem:[%s5852_s13 + $0x48] sm:$0xff]  }
 0xeba   : > { %3132 = vmatprep.mubr.bf16.mxu1 %v5675_v59  ;;  %3195 = vmatprep.mubr.bf16.mxu0 %v5675_v59  ;;  %v6581_v59 = vrot.slane %v2898_v0, %v2914_v13  ;;  %v5361_v39 = vld [vmem:[%s5852_s13 + $0xc8] sm:$0xff]  }
 0xebb   : > { %v2862_v3 = vadd.f32 %v4705_v9, %v2850_v52  ;;  %4877 = vmatpush3.bf16.msra.mxu1 %v5358_v55  ;;  %4911 = vmatpush3.bf16.msra.mxu0 %v5359_v61 }
 0xebc   : > { %4878 = vmatprep.subr.bf16.mxu1 %v5360_v36  ;;  %4912 = vmatprep.subr.bf16.mxu0 %v5361_v39 }
 0xebd   : > { %v2865_v62 = vpack.c.bf16 %v2862_v3, %v2861_v26  ;;  %v5362_v3 = vld [vmem:[%s5852_s13 + $0x8] sm:$0xff]  }
 0xebf   : > { %4879 = vmatpush3.bf16.msra.mxu1 %v5362_v3 }
 0xec1   : > { %3133 = vmatmul.mubr.bf16.gmra.mrb[56].mxu1 %v2865_v62  ;;  %3196 = vmatmul.mubr.bf16.gmra.mrb[60].mxu0 %v2865_v62  ;;  %v5363_v62 = vld [vmem:[%s5852_s13 + $0x88] sm:$0xff]  }
 0xec2   : > { %4913 = vmatpush3.bf16.msra.mxu0 %v5363_v62 }
 0xf82   : > { %v3114_v15 = vpop.f32.mrb[48].mxu1  ;;  %v3177_v11 = vpop.f32.mrb[52].mxu0 }
 0xf83   : > { %v6584_v57 = vadd.f32 %v3114_v15, %v6571_v32  ;;  %v6587_v34 = vadd.f32 %v3177_v11, %v6575_v38  ;;  %v3116_v37 = vpop.f32.mrb[49].mxu1  ;;  %v3179_v43 = vpop.f32.mrb[53].mxu0 }
 0xf84   : > { %v6590_v41 = vadd.f32 %v3116_v37, %v6579_v45  ;;  %v6593_v49 = vadd.f32 %v3179_v43, %v6581_v59  ;;  %v3118_v48 = vpop.f32.mrb[50].mxu1  ;;  %v3181_v51 = vpop.f32.mrb[54].mxu0 }
 0xf85   : > { %v6596_v30 = vmul.f32 0.70710677, %v6584_v57  ;;  %v6599_v33 = vmul.f32 0.70710677, %v6587_v34  ;;  %v3120_v44 = vpop.f32.mrb[51].mxu1  ;;  %v3183_v4 = vpop.f32.mrb[55].mxu0  ;;  %v6624_v9 = vadd.f32 %v3118_v48, %v6571_v32  ;;  %v6637_v2 = vadd.f32 %v3181_v51, %v6575_v38 }
 0xf86   : > { %v6602_v20 = vmul.f32 0.70710677, %v6590_v41  ;;  %v6612_v25 = vmul.f32 0.70710677, %v6593_v49  ;;  %v6645_v21 = vadd.f32 %v3120_v44, %v6579_v45  ;;  %v6673_v43 = vadd.f32 %v3183_v4, %v6581_v59  ;;  %v5364_v44 = vld [vmem:[%s5852_s13 + $0x50] sm:$0xff]  }
 0xf87   : > { %v3302_v53 = vand.u32 2147483647, %v6596_v30  ;;  %v6606_v50 = vand.u32 2147483647, %v6599_v33  ;;  %v6634_v47 = vmul.f32 0.70710677, %v6624_v9  ;;  %4880 = vmatprep.subr.bf16.mxu1 %v5364_v44 }
 0xf88   : > { %v6609_v35 = vand.u32 2147483647, %v6602_v20  ;;  %v6617_v18 = vand.u32 2147483647, %v6612_v25  ;;  %v6658_v52 = vmul.f32 0.70710677, %v6637_v2 }
 0xf89   : > { %v3326_v29 = vmul.f32 0.3275911, %v3302_v53  ;;  %v3328_v8 = vmul.f32 0.3275911, %v6606_v50  ;;  %v6653_v22 = vand.u32 2147483647, %v6634_v47 }
 0xf8a   : > { %v3327_v1 = vmul.f32 0.3275911, %v6609_v35  ;;  %v3329_v7 = vmul.f32 0.3275911, %v6617_v18  ;;  %v3638_v54 = vsub.f32 0.0, %v3302_v53  ;;  %v3640_v0 = vsub.f32 0.0, %v6606_v50 }
 0xf8b   : > { %v3350_v5 = vadd.f32 1.0, %v3326_v29  ;;  %v3352_v10 = vadd.f32 1.0, %v3328_v8  ;;  %v3330_v26 = vmul.f32 0.3275911, %v6653_v22  ;;  %v6665_v13 = vand.u32 2147483647, %v6658_v52 }
 0xf8c   : > { %v6619_v24 = vpop.f32.mrb[52].mxu1  ;;  %v6621_v46 = vpop.f32.mrb[56].mxu0  ;;  %v3351_v12 = vadd.f32 1.0, %v3327_v1  ;;  %v3353_v42 = vadd.f32 1.0, %v3329_v7  ;;  %v6668_v15 = vmul.f32 0.70710677, %v6645_v21  ;;  %v3662_v8 = vmul.f32 %v3638_v54, %v3302_v53 }
 0xf8d   : > { %5508 = vrcp.f32 %v3350_v5  ;;  %v6626_v16 = vpop.f32.mrb[53].mxu1  ;;  %v6628_v14 = vpop.f32.mrb[57].mxu0  ;;  %v3354_v37 = vadd.f32 1.0, %v3330_v26  ;;  %v5365_v29 = vld [vmem:[%s5852_s13 + $0xd0] sm:$0xff]   ;;  %v3332_v1 = vmul.f32 0.3275911, %v6665_v13  ;;  %v3664_v53 = vmul.f32 %v3640_v0, %v6606_v50 }
 0xf8e   : > { %5510 = vrcp.f32 %v3352_v10  ;;  %v6631_v63 = vpop.f32.mrb[54].mxu1  ;;  %v6639_v31 = vpop.f32.mrb[58].mxu0  ;;  %v6683_v5 = vand.u32 2147483647, %v6668_v15  ;;  %4914 = vmatprep.subr.bf16.mxu0 %v5365_v29  ;;  %v6700_v36 = vmul.f32 0.70710677, %v6673_v43 }
 0xf8f   : > { %v6641_v19 = vpop.f32.mrb[55].mxu1  ;;  %v6647_v17 = vpop.f32.mrb[59].mxu0  ;;  %5512 = vrcp.f32 %v3351_v12  ;;  %v3686_v3 = vmul.f32 1.442695, %v3662_v8  ;;  %v5366_v44 = vld [vmem:[%s5852_s13 + $0x10] sm:$0xff]   ;;  %v3642_v23 = vsub.f32 0.0, %v6653_v22 }
 0xf90   : > { %7483 = vst [vmem:[#allocation15_spill] sm:$0xff] %v6647_v17  ;;  %5514 = vrcp.f32 %v3353_v42  ;;  %v3356_v42 = vadd.f32 1.0, %v3332_v1  ;;  %v3331_v56 = vmul.f32 0.3275911, %v6683_v5  ;;  %v3690_v1 = vmul.f32 1.442695, %v3664_v53  ;;  %4881 = vmatpush3.bf16.msra.mxu1 %v5366_v44 }
 0xf91   : > { %5516 = vrcp.f32 %v3354_v37  ;;  %v6709_v37 = vand.u32 2147483647, %v6700_v36  ;;  %v5368_v8 = vld [vmem:[%s5852_s13 + $0x58] sm:$0xff]   ;;  %v6726_v40 = vmul.f32 0.5, %v6584_v57  ;;  %v3666_v44 = vmul.f32 %v3642_v23, %v6653_v22 }
 0xf92   : > { %5518 = vrcp.f32 %v3356_v42  ;;  %v3355_v50 = vadd.f32 1.0, %v3331_v56  ;;  %v5369_v42 = vld [vmem:[%s5852_s13 + $0xd8] sm:$0xff]   ;;  %4882 = vmatprep.subr.bf16.mxu1 %v5368_v8  ;;  %vm3254_vm7 = vcmp.ge.f32.partialorder %v6596_v30, 0.0  ;;  %vm3256_vm8 = vcmp.ge.f32.partialorder %v6599_v33, 0.0 }
 0xf93   : > { %v3333_v60 = vmul.f32 0.3275911, %v6709_v37  ;;  %v3639_v22 = vsub.f32 0.0, %v6609_v35  ;;  %v5384_v17 = vld [vmem:[%s5852_s13 + $0x78] sm:$0xff]   ;;  %vm3258_vm9 = vcmp.ge.f32.partialorder %v6634_v47, 0.0  ;;  %vm3260_vm10 = vcmp.ge.f32.partialorder %v6658_v52, 0.0 }
 0xf94   : > { %v6670_v11 = vpop.f32.mrb[56].mxu1  ;;  %v6675_v48 = vpop.f32.mrb[60].mxu0  ;;  %5520 = vrcp.f32 %v3355_v50  ;;  %v5385_v33 = vld [vmem:[%s5852_s13 + $0xf8] sm:$0xff]   ;;  %vm3255_vm11 = vcmp.ge.f32.partialorder %v6602_v20, 0.0  ;;  %vm3257_vm12 = vcmp.ge.f32.partialorder %v6612_v25, 0.0  ;;  %vm3259_vm13 = vcmp.ge.f32.partialorder %v6668_v15, 0.0 }
 0xf95   : > { %7484 = vst [vmem:[#allocation16_spill] sm:$0xff] %v6670_v11  ;;  %7485 = vst [vmem:[#allocation17_spill] sm:$0xff] %v6675_v48  ;;  %v6677_v51 = vpop.f32.mrb[57].mxu1  ;;  %v6687_v12 = vpop.f32.mrb[61].mxu0  ;;  %5522 = vpow2.f32 %v3686_v3  ;;  %v5375_v3 = vld [vmem:[%s5852_s13 + $0xa0] sm:$0xff]   ;;  %v6890_v20 = vadd.f32 %v6639_v31, %v6575_v38  ;;  %v3209_v25 = vmul.f32 0.5, %v6593_v49 }
 0xf96   : > { %7486 = vst [vmem:[#allocation18_spill] sm:$0xff] %v6677_v51  ;;  %7487 = vst [vmem:[#allocation19_spill] sm:$0xff] %v6687_v12  ;;  %v6689_v4 = vpop.f32.mrb[58].mxu1  ;;  %v6696_v55 = vpop.f32.mrb[62].mxu0  ;;  %vm3261_vm14 = vcmp.ge.f32.partialorder %v6700_v36, 0.0 }
 0xf97   : > { %v6685_v10 = vpop.eup %5508  ;;  %7488 = vst [vmem:[#allocation20_spill] sm:$0xff] %v6689_v4  ;;  %7489 = vst [vmem:[#allocation21_spill] sm:$0xff] %v6696_v55  ;;  %v6702_v39 = vpop.f32.mrb[59].mxu1  ;;  %v5373_v55 = vld [vmem:[%s5852_s13 + $0xe0] sm:$0xff]  }
 0xf98   : > { %v6691_v7 = vpop.eup %5510  ;;  %v3422_v27 = vmul.f32 1.0614054, %v6685_v10  ;;  %7490 = vst [vmem:[#allocation22_spill] sm:$0xff] %v6702_v39  ;;  %v6704_v26 = vpop.f32.mrb[63].mxu0  ;;  %v5372_v39 = vld [vmem:[%s5852_s13 + $0x60] sm:$0xff]  }
 0xf99   : > { %v3424_v61 = vmul.f32 1.0614054, %v6691_v7  ;;  %7491 = vst [vmem:[#allocation23_spill] sm:$0xff] %v6704_v26  ;;  %v6706_v62 = vpop.eup %5512 }
 0xf9a   : > { %v3446_v54 = vadd.f32 -1.4531521, %v3422_v27  ;;  %v5367_v27 = vld [vmem:[%s5852_s13 + $0x90] sm:$0xff]   ;;  %v6717_v56 = vpop.eup %5514 }
 0xf9b   : > { %v3448_v0 = vadd.f32 -1.4531521, %v3424_v61  ;;  %v3423_v61 = vmul.f32 1.0614054, %v6706_v62  ;;  %v3425_v28 = vmul.f32 1.0614054, %v6717_v56  ;;  %4915 = vmatpush3.bf16.msra.mxu0 %v5367_v27  ;;  %v6733_v27 = vpop.eup %5516 }
 0xf9c   : > { %v3470_v29 = vmul.f32 %v6685_v10, %v3446_v54  ;;  %v5370_v54 = vld [vmem:[%s5852_s13 + $0x18] sm:$0xff]   ;;  %4916 = vmatprep.subr.bf16.mxu0 %v5369_v42  ;;  %v3426_v4 = vmul.f32 1.0614054, %v6733_v27 }
 0xf9d   : > { %v3472_v6 = vmul.f32 %v6691_v7, %v3448_v0  ;;  %v3357_v0 = vadd.f32 1.0, %v3333_v60  ;;  %v3447_v8 = vadd.f32 -1.4531521, %v3423_v61  ;;  %4883 = vmatpush3.bf16.msra.mxu1 %v5370_v54  ;;  %v5374_v60 = vld [vmem:[%s5852_s13 + $0x20] sm:$0xff]  }
 0xf9e   : > { %v3494_v53 = vadd.f32 1.4214138, %v3470_v29  ;;  %v3644_v29 = vsub.f32 0.0, %v6665_v13  ;;  %4884 = vmatprep.subr.bf16.mxu1 %v5372_v39 }
 0xf9f   : > { %v3496_v26 = vadd.f32 1.4214138, %v3472_v6  ;;  %v3449_v6 = vadd.f32 -1.4531521, %v3425_v28  ;;  %5524 = vrcp.f32 %v3357_v0  ;;  %4917 = vmatpush3.bf16.msra.mxu0 %v5371_v58  ;;  %v5377_v28 = vld [vmem:[%s5852_s13 + $0xe8] sm:$0xff]  }
 0xfa0   : > { %v3518_v50 = vmul.f32 %v6685_v10, %v3494_v53  ;;  %v5376_v53 = vld [vmem:[%s5852_s13 + $0x68] sm:$0xff]   ;;  %4918 = vmatprep.subr.bf16.mxu0 %v5373_v55  ;;  %5526 = vpow2.f32 %v3690_v1  ;;  %v3450_v58 = vadd.f32 -1.4531521, %v3426_v4  ;;  %v3668_v39 = vmul.f32 %v3644_v29, %v6665_v13 }
 0xfa1   : > { %v3520_v57 = vmul.f32 %v6691_v7, %v3496_v26  ;;  %v6744_v26 = vpop.eup %5518  ;;  %v3694_v0 = vmul.f32 1.442695, %v3666_v44  ;;  %4885 = vmatpush3.bf16.msra.mxu1 %v5374_v60  ;;  %v5378_v55 = vld [vmem:[%s5852_s13 + $0x28] sm:$0xff]   ;;  %v3473_v1 = vmul.f32 %v6717_v56, %v3449_v6  ;;  %v5380_v44 = vld [vmem:[%s5852_s13 + $0x70] sm:$0xff]  }
 0xfa2   : > { %v3542_v42 = vadd.f32 -0.28449672, %v3518_v50  ;;  %v3428_v50 = vmul.f32 1.0614054, %v6744_v26  ;;  %v3474_v4 = vmul.f32 %v6733_v27, %v3450_v58  ;;  %4886 = vmatprep.subr.bf16.mxu1 %v5376_v53  ;;  %v5379_v13 = vld [vmem:[%s5852_s13 + $0xa8] sm:$0xff]   ;;  %v6760_v29 = vpop.eup %5520  ;;  %v5381_v6 = vld [vmem:[%s5852_s13 + $0xf0] sm:$0xff]  }
 0xfa3   : > { %v3544_v23 = vadd.f32 -0.28449672, %v3520_v57  ;;  %v6752_v57 = vadd.f32 %v6619_v24, %v6571_v32  ;;  %4919 = vmatpush3.bf16.msra.mxu0 %v5375_v3  ;;  %v3641_v53 = vsub.f32 0.0, %v6617_v18  ;;  %v3698_v51 = vmul.f32 1.442695, %v3668_v39 }
 0xfa4   : > { %v3566_v61 = vmul.f32 %v6685_v10, %v3542_v42  ;;  %v3471_v42 = vmul.f32 %v6706_v62, %v3447_v8  ;;  %v3663_v8 = vmul.f32 %v3639_v22, %v6609_v35  ;;  %4920 = vmatprep.subr.bf16.mxu0 %v5377_v28  ;;  %v3498_v58 = vadd.f32 1.4214138, %v3474_v4  ;;  %v5382_v35 = vld [vmem:[%s5852_s13 + $0x30] sm:$0xff]   ;;  %v5523_v22 = vpop.eup %5522 }
 0xfa5   : > { %v3568_v54 = vmul.f32 %v6691_v7, %v3544_v23  ;;  %7492 = vst [vmem:[#allocation24_spill] sm:$0xff] %v6752_v57  ;;  %v7449_v23 = vmov -1.0   ;;  %5528 = vpow2.f32 %v3694_v0  ;;  %v3427_v30 = vmul.f32 1.0614054, %v6760_v29  ;;  %4887 = vmatpush3.bf16.msra.mxu1 %v5378_v55  ;;  %v5383_v0 = vld [vmem:[%s5852_s13 + $0xb0] sm:$0xff]  }
 0xfa6   : > { %v3590_v12 = vadd.f32 0.2548296, %v3566_v61  ;;  %v6765_v24 = vsel %vm3254_vm7, 1.0, %v7449_v23  ;;  %v3452_v61 = vadd.f32 -1.4531521, %v3428_v50  ;;  %v7493_v28 = vmov -1.0   ;;  %4888 = vmatprep.subr.bf16.mxu1 %v5380_v44 }
 0xfa7   : > { %v3592_v60 = vadd.f32 0.2548296, %v3568_v54  ;;  %v6774_v23 = vmul.f32 0.70710677, %v6752_v57  ;;  %v3497_v39 = vadd.f32 1.4214138, %v3473_v1  ;;  %v3522_v54 = vmul.f32 %v6733_v27, %v3498_v58  ;;  %4921 = vmatpush3.bf16.msra.mxu0 %v5379_v13 }
 0xfa8   : > { %v3614_v3 = vmul.f32 %v6685_v10, %v3590_v12  ;;  %v3476_v48 = vmul.f32 %v6744_v26, %v3452_v61  ;;  %v6780_v10 = vsel %vm3256_vm8, 1.0, %v7493_v28  ;;  %v3495_v12 = vadd.f32 1.4214138, %v3471_v42  ;;  %4922 = vmatprep.subr.bf16.mxu0 %v5381_v6 }
 0xfa9   : > { %v6784_v50 = vpop.eup %5524  ;;  %v3616_v55 = vmul.f32 %v6691_v7, %v3592_v60  ;;  %v3688_v61 = vmul.f32 1.442695, %v3663_v8  ;;  %v3665_v57 = vmul.f32 %v3641_v53, %v6617_v18  ;;  %v3546_v42 = vadd.f32 -0.28449672, %v3522_v54  ;;  %4889 = vmatpush3.bf16.msra.mxu1 %v5382_v35 }
 0xfaa   : > { %v3734_v4 = vmul.f32 %v5523_v22, %v3614_v3  ;;  %v3500_v11 = vadd.f32 1.4214138, %v3476_v48  ;;  %5530 = vpow2.f32 %v3698_v51  ;;  %v3451_v1 = vadd.f32 -1.4531521, %v3427_v30  ;;  %v5386_v48 = vld [vmem:[%s5852_s13 + $0x38] sm:$0xff]   ;;  %v5527_v60 = vpop.eup %5526  ;;  %4890 = vmatprep.subr.bf16.mxu1 %v5384_v17 }
 0xfab   : > { %v6791_v13 = vmul.f32 0.5, %v6624_v9  ;;  %v3429_v3 = vmul.f32 1.0614054, %v6784_v50  ;;  %v6796_v7 = vand.u32 2147483647, %v6774_v23  ;;  %v3519_v8 = vmul.f32 %v6706_v62, %v3495_v12  ;;  %4923 = vmatpush3.bf16.msra.mxu0 %v5383_v0  ;;  %v5387_v9 = vld [vmem:[%s5852_s13 + $0xb8] sm:$0xff]  }
 0xfac   : > { %v3524_v44 = vmul.f32 %v6744_v26, %v3500_v11  ;;  %v3521_v18 = vmul.f32 %v6717_v56, %v3497_v39  ;;  %v3570_v51 = vmul.f32 %v6733_v27, %v3546_v42  ;;  %v3758_v6 = vsub.f32 1.0, %v3734_v4  ;;  %4924 = vmatprep.subr.bf16.mxu0 %v5385_v33 }
 0xfad   : > { %v3736_v11 = vmul.f32 %v5527_v60, %v3616_v55  ;;  %v3453_v58 = vadd.f32 -1.4531521, %v3429_v3  ;;  %5532 = vpow2.f32 %v3688_v61  ;;  %v3692_v30 = vmul.f32 1.442695, %v3665_v57  ;;  %4891 = vmatpush3.bf16.msra.mxu1 %v5386_v48 }
 0xfae   : > { %v3548_v53 = vadd.f32 -0.28449672, %v3524_v44  ;;  %v3594_v35 = vadd.f32 0.2548296, %v3570_v51  ;;  %v3475_v22 = vmul.f32 %v6760_v29, %v3451_v1  ;;  %v3643_v39 = vsub.f32 0.0, %v6683_v5 }
 0xfaf   : > { %v3477_v54 = vmul.f32 %v6784_v50, %v3453_v58  ;;  %v3334_v0 = vmul.f32 0.3275911, %v6796_v7  ;;  %v3543_v4 = vadd.f32 -0.28449672, %v3519_v8  ;;  %v3282_v17 = vsel %vm3258_vm9, 1.0, %v7493_v28  ;;  %4925 = vmatpush3.bf16.msra.mxu0 %v5387_v9  ;;  %v5529_v57 = vpop.eup %5528 }
 0xfb0   : > { %v3572_v12 = vmul.f32 %v6744_v26, %v3548_v53  ;;  %v3618_v55 = vmul.f32 %v6733_v27, %v3594_v35  ;;  %v3782_v61 = vmul.f32 %v3758_v6, %v6765_v24  ;;  %v3760_v33 = vsub.f32 1.0, %v3736_v11 }
 0xfb1   : > { %v3545_v42 = vadd.f32 -0.28449672, %v3521_v18  ;;  %5534 = vpow2.f32 %v3692_v30  ;;  %v3499_v3 = vadd.f32 1.4214138, %v3475_v22  ;;  %v6817_v48 = vadd.f32 %v6621_v46, %v6575_v38 }
 0xfb2   : > { %v3596_v1 = vadd.f32 0.2548296, %v3572_v12  ;;  %v3738_v44 = vmul.f32 %v5529_v57, %v3618_v55  ;;  %v3667_v27 = vmul.f32 %v3643_v39, %v6683_v5  ;;  %v3501_v60 = vadd.f32 1.4214138, %v3477_v54 }
 0xfb3   : > { %v3358_v8 = vadd.f32 1.0, %v3334_v0  ;;  %v3567_v9 = vmul.f32 %v6706_v62, %v3543_v4  ;;  %v3284_v18 = vsel %vm3260_vm10, 1.0, %v7493_v28  ;;  %v3645_v6 = vsub.f32 0.0, %v6709_v37 }
 0xfb4   : > { %v3620_v47 = vmul.f32 %v6744_v26, %v3596_v1  ;;  %v5531_v51 = vpop.eup %5530  ;;  %v3762_v24 = vsub.f32 1.0, %v3738_v44  ;;  %v3806_v11 = vadd.f32 1.0, %v3782_v61  ;;  %v3784_v46 = vmul.f32 %v3760_v33, %v6780_v10 }
 0xfb5   : > { %v3569_v53 = vmul.f32 %v6717_v56, %v3545_v42  ;;  %v3523_v5 = vmul.f32 %v6760_v29, %v3499_v3  ;;  %v6830_v30 = vmul.f32 0.70710677, %v6817_v48  ;;  %v6834_v35 = vadd.f32 %v6626_v16, %v6579_v45 }
 0xfb6   : > { %v3740_v26 = vmul.f32 %v5531_v51, %v3620_v47  ;;  %v3786_v58 = vmul.f32 %v3762_v24, %v3282_v17  ;;  %v3696_v22 = vmul.f32 1.442695, %v3667_v27  ;;  %v3525_v12 = vmul.f32 %v6784_v50, %v3501_v60 }
 0xfb7   : > { %5536 = vrcp.f32 %v3358_v8  ;;  %v5533_v39 = vpop.eup %5532  ;;  %v3591_v10 = vadd.f32 0.2548296, %v3567_v9  ;;  %v3669_v0 = vmul.f32 %v3645_v6, %v6709_v37  ;;  %v6839_v4 = vand.u32 2147483647, %v6830_v30 }
 0xfb8   : > { %v3764_v52 = vsub.f32 1.0, %v3740_v26  ;;  %v3810_v54 = vadd.f32 1.0, %v3786_v58  ;;  %v6842_v17 = vmul.f32 %v3806_v11, %v6726_v40  ;;  %v3808_v55 = vadd.f32 1.0, %v3784_v46 }
 0xfb9   : > { %v3593_v57 = vadd.f32 0.2548296, %v3569_v53  ;;  %v3547_v33 = vadd.f32 -0.28449672, %v3523_v5  ;;  %v3336_v42 = vmul.f32 0.3275911, %v6839_v4  ;;  %v3615_v27 = vmul.f32 %v6706_v62, %v3591_v10 }
 0xfba   : > { %v3788_v16 = vmul.f32 %v3764_v52, %v3284_v18  ;;  %v6845_v61 = vmul.f32 %v3810_v54, %v6791_v13  ;;  %v6849_v1 = vmul.f32 0.70710677, %v6834_v35  ;;  %v3208_v37 = vmul.f32 0.5, %v6587_v34 }
 0xfbb   : > { %v3212_v44 = vmul.f32 0.5, %v6637_v2  ;;  %v3549_v47 = vadd.f32 -0.28449672, %v3525_v12  ;;  %v5535_v40 = vpop.eup %5534  ;;  %v3700_v13 = vmul.f32 1.442695, %v3669_v0  ;;  %v3360_v8 = vadd.f32 1.0, %v3336_v42 }
 0xfbc   : > { %v3812_v3 = vadd.f32 1.0, %v3788_v16  ;;  %v6856_v51 = vmul.f32 %v3808_v55, %v3208_v37  ;;  %v3617_v9 = vmul.f32 %v6717_v56, %v3593_v57  ;;  %v3571_v34 = vmul.f32 %v6760_v29, %v3547_v33 }
 0xfbd   : > { %5538 = vpow2.f32 %v3696_v22  ;;  %v6863_v2 = vand.u32 2147483647, %v6849_v1  ;;  %v6867_v62 = vadd.f32 %v6628_v14, %v6581_v59  ;;  %v6870_v18 = vmul.f32 0.5, %v6590_v41 }
 0xfbe   : > { %7494 = vst [vmem:[#allocation25_spill] sm:$0xff] %v6856_v51  ;;  %v6859_v24 = vmul.f32 %v3812_v3, %v3212_v44  ;;  %v3573_v56 = vmul.f32 %v6784_v50, %v3549_v47  ;;  %5540 = vrcp.f32 %v3360_v8  ;;  %v3735_v11 = vmul.f32 %v5533_v39, %v3615_v27 }
 0xfbf   : > { %5542 = vpow2.f32 %v3700_v13  ;;  %v3335_v46 = vmul.f32 0.3275911, %v6863_v2  ;;  %v3737_v14 = vmul.f32 %v5535_v40, %v3617_v9  ;;  %v6882_v41 = vmul.f32 0.70710677, %v6867_v62 }
 0xfc0   : > { %7495 = vst [vmem:[#allocation26_spill] sm:$0xff] %v6859_v24  ;;  %v3595_v26 = vadd.f32 0.2548296, %v3571_v34  ;;  %v6886_v5 = vadd.f32 %v6631_v63, %v6571_v32  ;;  %v3279_v52 = vsel %vm3255_vm11, 1.0, %v7493_v28  ;;  %v3597_v22 = vadd.f32 0.2548296, %v3573_v56 }
 0xfc1   : > { %v6877_v53 = vpop.eup %5536  ;;  %v3359_v58 = vadd.f32 1.0, %v3335_v46  ;;  %v6895_v12 = vand.u32 2147483647, %v6882_v41  ;;  %v3759_v39 = vsub.f32 1.0, %v3735_v11  ;;  %v3281_v10 = vsel %vm3257_vm12, 1.0, %v7493_v28  ;;  %v7496_v46 = vld [vmem:[#allocation24_spill] sm:$0xff] }
 0xfc2   : > { %v3430_v54 = vmul.f32 1.0614054, %v6877_v53  ;;  %v3761_v63 = vsub.f32 1.0, %v3737_v14  ;;  %v6900_v0 = vmul.f32 0.5, %v6645_v21  ;;  %v3283_v31 = vsel %vm3259_vm13, 1.0, %v7493_v28 }
 0xfc3   : > { %5544 = vrcp.f32 %v3359_v58  ;;  %v3337_v49 = vmul.f32 0.3275911, %v6895_v12  ;;  %v3619_v55 = vmul.f32 %v6760_v29, %v3595_v26  ;;  %v3646_v57 = vsub.f32 0.0, %v6796_v7 }
 0xfc4   : > { %v6909_v16 = vmul.f32 0.70710677, %v6886_v5  ;;  %v6912_v33 = vmul.f32 0.70710677, %v6890_v20  ;;  %v3621_v21 = vmul.f32 %v6784_v50, %v3597_v22  ;;  %vm3262_vm15 = vcmp.ge.f32.partialorder %v6774_v23, 0.0 }
 0xfc5   : > { %v3361_v15 = vadd.f32 1.0, %v3337_v49  ;;  %v3783_v37 = vmul.f32 %v3759_v39, %v3279_v52  ;;  %v3454_v44 = vadd.f32 -1.4531521, %v3430_v54  ;;  %v3785_v40 = vmul.f32 %v3761_v63, %v3281_v10 }
 0xfc6   : > { %v6918_v29 = vand.u32 2147483647, %v6909_v16  ;;  %v6921_v3 = vand.u32 2147483647, %v6912_v33  ;;  %v6926_v27 = vmul.f32 0.5, %v6673_v43  ;;  %v6930_v50 = vadd.f32 %v6641_v19, %v6579_v45 }
 0xfc7   : > { %v5539_v42 = vpop.eup %5538  ;;  %5546 = vrcp.f32 %v3361_v15  ;;  %v3285_v9 = vsel %vm3261_vm14, 1.0, %v7493_v28  ;;  %v3670_v34 = vmul.f32 %v3646_v57, %v6796_v7  ;;  %v6938_v14 = vmul.f32 0.5, %v7496_v46 }
 0xfc8   : > { %v6923_v47 = vpop.eup %5540  ;;  %v3739_v8 = vmul.f32 %v5539_v42, %v3619_v55  ;;  %v3338_v56 = vmul.f32 0.3275911, %v6918_v29  ;;  %v6943_v43 = vsel %vm3262_vm15, 1.0, %v7493_v28  ;;  %v3340_v19 = vmul.f32 0.3275911, %v6921_v3 }
 0xfc9   : > { %v5543_v13 = vpop.eup %5542  ;;  %v3807_v26 = vadd.f32 1.0, %v3783_v37  ;;  %v3478_v58 = vmul.f32 %v6877_v53, %v3454_v44  ;;  %v3432_v36 = vmul.f32 1.0614054, %v6923_v47  ;;  %v3809_v7 = vadd.f32 1.0, %v3785_v40 }
 0xfca   : > { %v3741_v11 = vmul.f32 %v5543_v13, %v3621_v21  ;;  %v3362_v52 = vadd.f32 1.0, %v3338_v56  ;;  %v3648_v22 = vsub.f32 0.0, %v6839_v4  ;;  %v3364_v39 = vadd.f32 1.0, %v3340_v19  ;;  %v7497_v21 = vld [vmem:[#allocation15_spill] sm:$0xff] }
 0xfcb   : > { %v6950_v10 = vmul.f32 0.70710677, %v6930_v50  ;;  %v3763_v23 = vsub.f32 1.0, %v3739_v8  ;;  %v3702_v63 = vmul.f32 1.442695, %v3670_v34  ;;  %v6955_v49 = vmul.f32 0.5, %v6817_v48 }
 0xfcc   : > { %5548 = vrcp.f32 %v3362_v52  ;;  %v3765_v55 = vsub.f32 1.0, %v3741_v11  ;;  %v6960_v15 = vadd.f32 %v7497_v21, %v6581_v59  ;;  %v6963_v42 = vmul.f32 %v3807_v26, %v6870_v18 }
 0xfcd   : > { %v6952_v54 = vpop.eup %5544  ;;  %5550 = vrcp.f32 %v3364_v39  ;;  %v3502_v37 = vadd.f32 1.4214138, %v3478_v58  ;;  %v3456_v44 = vadd.f32 -1.4531521, %v3432_v36  ;;  %v6966_v40 = vand.u32 2147483647, %v6950_v10 }
 0xfce   : > { %v3431_v57 = vmul.f32 1.0614054, %v6952_v54  ;;  %v6968_v13 = vmul.f32 %v3809_v7, %v3209_v25  ;;  %v3672_v48 = vmul.f32 %v3648_v22, %v6839_v4  ;;  %v6972_v8 = vmul.f32 0.5, %v6834_v35  ;;  %v7499_v7 = vld [vmem:[#allocation16_spill] sm:$0xff] }
 0xfcf   : > { %v3787_v56 = vmul.f32 %v3763_v23, %v3283_v31  ;;  %vm3264_vm0 = vcmp.ge.f32.partialorder %v6830_v30, 0.0  ;;  %vm3263_vm1 = vcmp.ge.f32.partialorder %v6849_v1, 0.0  ;;  %v3339_v18 = vmul.f32 0.3275911, %v6966_v40 }
 0xfd0   : > { %7498 = vst [vmem:[#allocation24_spill] sm:$0xff] %v6968_v13  ;;  %v3455_v34 = vadd.f32 -1.4531521, %v3431_v57  ;;  %v3789_v46 = vmul.f32 %v3765_v55, %v3285_v9  ;;  %5552 = vpow2.f32 %v3702_v63  ;;  %v3647_v25 = vsub.f32 0.0, %v6863_v2 }
 0xfd1   : > { %v6977_v11 = vpop.eup %5546  ;;  %v6981_v19 = vmul.f32 0.70710677, %v6960_v15  ;;  %v3526_v35 = vmul.f32 %v6877_v53, %v3502_v37  ;;  %v3480_v4 = vmul.f32 %v6923_v47, %v3456_v44  ;;  %v3363_v30 = vadd.f32 1.0, %v3339_v18 }
 0xfd2   : > { %v3433_v31 = vmul.f32 1.0614054, %v6977_v11  ;;  %v6987_v1 = vsel %vm3264_vm0, 1.0, %v7493_v28  ;;  %v3706_v26 = vmul.f32 1.442695, %v3672_v48  ;;  %v6990_v58 = vsel %vm3263_vm1, 1.0, %v7493_v28 }
 0xfd3   : > { %v3479_v9 = vmul.f32 %v6952_v54, %v3455_v34  ;;  %v3811_v36 = vadd.f32 1.0, %v3787_v56  ;;  %5554 = vrcp.f32 %v3363_v30  ;;  %v6995_v22 = vadd.f32 %v7499_v7, %v6571_v32 }
 0xfd4   : > { %v3457_v52 = vadd.f32 -1.4531521, %v3433_v31  ;;  %v3671_v39 = vmul.f32 %v3647_v25, %v6863_v2  ;;  %v6999_v23 = vmul.f32 0.5, %v6867_v62  ;;  %v3649_v63 = vsub.f32 0.0, %v6895_v12 }
 0xfd5   : > { %v7003_v55 = vand.u32 2147483647, %v6981_v19  ;;  %v3813_v21 = vadd.f32 1.0, %v3789_v46  ;;  %v3550_v37 = vadd.f32 -0.28449672, %v3526_v35  ;;  %5556 = vpow2.f32 %v3706_v26 }
 0xfd6   : > { %v7005_v57 = vpop.eup %5548  ;;  %v3504_v44 = vadd.f32 1.4214138, %v3480_v4  ;;  %v3481_v48 = vmul.f32 %v6977_v11, %v3457_v52  ;;  %v3503_v56 = vadd.f32 1.4214138, %v3479_v9  ;;  %v7013_v18 = vmul.f32 %v3811_v36, %v6900_v0 }
 0xfd7   : > { %v7008_v34 = vpop.eup %5550  ;;  %v3434_v2 = vmul.f32 1.0614054, %v7005_v57  ;;  %v3341_v62 = vmul.f32 0.3275911, %v7003_v55  ;;  %v7017_v46 = vmul.f32 0.70710677, %v6995_v22  ;;  %v3673_v35 = vmul.f32 %v3649_v63, %v6895_v12 }
 0xfd8   : > { %v3505_v25 = vadd.f32 1.4214138, %v3481_v48  ;;  %v3436_v31 = vmul.f32 1.0614054, %v7008_v34  ;;  %vm3265_vm2 = vcmp.ge.f32.partialorder %v6882_v41, 0.0  ;;  %v3574_v26 = vmul.f32 %v6877_v53, %v3550_v37 }
 0xfd9   : > { %v3458_v4 = vadd.f32 -1.4531521, %v3434_v2  ;;  %v3365_v30 = vadd.f32 1.0, %v3341_v62  ;;  %v3528_v9 = vmul.f32 %v6923_v47, %v3504_v44  ;;  %v3704_v52 = vmul.f32 1.442695, %v3671_v39 }
 0xfda   : > { %v3460_v7 = vadd.f32 -1.4531521, %v3436_v31  ;;  %v5553_v0 = vpop.eup %5552  ;;  %v3527_v36 = vmul.f32 %v6952_v54, %v3503_v56  ;;  %v3650_v6 = vsub.f32 0.0, %v6918_v29  ;;  %v7027_v41 = vsel %vm3265_vm2, 1.0, %v7493_v28 }
 0xfdb   : > { %v3482_v48 = vmul.f32 %v7005_v57, %v3458_v4  ;;  %5558 = vrcp.f32 %v3365_v30  ;;  %v3529_v12 = vmul.f32 %v6977_v11, %v3505_v25  ;;  %v7031_v63 = vmul.f32 0.5, %v6886_v5 }
 0xfdc   : > { %v7034_v37 = vand.u32 2147483647, %v7017_v46  ;;  %v7037_v39 = vmul.f32 %v3813_v21, %v6926_v27  ;;  %v3708_v44 = vmul.f32 1.442695, %v3673_v35  ;;  %vm3266_vm3 = vcmp.ge.f32.partialorder %v6909_v16, 0.0 }
 0xfdd   : > { %v3484_v56 = vmul.f32 %v7008_v34, %v3460_v7  ;;  %v7041_v2 = vpop.eup %5554  ;;  %v3598_v62 = vadd.f32 0.2548296, %v3574_v26  ;;  %v3552_v31 = vadd.f32 -0.28449672, %v3528_v9  ;;  %5560 = vpow2.f32 %v3704_v52 }
 0xfde   : > { %7500 = vst [vmem:[#allocation15_spill] sm:$0xff] %v7037_v39  ;;  %v3342_v25 = vmul.f32 0.3275911, %v7034_v37  ;;  %v3551_v5 = vadd.f32 -0.28449672, %v3527_v36  ;;  %v3674_v30 = vmul.f32 %v3650_v6, %v6918_v29  ;;  %v7047_v21 = vmul.f32 0.5, %v6890_v20 }
 0xfdf   : > { %v3506_v4 = vadd.f32 1.4214138, %v3482_v48  ;;  %v3435_v60 = vmul.f32 1.0614054, %v7041_v2  ;;  %v3553_v27 = vadd.f32 -0.28449672, %v3529_v12  ;;  %v5557_v7 = vpop.eup %5556  ;;  %v3622_v29 = vmul.f32 %v6877_v53, %v3598_v62 }
 0xfe0   : > { %vm3268_vm4 = vcmp.ge.f32.partialorder %v6912_v33, 0.0  ;;  %v3366_v35 = vadd.f32 1.0, %v3342_v25  ;;  %v7053_v26 = vsel %vm3266_vm3, 1.0, %v7493_v28  ;;  %v3508_v9 = vadd.f32 1.4214138, %v3484_v56  ;;  %v7501_v36 = vld [vmem:[#allocation17_spill] sm:$0xff] }
 0xfe1   : > { %v3459_v52 = vadd.f32 -1.4531521, %v3435_v60  ;;  %v7057_v6 = vadd.f32 %v7501_v36, %v6575_v38  ;;  %v3576_v20 = vmul.f32 %v6923_v47, %v3552_v31  ;;  %5562 = vpow2.f32 %v3708_v44 }
 0xfe2   : > { %v3652_v48 = vsub.f32 0.0, %v6921_v3  ;;  %v3575_v12 = vmul.f32 %v6952_v54, %v3551_v5  ;;  %v3530_v25 = vmul.f32 %v7005_v57, %v3506_v4  ;;  %v3710_v16 = vmul.f32 1.442695, %v3674_v30 }
 0xfe3   : > { %7502 = vst [vmem:[#allocation16_spill] sm:$0xff] %v7057_v6  ;;  %v3483_v51 = vmul.f32 %v7041_v2, %v3459_v52  ;;  %v3577_v60 = vmul.f32 %v6977_v11, %v3553_v27  ;;  %v7069_v56 = vsel %vm3268_vm4, 1.0, %v7493_v28  ;;  %v7072_v53 = vmul.f32 0.5, %v6930_v50 }
 0xfe4   : > { %5564 = vrcp.f32 %v3366_v35  ;;  %v3532_v62 = vmul.f32 %v7008_v34, %v3508_v9  ;;  %v3651_v5 = vsub.f32 0.0, %v6966_v40  ;;  %v7079_v4 = vmul.f32 0.70710677, %v7057_v6 }
 0xfe5   : > { %v7074_v44 = vpop.eup %5558  ;;  %v3507_v31 = vadd.f32 1.4214138, %v3483_v51  ;;  %v3742_v30 = vmul.f32 %v5553_v0, %v3622_v29  ;;  %v3600_v27 = vadd.f32 0.2548296, %v3576_v20  ;;  %v3676_v33 = vmul.f32 %v3652_v48, %v6921_v3  ;;  %v7503_v3 = vld [vmem:[#allocation18_spill] sm:$0xff] }
 0xfe6   : > { %v3437_v52 = vmul.f32 1.0614054, %v7074_v44  ;;  %v3599_v36 = vadd.f32 0.2548296, %v3575_v12  ;;  %v3554_v50 = vadd.f32 -0.28449672, %v3530_v25  ;;  %5566 = vpow2.f32 %v3710_v16 }
 0xfe7   : > { %v3653_v35 = vsub.f32 0.0, %v7003_v55  ;;  %v5561_v24 = vpop.eup %5560  ;;  %v3601_v39 = vadd.f32 0.2548296, %v3577_v60  ;;  %vm3267_vm5 = vcmp.ge.f32.partialorder %v6950_v10, 0.0  ;;  %v3531_v51 = vmul.f32 %v7041_v2, %v3507_v31 }
 0xfe8   : > { %v3461_v9 = vadd.f32 -1.4531521, %v3437_v52  ;;  %v3556_v6 = vadd.f32 -0.28449672, %v3532_v62  ;;  %v3675_v0 = vmul.f32 %v3651_v5, %v6966_v40  ;;  %v7088_v29 = vand.u32 2147483647, %v7079_v4 }
 0xfe9   : > { %v7092_v20 = vadd.f32 %v7503_v3, %v6579_v45  ;;  %v3766_v48 = vsub.f32 1.0, %v3742_v30  ;;  %v3624_v12 = vmul.f32 %v6923_v47, %v3600_v27  ;;  %v3714_v25 = vmul.f32 1.442695, %v3676_v33 }
 0xfea   : > { %v3485_v16 = vmul.f32 %v7074_v44, %v3461_v9  ;;  %v3623_v60 = vmul.f32 %v6952_v54, %v3599_v36  ;;  %v3578_v31 = vmul.f32 %v7005_v57, %v3554_v50  ;;  %v3677_v62 = vmul.f32 %v3653_v35, %v7003_v55 }
 0xfeb   : > { %7504 = vst [vmem:[#allocation17_spill] sm:$0xff] %v7092_v20  ;;  %v3344_v40 = vmul.f32 0.3275911, %v7088_v29  ;;  %v5563_v5 = vpop.eup %5562  ;;  %v3625_v52 = vmul.f32 %v6977_v11, %v3601_v39  ;;  %v7104_v30 = vsel %vm3267_vm5, 1.0, %v7493_v28  ;;  %v3555_v47 = vadd.f32 -0.28449672, %v3531_v51 }
 0xfec   : > { %v3509_v27 = vadd.f32 1.4214138, %v3485_v16  ;;  %v3580_v33 = vmul.f32 %v7008_v34, %v3556_v6  ;;  %v3712_v9 = vmul.f32 1.442695, %v3675_v0  ;;  %v7108_v36 = vmul.f32 0.70710677, %v7092_v20 }
 0xfed   : > { %v3368_v54 = vadd.f32 1.0, %v3344_v40  ;;  %v3790_v50 = vmul.f32 %v3766_v48, %v6943_v43  ;;  %v3744_v35 = vmul.f32 %v5557_v7, %v3624_v12  ;;  %5568 = vpow2.f32 %v3714_v25  ;;  %v7505_v16 = vld [vmem:[#allocation19_spill] sm:$0xff] }
 0xfee   : > { %v7110_v55 = vpop.eup %5564  ;;  %v3533_v11 = vmul.f32 %v7074_v44, %v3509_v27  ;;  %v3743_v10 = vmul.f32 %v5561_v24, %v3623_v60  ;;  %v3602_v39 = vadd.f32 0.2548296, %v3578_v31  ;;  %v3716_v3 = vmul.f32 1.442695, %v3677_v62 }
 0xfef   : > { %5570 = vrcp.f32 %v3368_v54  ;;  %v3745_v51 = vmul.f32 %v5563_v5, %v3625_v52  ;;  %v3579_v6 = vmul.f32 %v7041_v2, %v3555_v47  ;;  %v7117_v40 = vadd.f32 %v7505_v16, %v6581_v59 }
 0xff0   : > { %v3557_v0 = vadd.f32 -0.28449672, %v3533_v11  ;;  %v5567_v20 = vpop.eup %5566  ;;  %v3604_v13 = vadd.f32 0.2548296, %v3580_v33  ;;  %5572 = vpow2.f32 %v3712_v9  ;;  %v3438_v43 = vmul.f32 1.0614054, %v7110_v55 }
 0xff1   : > { %v7121_v7 = vand.u32 2147483647, %v7108_v36  ;;  %v3814_v24 = vadd.f32 1.0, %v3790_v50  ;;  %v3768_v48 = vsub.f32 1.0, %v3744_v35  ;;  %vm3269_vm6 = vcmp.ge.f32.partialorder %v6981_v19, 0.0  ;;  %v7506_v19 = vld [vmem:[#allocation20_spill] sm:$0xff] }
 0xff2   : > { %v3581_v12 = vmul.f32 %v7074_v44, %v3557_v0  ;;  %v3626_v25 = vmul.f32 %v7005_v57, %v3602_v39  ;;  %5574 = vpow2.f32 %v3716_v3  ;;  %v3654_v60 = vsub.f32 0.0, %v7034_v37 }
 0xff3   : > { %v3343_v31 = vmul.f32 0.3275911, %v7121_v7  ;;  %v3767_v62 = vsub.f32 1.0, %v3743_v10  ;;  %v3769_v5 = vsub.f32 1.0, %v3745_v51  ;;  %v3603_v52 = vadd.f32 0.2548296, %v3579_v6 }
 0xff4   : > { %v7129_v47 = vmul.f32 0.70710677, %v7117_v40  ;;  %v3628_v27 = vmul.f32 %v7008_v34, %v3604_v13  ;;  %v3462_v33 = vadd.f32 -1.4531521, %v3438_v43  ;;  %v7134_v54 = vadd.f32 %v7506_v19, %v6571_v32 }
 0xff5   : > { %v3367_v9 = vadd.f32 1.0, %v3343_v31  ;;  %v7137_v57 = vmul.f32 0.5, %v6960_v15  ;;  %v7140_v50 = vsel %vm3269_vm6, 1.0, %v7493_v28  ;;  %v3605_v35 = vadd.f32 0.2548296, %v3581_v12 }
 0xff6   : > { %v7143_v11 = vand.u32 2147483647, %v7129_v47  ;;  %v7146_v10 = vmul.f32 %v3814_v24, %v6938_v14  ;;  %v3792_v13 = vmul.f32 %v3768_v48, %v6987_v1  ;;  %v3746_v34 = vmul.f32 %v5567_v20, %v3626_v25 }
 0xff7   : > { %5576 = vrcp.f32 %v3367_v9  ;;  %v5569_v39 = vpop.eup %5568  ;;  %v3791_v32 = vmul.f32 %v3767_v62, %v6990_v58  ;;  %v3627_v15 = vmul.f32 %v7041_v2, %v3603_v52  ;;  %v3678_v3 = vmul.f32 %v3654_v60, %v7034_v37  ;;  %v7507_v2 = vld [vmem:[#allocation21_spill] sm:$0xff] }
 0xff8   : > { %v3345_v51 = vmul.f32 0.3275911, %v7143_v11  ;;  %v3793_v0 = vmul.f32 %v3769_v5, %v7027_v41  ;;  %v3748_v16 = vmul.f32 %v5569_v39, %v3628_v27  ;;  %v3486_v14 = vmul.f32 %v7110_v55, %v3462_v33  ;;  %v7508_v39 = vld [vmem:[#allocation22_spill] sm:$0xff] }
 0xff9   : > { %v7153_v6 = vpop.eup %5570  ;;  %v7158_v1 = vmul.f32 0.70710677, %v7134_v54  ;;  %v3629_v20 = vmul.f32 %v7074_v44, %v3605_v35  ;;  %v7164_v37 = vadd.f32 %v7507_v2, %v6575_v38  ;;  %v3816_v48 = vadd.f32 1.0, %v3792_v13 }
 0xffa   : > { %v3440_v58 = vmul.f32 1.0614054, %v7153_v6  ;;  %v3369_v43 = vadd.f32 1.0, %v3345_v51  ;;  %v5573_v24 = vpop.eup %5572  ;;  %v3770_v12 = vsub.f32 1.0, %v3746_v34  ;;  %v7167_v41 = vmul.f32 0.5, %v6995_v22 }
 0xffb   : > { %v7170_v25 = vand.u32 2147483647, %v7158_v1  ;;  %v3747_v60 = vmul.f32 %v5573_v24, %v3627_v15  ;;  %v3718_v31 = vmul.f32 1.442695, %v3678_v3  ;;  %v3815_v5 = vadd.f32 1.0, %v3791_v32 }
 0xffc   : > { %v3464_v62 = vadd.f32 -1.4531521, %v3440_v58  ;;  %5578 = vrcp.f32 %v3369_v43  ;;  %v5575_v44 = vpop.eup %5574  ;;  %v3772_v52 = vsub.f32 1.0, %v3748_v16  ;;  %v3510_v27 = vadd.f32 1.4214138, %v3486_v14 }
 0xffd   : > { %v3346_v38 = vmul.f32 0.3275911, %v7170_v25  ;;  %v3817_v33 = vadd.f32 1.0, %v3793_v0  ;;  %v3749_v9 = vmul.f32 %v5575_v44, %v3629_v20  ;;  %v3656_v19 = vsub.f32 0.0, %v7088_v29  ;;  %v7509_v44 = vld [vmem:[#allocation23_spill] sm:$0xff] }
 0xffe   : > { %v7175_v22 = vmul.f32 0.70710677, %v7164_v37  ;;  %v3794_v35 = vmul.f32 %v3770_v12, %v7053_v26  ;;  %v3488_v13 = vmul.f32 %v7153_v6, %v3464_v62  ;;  %v7181_v15 = vadd.f32 %v7508_v39, %v6579_v45 }
 0xfff   : > { %v3370_v34 = vadd.f32 1.0, %v3346_v38  ;;  %v7184_v32 = vmul.f32 %v3816_v48, %v6955_v49  ;;  %v3771_v3 = vsub.f32 1.0, %v3747_v60  ;;  %5580 = vpow2.f32 %v3718_v31 }
0x1000   : > { %v7187_v51 = vand.u32 2147483647, %v7175_v22  ;;  %v7192_v16 = vmul.f32 %v3815_v5, %v6972_v8  ;;  %v3796_v26 = vmul.f32 %v3772_v52, %v7069_v56  ;;  %v3534_v14 = vmul.f32 %v7110_v55, %v3510_v27 }
0x1001   : > { %v7189_v0 = vpop.eup %5576  ;;  %5582 = vrcp.f32 %v3370_v34  ;;  %v7197_v45 = vmul.f32 %v3817_v33, %v6999_v23  ;;  %v3773_v49 = vsub.f32 1.0, %v3749_v9  ;;  %v3818_v43 = vadd.f32 1.0, %v3794_v35 }
0x1002   : > { %v3439_v20 = vmul.f32 1.0614054, %v7189_v0  ;;  %v3348_v58 = vmul.f32 0.3275911, %v7187_v51  ;;  %v3512_v2 = vadd.f32 1.4214138, %v3488_v13  ;;  %v3680_v24 = vmul.f32 %v3656_v19, %v7088_v29 }
0x1003   : > { %v7203_v8 = vmul.f32 0.70710677, %v7181_v15  ;;  %v3795_v56 = vmul.f32 %v3771_v3, %v7104_v30  ;;  %v3655_v12 = vsub.f32 0.0, %v7121_v7  ;;  %v3820_v23 = vadd.f32 1.0, %v3796_v26 }
0x1004   : > { %v3463_v48 = vadd.f32 -1.4531521, %v3439_v20  ;;  %v3372_v60 = vadd.f32 1.0, %v3348_v58  ;;  %v3558_v31 = vadd.f32 -0.28449672, %v3534_v14  ;;  %v7212_v5 = vadd.f32 %v7509_v44, %v6581_v59 }
0x1005   : > { %v7208_v62 = vand.u32 2147483647, %v7203_v8  ;;  %v3797_v29 = vmul.f32 %v3773_v49, %v7140_v50  ;;  %v3658_v30 = vsub.f32 0.0, %v7170_v25  ;;  %v3536_v38 = vmul.f32 %v7153_v6, %v3512_v2 }
0x1006   : > { %v7214_v52 = vpop.eup %5578  ;;  %v3487_v27 = vmul.f32 %v7189_v0, %v3463_v48  ;;  %5584 = vrcp.f32 %v3372_v60  ;;  %v3722_v33 = vmul.f32 1.442695, %v3680_v24  ;;  %v7223_v35 = vmul.f32 %v3818_v43, %v7031_v63 }
0x1007   : > { %v3441_v9 = vmul.f32 1.0614054, %v7214_v52  ;;  %v3347_v19 = vmul.f32 0.3275911, %v7208_v62  ;;  %v3819_v59 = vadd.f32 1.0, %v3795_v56  ;;  %v3679_v34 = vmul.f32 %v3655_v12, %v7121_v7 }
0x1008   : > { %v3511_v13 = vadd.f32 1.4214138, %v3487_v27  ;;  %v3582_v50 = vmul.f32 %v7110_v55, %v3558_v31  ;;  %v7228_v26 = vmul.f32 0.70710677, %v7212_v5  ;;  %v7231_v49 = vmul.f32 %v3820_v23, %v7047_v21 }
0x1009   : > { %v3465_v39 = vadd.f32 -1.4531521, %v3441_v9  ;;  %v3371_v3 = vadd.f32 1.0, %v3347_v19  ;;  %v5581_v14 = vpop.eup %5580  ;;  %v3821_v20 = vadd.f32 1.0, %v3797_v29  ;;  %v3682_v58 = vmul.f32 %v3658_v30, %v7170_v25 }
0x100a   : > { %v3855_v63 = vpack.c.bf16 %v7013_v18, %v6963_v42  ;;  %v3560_v7 = vadd.f32 -0.28449672, %v3536_v38  ;;  %v7240_v24 = vand.u32 2147483647, %v7228_v26  ;;  %v3843_v56 = vmul.f32 %v3819_v59, %v7072_v53  ;;  %v7511_v38 = vld [vmem:[#allocation24_spill] sm:$0xff] }
0x100b   : > { %v7236_v43 = vpop.eup %5582  ;;  %v3489_v2 = vmul.f32 %v7214_v52, %v3465_v39  ;;  %5586 = vrcp.f32 %v3371_v3  ;;  %v3535_v21 = vmul.f32 %v7189_v0, %v3511_v13  ;;  %v3660_v25 = vsub.f32 0.0, %v7187_v51 }
0x100c   : > { %v3442_v48 = vmul.f32 1.0614054, %v7236_v43  ;;  %4161 = vmatprep.mubr.bf16.mxu1 %v3855_v63  ;;  %v3606_v12 = vadd.f32 0.2548296, %v3582_v50  ;;  %5588 = vpow2.f32 %v3722_v33  ;;  %v3720_v42 = vmul.f32 1.442695, %v3679_v34 }
0x100d   : > { %v3349_v18 = vmul.f32 0.3275911, %v7240_v24  ;;  %v7510_v60 = vpack.c.bf16 %v6845_v61, %v6842_v17  ;;  %v3845_v23 = vmul.f32 %v3821_v20, %v7137_v57  ;;  %vm3270_vm7 = vcmp.ge.f32.partialorder %v7017_v46, 0.0  ;;  %v7512_v33 = vld [vmem:[#allocation15_spill] sm:$0xff]  ;;  %v7514_v63 = vld [vmem:[#allocation25_spill] sm:$0xff] }
0x100e   : > { %v3513_v53 = vadd.f32 1.4214138, %v3489_v2  ;;  %v3657_v31 = vsub.f32 0.0, %v7143_v11  ;;  %v3466_v44 = vadd.f32 -1.4531521, %v3442_v48  ;;  %vm3272_vm8 = vcmp.ge.f32.partialorder %v7079_v4, 0.0 }
0x100f   : > { %4162 = vmatmul.mubr.bf16.vlgmr.msra.gmra.mrb[60].mxu1 %v7510_v60  ;;  %v3584_v29 = vmul.f32 %v7153_v6, %v3560_v7  ;;  %v3726_v27 = vmul.f32 1.442695, %v3682_v58  ;;  %v3373_v30 = vadd.f32 1.0, %v3349_v18  ;;  %v3857_v9 = vpack.c.bf16 %v7512_v33, %v7511_v38  ;;  %v7513_v58 = vld [vmem:[#allocation26_spill] sm:$0xff] }
0x1010   : > { %v7257_v19 = vpop.eup %5584  ;;  %v3559_v17 = vadd.f32 -0.28449672, %v3535_v21  ;;  %v3490_v61 = vmul.f32 %v7236_v43, %v3466_v44  ;;  %v3684_v57 = vmul.f32 %v3660_v25, %v7187_v51  ;;  %v3859_v59 = vpack.c.bf16 %v3843_v56, %v7192_v16 }
0x1011   : > { %v3630_v13 = vmul.f32 %v7110_v55, %v3606_v12  ;;  %v3444_v34 = vmul.f32 1.0614054, %v7257_v19  ;;  %v3659_v50 = vsub.f32 0.0, %v7208_v62  ;;  %5590 = vrcp.f32 %v3373_v30  ;;  %4218 = vmatprep.mubr.bf16.mxu0 %v3857_v9 }
0x1012   : > { %v3537_v39 = vmul.f32 %v7214_v52, %v3513_v53  ;;  %v3681_v3 = vmul.f32 %v3657_v31, %v7143_v11  ;;  %v3514_v20 = vadd.f32 1.4214138, %v3490_v61  ;;  %v7515_v7 = vpack.c.bf16 %v7513_v58, %v7514_v63  ;;  %4169 = vmatprep.mubr.bf16.mxu1 %v3859_v59 }
0x1013   : > { %v3861_v51 = vpack.c.bf16 %v3845_v23, %v7197_v45  ;;  %v3608_v16 = vadd.f32 0.2548296, %v3584_v29  ;;  %5592 = vpow2.f32 %v3726_v27  ;;  %v3468_v55 = vadd.f32 -1.4531521, %v3444_v34 }
0x1014   : > { %4219 = vmatmul.mubr.bf16.vlgmr.msra.gmra.mrb[64].mxu0 %v7515_v7  ;;  %v3858_v2 = vpack.c.bf16 %v7223_v35, %v7146_v10  ;;  %v3583_v56 = vmul.f32 %v7189_v0, %v3559_v17  ;;  %v3538_v21 = vmul.f32 %v7236_v43, %v3514_v20  ;;  %v3730_v48 = vmul.f32 1.442695, %v3684_v57 }
0x1015   : > { %4226 = vmatprep.mubr.bf16.mxu0 %v3861_v51  ;;  %v3860_v11 = vpack.c.bf16 %v7231_v49, %v7184_v32  ;;  %v7277_v25 = vpop.eup %5586  ;;  %v3750_v12 = vmul.f32 %v5581_v14, %v3630_v13  ;;  %5594 = vpow2.f32 %v3720_v42  ;;  %v3492_v45 = vmul.f32 %v7257_v19, %v3468_v55 }
0x1016   : > { %v3683_v18 = vmul.f32 %v3659_v50, %v7208_v62  ;;  %v3561_v60 = vadd.f32 -0.28449672, %v3537_v39  ;;  %v3562_v10 = vadd.f32 -0.28449672, %v3538_v21  ;;  %v3443_v35 = vmul.f32 1.0614054, %v7277_v25  ;;  %v5589_v23 = vpop.eup %5588 }
0x1017   : > { %4170 = vmatmul.mubr.bf16.gmra.mrb[64].mxu1 %v3858_v2  ;;  %v3632_v53 = vmul.f32 %v7153_v6, %v3608_v16  ;;  %v3724_v31 = vmul.f32 1.442695, %v3681_v3  ;;  %v3516_v44 = vadd.f32 1.4214138, %v3492_v45  ;;  %v3661_v32 = vsub.f32 0.0, %v7240_v24 }
0x1018   : > { %v3607_v49 = vadd.f32 0.2548296, %v3583_v56  ;;  %v3586_v14 = vmul.f32 %v7236_v43, %v3562_v10  ;;  %5596 = vpow2.f32 %v3730_v48  ;;  %v3467_v42 = vadd.f32 -1.4531521, %v3443_v35 }
0x1019   : > { %v3294_v62 = vsel %vm3270_vm7, 1.0, %v7493_v28  ;;  %v3774_v29 = vsub.f32 1.0, %v3750_v12  ;;  %v3540_v27 = vmul.f32 %v7257_v19, %v3516_v44  ;;  %v3728_v30 = vmul.f32 1.442695, %v3683_v18 }
0x101a   : > { %v3296_v6 = vsel %vm3272_vm8, 1.0, %v7493_v28  ;;  %v3585_v38 = vmul.f32 %v7214_v52, %v3561_v60  ;;  %v3610_v33 = vadd.f32 0.2548296, %v3586_v14  ;;  %v3491_v9 = vmul.f32 %v7277_v25, %v3467_v42 }
0x101b   : > { %v7294_v17 = vpop.eup %5590  ;;  %v3752_v61 = vmul.f32 %v5589_v23, %v3632_v53  ;;  %5598 = vpow2.f32 %v3724_v31  ;;  %v3564_v46 = vadd.f32 -0.28449672, %v3540_v27  ;;  %v3685_v57 = vmul.f32 %v3661_v32, %v7240_v24 }
0x101c   : > { %4227 = vmatmul.mubr.bf16.gmra.mrb[68].mxu0 %v3860_v11  ;;  %v3631_v59 = vmul.f32 %v7189_v0, %v3607_v49  ;;  %v3634_v13 = vmul.f32 %v7236_v43, %v3610_v33  ;;  %v3515_v34 = vadd.f32 1.4214138, %v3491_v9  ;;  %v3445_v4 = vmul.f32 1.0614054, %v7294_v17 }
0x101d   : > { %v5593_v50 = vpop.eup %5592  ;;  %v3798_v39 = vmul.f32 %v3774_v29, %v3294_v62  ;;  %vm3274_vm9 = vcmp.ge.f32.partialorder %v7158_v1, 0.0  ;;  %v3588_v3 = vmul.f32 %v7257_v19, %v3564_v46  ;;  %5600 = vpow2.f32 %v3728_v30 }
0x101e   : > { %v3609_v20 = vadd.f32 0.2548296, %v3585_v38  ;;  %v3754_v58 = vmul.f32 %v5593_v50, %v3634_v13  ;;  %v3539_v63 = vmul.f32 %v7277_v25, %v3515_v34  ;;  %v3469_v7 = vadd.f32 -1.4531521, %v3445_v4 }
0x101f   : > { %v5595_v24 = vpop.eup %5594  ;;  %v3776_v51 = vsub.f32 1.0, %v3752_v61  ;;  %vm3271_vm10 = vcmp.ge.f32.partialorder %v7108_v36, 0.0  ;;  %v3612_v0 = vadd.f32 0.2548296, %v3588_v3  ;;  %v3732_v43 = vmul.f32 1.442695, %v3685_v57 }
0x1020   : > { %v3751_v16 = vmul.f32 %v5595_v24, %v3631_v59  ;;  %v3778_v55 = vsub.f32 1.0, %v3754_v58  ;;  %v3563_v2 = vadd.f32 -0.28449672, %v3539_v63  ;;  %v3493_v56 = vmul.f32 %v7294_v17, %v3469_v7  ;;  %v7516_v61 = vld [vmem:[#allocation16_spill] sm:$0xff]  ;;  %v7517_v58 = vld [vmem:[#allocation17_spill] sm:$0xff] }
0x1021   : > { %v3822_v21 = vadd.f32 1.0, %v3798_v39  ;;  %v3298_v48 = vsel %vm3274_vm9, 1.0, %v7493_v28  ;;  %vm3276_vm11 = vcmp.ge.f32.partialorder %v7175_v22, 0.0  ;;  %v3636_v11 = vmul.f32 %v7257_v19, %v3612_v0 }
0x1022   : > { %v5597_v12 = vpop.eup %5596  ;;  %v3633_v45 = vmul.f32 %v7214_v52, %v3609_v20  ;;  %v3802_v18 = vmul.f32 %v3778_v55, %v3298_v48  ;;  %v3587_v60 = vmul.f32 %v7277_v25, %v3563_v2  ;;  %v3517_v10 = vadd.f32 1.4214138, %v3493_v56 }
0x1023   : > { %v3800_v35 = vmul.f32 %v3776_v51, %v3296_v6  ;;  %v3226_v23 = vmul.f32 0.5, %v7134_v54  ;;  %v3756_v53 = vmul.f32 %v5597_v12, %v3636_v11  ;;  %5602 = vpow2.f32 %v3732_v43 }
0x1024   : > { %v3775_v31 = vsub.f32 1.0, %v3751_v16  ;;  %v3826_v44 = vadd.f32 1.0, %v3802_v18  ;;  %v3611_v1 = vadd.f32 0.2548296, %v3587_v60  ;;  %v3541_v32 = vmul.f32 %v7294_v17, %v3517_v10 }
0x1025   : > { %v5599_v49 = vpop.eup %5598  ;;  %v3846_v19 = vmul.f32 %v3822_v21, %v7167_v41  ;;  %v3300_v52 = vsel %vm3276_vm11, 1.0, %v7493_v28  ;;  %v3780_v14 = vsub.f32 1.0, %v3756_v53  ;;  %v3824_v30 = vadd.f32 1.0, %v3800_v35 }
0x1026   : > { %v3753_v42 = vmul.f32 %v5599_v49, %v3633_v45  ;;  %v3850_v62 = vmul.f32 %v3826_v44, %v3226_v23  ;;  %v3635_v29 = vmul.f32 %v7277_v25, %v3611_v1  ;;  %v3565_v54 = vadd.f32 -0.28449672, %v3541_v32 }
0x1027   : > { %v5601_v27 = vpop.eup %5600  ;;  %v3295_v6 = vsel %vm3271_vm10, 1.0, %v7493_v28  ;;  %v3804_v38 = vmul.f32 %v3780_v14, %v3300_v52  ;;  %vm3275_vm12 = vcmp.ge.f32.partialorder %v7203_v8, 0.0  ;;  %v3224_v46 = vmul.f32 0.5, %v7516_v61 }
0x1028   : > { %v3799_v41 = vmul.f32 %v3775_v31, %v3295_v6  ;;  %v3755_v33 = vmul.f32 %v5601_v27, %v3635_v29  ;;  %v3589_v22 = vmul.f32 %v7294_v17, %v3565_v54  ;;  %v3862_v9 = vpack.c.bf16 %v3850_v62, %v3846_v19  ;;  %v7518_v54 = vld [vmem:[#allocation9_spill] sm:$0xff] }
0x1029   : > { %v3228_v57 = vmul.f32 0.5, %v7164_v37  ;;  %v3828_v25 = vadd.f32 1.0, %v3804_v38  ;;  %vm3273_vm13 = vcmp.ge.f32.partialorder %v7129_v47, 0.0  ;;  %v3777_v59 = vsub.f32 1.0, %v3753_v42 }
0x102a   : > { %v3779_v13 = vsub.f32 1.0, %v3755_v33  ;;  %v3613_v34 = vadd.f32 0.2548296, %v3589_v22  ;;  %v3848_v36 = vmul.f32 %v3824_v30, %v3224_v46  ;;  %v3299_v50 = vsel %vm3275_vm12, 1.0, %v7493_v28 }
0x102b   : > { %v3852_v4 = vmul.f32 %v3828_v25, %v3228_v57  ;;  %v3823_v8 = vadd.f32 1.0, %v3799_v41  ;;  %v3223_v63 = vmul.f32 0.5, %v7517_v58  ;;  %v3297_v7 = vsel %vm3273_vm13, 1.0, %v7493_v28  ;;  %v7519_v41 = vld [vmem:[#allocation10_spill] sm:$0xff] }
0x102c   : > { %v3803_v39 = vmul.f32 %v3779_v13, %v3299_v50  ;;  %v3637_v3 = vmul.f32 %v7294_v17, %v3613_v34  ;;  %v3227_v37 = vmul.f32 0.5, %v7181_v15  ;;  %v3801_v47 = vmul.f32 %v3777_v59, %v3297_v7 }
0x102d   : > { %v5603_v20 = vpop.eup %5602  ;;  %v3864_v24 = vpack.c.bf16 %v3852_v4, %v3848_v36  ;;  %vm3277_vm14 = vcmp.ge.f32.partialorder %v7228_v26, 0.0  ;;  %v3847_v43 = vmul.f32 %v3823_v8, %v3223_v63  ;;  %v3225_v48 = vmul.f32 0.5, %v7117_v40  ;;  %v7520_v36 = vld [vmem:[#allocation11_spill] sm:$0xff]  ;;  %v7521_v8 = vld [vmem:[#allocation12_spill] sm:$0xff] }
0x102e   : > { %v3827_v51 = vadd.f32 1.0, %v3803_v39  ;;  %v3757_v0 = vmul.f32 %v5603_v20, %v3637_v3  ;;  %v3301_v2 = vsel %vm3277_vm14, 1.0, %v7493_v28  ;;  %v3825_v17 = vadd.f32 1.0, %v3801_v47  ;;  %v4738_v28 = vld [vmem:[%s751_s0] ss:$0 sm:$0xff] }
0x102f   : > { %v3229_v11 = vmul.f32 0.5, %v7212_v5  ;;  %vm4264_vm15 = vcmask (!%p4771_p6), 1041409   ;;  %vm4267_vm0 = vcmask (!%p4771_p6), 1041408   ;;  %vm5682_vm1 = vmmov (!%p4771_p6), 0  }
0x1030   : > { %v3851_v16 = vmul.f32 %v3827_v51, %v3227_v37  ;;  %v3781_v55 = vsub.f32 1.0, %v3757_v0  ;;  %v3849_v12 = vmul.f32 %v3825_v17, %v3225_v48 }
0x1032   : > { %v3805_v56 = vmul.f32 %v3781_v55, %v3301_v2  ;;  %v3863_v21 = vpack.c.bf16 %v3851_v16, %v3847_v43 }
0x1034   : > { %v3829_v15 = vadd.f32 1.0, %v3805_v56  ;;  %4177 = vmatprep.mubr.bf16.mxu1 %v3863_v21  ;;  %v7522_v56 = vld [vmem:[#allocation13_spill] sm:$0xff] }
0x1035   : > { %4178 = vmatmul.mubr.bf16.gmra.mrb[68].mxu1 %v3862_v9 }
0x1036   : > { %v3853_v45 = vmul.f32 %v3829_v15, %v3229_v11  ;;  %v7523_v11 = vld [vmem:[#allocation14_spill] sm:$0xff] }
0x1038   : > { %v3865_v26 = vpack.c.bf16 %v3853_v45, %v3849_v12 }
0x103a   : > { %4234 = vmatprep.mubr.bf16.mxu0 %v3865_v26 }
0x103b   : > { %4235 = vmatmul.mubr.bf16.gmra.mrb[72].mxu0 %v3864_v24 }
0x10e2   : > { %v4892_v18 = vpop.f32.mrb[60].mxu1 }
0x10e3   : > { %v4893_v60 = vpop.f32.mrb[61].mxu1 }
0x10e4   : > { %v4894_v10 = vadd.f32 %v4893_v60, %v4892_v18  ;;  %v4895_v35 = vpop.f32.mrb[62].mxu1 }
0x10e5   : > { %v4896_v40 = vpop.f32.mrb[63].mxu1 }
0x10e6   : > { %v4897_v23 = vadd.f32 %v4896_v40, %v4895_v35  ;;  %v4164_v53 = vadd.f32 %v4894_v10, %v4738_v28 }
0x10e7   : > { %v4926_v5 = vpop.f32.mrb[64].mxu0 }
0x10e8   : > { %v4927_v31 = vpop.f32.mrb[65].mxu0  ;;  %v4167_v32 = vadd.f32 %v4897_v23, %v4738_v28 }
0x10e9   : > { %v4928_v44 = vadd.f32 %v4927_v31, %v4926_v5  ;;  %v4929_v1 = vpop.f32.mrb[66].mxu0 }
0x10ea   : > { %v4930_v49 = vpop.f32.mrb[67].mxu0  ;;  %v4898_v19 = vpop.f32.mrb[64].mxu1 }
0x10eb   : > { %v4221_v52 = vadd.f32 %v4928_v44, %v4164_v53  ;;  %v4931_v14 = vadd.f32 %v4930_v49, %v4929_v1  ;;  %v4899_v42 = vpop.f32.mrb[65].mxu1  ;;  %v5610_v44 = vld [vmem:[%s7436_s15] sm:$0xff] (!%p4771_p6)   ;;  %v5681_v1 = vmov (!%p4771_p6), 0.0   ;;  %v5612_v49 = vld [vmem:[%s7436_s15 + $0x10] sm:$0xff] (!%p4771_p6)  }
0x10ec   : > { %v4900_v62 = vadd.f32 %v4899_v42, %v4898_v19  ;;  %v4901_v29 = vpop.f32.mrb[66].mxu1  ;;  %5137 = vmatprep.subr.bf16.mxu0 (!%p4771_p6), %v5681_v1  ;;  %v5613_v19 = vld [vmem:[%s7436_s15 + $0x18] sm:$0xff] (!%p4771_p6)   ;;  %5153 = vmatprep.mubr.msk.bf16.mxu0 (!%p4771_p6), %vm5682_vm1, %v5681_v1  ;;  %v5616_v42 = vld [vmem:[%s7436_s15 + $0x30] sm:$0xff] (!%p4771_p6)  }
0x10ed   : > { %v4243_v27 = vadd.f32 %v4221_v52, %v7518_v54  ;;  %v4224_v30 = vadd.f32 %v4931_v14, %v4167_v32  ;;  %v4902_v6 = vpop.f32.mrb[67].mxu1  ;;  %5138 = vmatpush3.bf16.msra.mxu0 (!%p4771_p6), %v5610_v44  ;;  %v5611_v32 = vld [vmem:[%s7436_s15 + $0x8] sm:$0xff] (!%p4771_p6)   ;;  %v5614_v52 = vld [vmem:[%s7436_s15 + $0x20] sm:$0xff] (!%p4771_p6)  }
0x10ee   : > { %v4903_v38 = vadd.f32 %v4902_v6, %v4901_v29  ;;  %v4172_v9 = vadd.f32 %v4900_v62, %v4738_v28  ;;  %5139 = vmatprep.subr.bf16.mxu0 (!%p4771_p6), %v5681_v1  ;;  %v5615_v14 = vld [vmem:[%s7436_s15 + $0x28] sm:$0xff] (!%p4771_p6)   ;;  %v5617_v62 = vld [vmem:[%s7436_s15 + $0x38] sm:$0xff] (!%p4771_p6)   ;;  %v4772_v6 = vld [vmem:[%s7524_s27] ss:$0 sm:$0xff] (!%p4771_p6) }
0x10ef   : > { %4249 = vst [vmem:[#allocation2] sm:$0xff] %v4243_v27  ;;  %v4244_v33 = vadd.f32 %v4224_v30, %v7519_v41  ;;  %v4932_v22 = vpop.f32.mrb[68].mxu0 }
0x10f0   : > { %v4933_v61 = vpop.f32.mrb[69].mxu0  ;;  %v4175_v25 = vadd.f32 %v4903_v38, %v4738_v28 }
0x10f1   : > { %4250 = vst [vmem:[#allocation2 + $0x8] sm:$0xff] %v4244_v33  ;;  %v4934_v46 = vadd.f32 %v4933_v61, %v4932_v22  ;;  %v4935_v57 = vpop.f32.mrb[70].mxu0  ;;  %5140 = vmatpush3.bf16.msra.mxu0 (!%p4771_p6), %v5611_v32  ;;  %v4773_v33 = vld [vmem:[%s7525_s29] ss:$0 sm:$0xff] (!%p4771_p6) }
0x10f2   : > { %v4936_v59 = vpop.f32.mrb[71].mxu0  ;;  %5141 = vmatprep.subr.bf16.mxu0 (!%p4771_p6), %v5681_v1 }
0x10f3   : > { %v4229_v13 = vadd.f32 %v4934_v46, %v4172_v9  ;;  %v4937_v34 = vadd.f32 %v4936_v59, %v4935_v57 }
0x10f5   : > { %v4245_v4 = vadd.f32 %v4229_v13, %v7520_v36  ;;  %v4232_v50 = vadd.f32 %v4937_v34, %v4175_v25  ;;  %5142 = vmatpush3.bf16.msra.mxu0 (!%p4771_p6), %v5612_v49 }
0x10f6   : > { %5143 = vmatprep.subr.bf16.mxu0 (!%p4771_p6), %v5681_v1 }
0x10f7   : > { %4251 = vst [vmem:[#allocation2 + $0x10] sm:$0xff] %v4245_v4  ;;  %v4246_v39 = vadd.f32 %v4232_v50, %v7521_v8  ;;  %v4774_v8 = vld [vmem:[%s7526_s18] ss:$0 sm:$0xff] (!%p4771_p6) }
0x10f9   : > { %4252 = vst [vmem:[#allocation2 + $0x18] sm:$0xff] %v4246_v39  ;;  %v4263_v12 = vrot.slane (!%p4771_p6), %v4246_v39, 7  ;;  %5144 = vmatpush3.bf16.msra.mxu0 (!%p4771_p6), %v5613_v19 }
0x10fa   : > { %5145 = vmatprep.subr.bf16.mxu0 (!%p4771_p6), %v5681_v1 }
0x10fb   : > { %v4265_v45 = vsel (!%p4771_p6), %vm4264_vm15, %v4263_v12, %v4243_v27 }
0x10fc   : > { %v4268_v26 = vsel (!%p4771_p6), %vm4267_vm0, %v4265_v45, 0.0 }
0x10fd   : > { %4269 = vadd.xlane.f32.xlu0 (!%p4771_p6), %v4268_v26  ;;  %5146 = vmatpush3.bf16.msra.mxu0 (!%p4771_p6), %v5614_v52 }
0x10fe   : > { %5147 = vmatprep.subr.bf16.mxu0 (!%p4771_p6), %v5681_v1 }
0x1101   : > { %5148 = vmatpush3.bf16.msra.mxu0 (!%p4771_p6), %v5615_v14 }
0x1102   : > { %5149 = vmatprep.subr.bf16.mxu0 (!%p4771_p6), %v5681_v1 }
0x1105   : > { %5150 = vmatpush3.bf16.msra.mxu0 (!%p4771_p6), %v5616_v42 }
0x1106   : > { %5151 = vmatprep.subr.bf16.mxu0 (!%p4771_p6), %v5681_v1 }
0x1108   : > { %v4904_v3 = vpop.f32.mrb[68].mxu1 }
0x1109   : > { %v4905_v20 = vpop.f32.mrb[69].mxu1  ;;  %5152 = vmatpush3.bf16.msra.mxu0 (!%p4771_p6), %v5617_v62 }
0x110a   : > { %v4906_v58 = vadd.f32 %v4905_v20, %v4904_v3  ;;  %v4907_v63 = vpop.f32.mrb[70].mxu1 }
0x110b   : > { %v4908_v7 = vpop.f32.mrb[71].mxu1 }
0x110c   : > { %v4909_v37 = vadd.f32 %v4908_v7, %v4907_v63  ;;  %v4180_v47 = vadd.f32 %v4906_v58, %v4738_v28 }
0x110e   : > { %v4938_v24 = vpop.f32.mrb[72].mxu0  ;;  %v4183_v16 = vadd.f32 %v4909_v37, %v4738_v28 }
0x110f   : > { %v4939_v51 = vpop.f32.mrb[73].mxu0 }
0x1110   : > { %v4940_v0 = vadd.f32 %v4939_v51, %v4938_v24  ;;  %v4941_v43 = vpop.f32.mrb[74].mxu0 }
0x1111   : > { %v4942_v55 = vpop.f32.mrb[75].mxu0 }
0x1112   : > { %v4237_v2 = vadd.f32 %v4940_v0, %v4180_v47  ;;  %v4943_v17 = vadd.f32 %v4942_v55, %v4941_v43  ;;  %4258 = sbr.rel (%p4771_p6) target bundleno = 4892 (0x131c), region = 96 }
0x1114   : > { %v4247_v21 = vadd.f32 %v4237_v2, %v7522_v56  ;;  %v4240_v48 = vadd.f32 %v4943_v17, %v4183_v16 }
0x1116   : > { %4253 = vst [vmem:[#allocation2 + $0x20] sm:$0xff] %v4247_v21  ;;  %v4248_v15 = vadd.f32 %v4240_v48, %v7523_v11 }
0x1118   : > { %4254 = vst [vmem:[#allocation2 + $0x28] sm:$0xff] %v4248_v15 }
0x118a   : > { %v4270_v18 = vpop.xlane.xlu0 %4269 }
0x118b   : > { %v4271_v60 = vmul.f32 0.0078125, %v4270_v18 }
0x118d   : > { %v4273_v28 = vrot.slane %v4271_v60, 1  ;;  %v4276_v10 = vsub.f32 %v4243_v27, %v4271_v60 }
0x118f   : > { %v4277_v35 = vsub.f32 %v4246_v39, %v4273_v28  ;;  %v4278_v23 = vmul.f32 %v4276_v10, %v4276_v10 }
0x1191   : > { %v4279_v40 = vmul.f32 %v4277_v35, %v4277_v35 }
0x1193   : > { %v4282_v5 = vrot.slane %v4279_v40, 7 }
0x1195   : > { %v4283_v53 = vsel %vm4264_vm15, %v4282_v5, %v4278_v23 }
0x1196   : > { %v4285_v31 = vsel %vm4267_vm0, %v4283_v53, 0.0 }
0x1197   : > { %4286 = vadd.xlane.f32.xlu0 %v4285_v31 }
0x1224   : > { %v4287_v29 = vpop.xlane.xlu0 %4286 }
0x1225   : > { %v4288_v54 = vmul.f32 0.0078125, %v4287_v29 }
0x1227   : > { %v4289_v27 = vadd.f32 1e-06, %v4288_v54 }
0x1229   : > { %5618 = vrsqrt.f32 %v4289_v27 }
0x1233   : > { %v5619_v30 = vpop.eup %5618 }
0x1234   : > { %v4292_v38 = vrot.slane %v5619_v30, 1  ;;  %v4295_v41 = vmul.f32 %v5619_v30, %v4276_v10 }
0x1236   : > { %v4296_v22 = vmul.f32 %v4292_v38, %v4277_v35  ;;  %v4303_v9 = vmul.f32 %v4772_v6, %v4295_v41 }
0x1238   : > { %v4304_v61 = vmul.f32 %v4772_v6, %v4296_v22  ;;  %v4311_v46 = vadd.f32 %v4773_v33, %v4303_v9 }
0x123a   : > { %v4312_v57 = vadd.f32 %v4773_v33, %v4304_v61  ;;  %v4313_v25 = vpack.c.bf16 %v4311_v46, %v4311_v46 }
0x123c   : > { %v4314_v59 = vpack.c.bf16 %v4312_v57, %v4312_v57  ;;  %v4340_v34 = vunpack.c.l.b16 %v4313_v25 }
0x123e   : > { %v4341_v13 = vunpack.c.l.b16 %v4314_v59 }
0x1240   : > { %v4342_v36 = vrot.slane %v4341_v13, 7 }
0x1242   : > { %v4343_v4 = vsel %vm4264_vm15, %v4342_v36, %v4340_v34 }
0x1243   : > { %v4344_v50 = vpack.c.b16 %v4343_v4, %v4343_v4 }
0x1245   : > { %5154 = vmatmul.mubr.bf16.vlgmr.msra.gmra.mrb[0].mxu0 %v4344_v50 }
0x1318   : > { %v4428_v39 = vpop.f32.mrb[0].mxu0 }
0x1319   : > { %v4429_v3 = vadd.f32 %v4774_v8, %v4428_v39  ;;  %v5155_v20 = vpop.f32.mrb[1].mxu0 }
0x131a   : > { %v4431_v58 = vpop.f32.mrb[2].mxu0 }
0x131b   : > { %4434 = vst [vmem:[#allocation3] sm:$0x3] %v4429_v3  ;;  %v5156_v63 = vpop.f32.mrb[3].mxu0 }
0x131c PF: > { %s7527_s17 = sld [smem:[#allocation7_spill]]  ;;  %s5683_s20 = smov [#allocation3]  }
0x131d   : > { %s4444_s30 = sshll.u32 %s5683_s20, 4  ;;  %s4445_s30 = int_to_ptr.vmem [resolvable:$true] %s4444_s30 }
0x131e   : > { %s5620_s14 = scalar_lea.vmem %s4445_s30, 32  ;;  %p5627_p11 = scmp.lt.s32.totalorder %s4445_s30, %s4445_s30 }
0x131f   : > { %p5621_p8 = scmp.ne.s32.totalorder %s4445_s30, %s5620_s14  ;;  %p5628_p12 = scmp.lt.s32.totalorder %s5620_s14, %s5620_s14 }
0x1321   : > { %p5629_p13 = por %p5628_p12, %p5627_p11 }
0x1322   : > { %s7528_s21 = sadd.s32 4294967295, %s7527_s17  }
0x1323   : > { %p7386_p7 = scmp.eq.s32.totalorder %s7528_s21, 1 }
0x1325   : > { %p5622_p9 = pnand %p5621_p8, %p7386_p7 }
0x1327   : > { %p5623_p10 = pneg %p5622_p9 }
0x1329   : > { %p5630_p0 = pnand %p5629_p13, %p5623_p10 }
0x132b   : > { %5633 = shalt.err (!%p5630_p0)
}
0x132c   : > { %s7530_s25 = sld [smem:[#allocation34_spill]] }
0x1332   : > { %s7531_s28 = smov %s7530_s25  ;;  %s5634_s26 = scalar_lea.hbm %s7530_s25, 32 }
0x1333   : > { %p5635_p1 = scmp.ne.s32.totalorder %s7531_s28, %s5634_s26  ;;  %p5640_p4 = scmp.lt.u32.totalorder %s5634_s26, %s7531_s28 }
0x1335   : > { %p5636_p2 = pnand %p5635_p1, %p7386_p7 }
0x1337   : > { %p5637_p3 = pneg %p5636_p2 }
0x1339   : > { %p5642_p5 = pnand %p5640_p4, %p5637_p3 }
0x133b   : > { %5645 = shalt.err (!%p5642_p5)
}
0x133c   : > { %5184 = dma.vmem_to_hbm [thread:$0]  (%p7386_p7), %s4445_s30, 32, %s7531_s28, [#allocation4]  }
0x133d   : > { %5659 = dma.done.wait (%p7386_p7), [#allocation4], 32  }
0x133e   : > { %5661 = vsyncadd (%p7386_p7), [#allocation4], 4294967264 }
0x133f PF: > { %s7532_s0 = sld [smem:[#allocation7_spill]]  ;;  %s7533_s24 = sld [smem:[#allocation6_spill]] }
0x1340   : > { %s7534_s25 = sld [smem:[#allocation8_spill]] }
0x1345   : > { %s28_s26 = sadd.s32 1, %s7532_s0  }
0x1346   : > { %p25_p6 = scmp.ge.s32.totalorder %s28_s26, 4  }
0x1348   :  { %27 = sbr.rel (!%p25_p6) target bundleno = 11 (0xb), region = 160 }
0x134f   :  { %4457 = vsyncpa [#allocation4], 1 }
0x1350   :  { %4459 = vsyncpa [#allocation4 + $0x1], 1 }

</bundles_post_ra>
